<compile_context>
chip_gen: v6e
topology: v6e:2x2x1
jax: 0.10.0
libtpu: 0.0.40
codegen_flags: <defaults>
</compile_context>

<pallas_src>
import functools
import math

import jax
import jax.numpy as jnp
from jax.experimental import pallas as pl
from jax.experimental.pallas import tpu as pltpu

# The reference module depends on globals that are not defined in the spec
# (HARPY_INPUT['output_bits'], FFT_WEIGHT, WINDOW).  Reasonable choices:
OUTPUT_BITS = 8            # n_fft = 2 ** OUTPUT_BITS = 256
FFT_WEIGHT = 1.0           # weight of the frequency-domain loss
# TODO(synk): WINDOW is undefined in the spec (declared float64); a float32
# periodic Hann window of length T is used -- TPU/Pallas has no float64.

_LANES = 128
_SUBLANES = 8
_EPS = 1e-8
_INV_LN10 = 1.0 / math.log(10.0)


def _round_up(x, m):
    return ((x + m - 1) // m) * m


def hann_window(t, dtype=jnp.float32):
    n = jnp.arange(t, dtype=dtype)
    return 0.5 - 0.5 * jnp.cos(2.0 * jnp.pi * n / t)


def _combined_kernel(pred_ref, target_ref, win_ref, cos_ref, sin_ref,
                     out_ref, corr_acc, freq_acc, *,
                     n_rows, n_freq, t_true, fft_weight):
    """One grid step processes a (row_block, T_pad) tile of pred/target."""
    step = pl.program_id(0)

    @pl.when(step == 0)
    def _init():
        corr_acc[...] = jnp.zeros_like(corr_acc)
        freq_acc[...] = jnp.zeros_like(freq_acc)

    p = pred_ref[...].astype(jnp.float32)
    t = target_ref[...].astype(jnp.float32)

    t_pad = p.shape[-1]
    lane_mask = None
    if t_pad != t_true:  # static branch: only emitted when T was padded
        lane = jax.lax.broadcasted_iota(jnp.int32, (1, t_pad), 1)
        lane_mask = (lane < t_true).astype(jnp.float32)
        p = p * lane_mask
        t = t * lane_mask

    # ---- time-domain correlation loss (per row) ----
    inv_t = jnp.float32(1.0 / t_true)
    pc = p - jnp.sum(p, axis=-1, keepdims=True) * inv_t
    tc = t - jnp.sum(t, axis=-1, keepdims=True) * inv_t
    if lane_mask is not None:
        pc = pc * lane_mask
        tc = tc * lane_mask
    num = jnp.sum(pc * tc, axis=-1, keepdims=True)
    den = jnp.sqrt(jnp.sum(pc * pc, axis=-1, keepdims=True)
                   * jnp.sum(tc * tc, axis=-1, keepdims=True)) + jnp.float32(_EPS)
    corr_acc[...] += num / den                        # (row_block, 1)

    # ---- frequency-domain log-magnitude MSE (real DFT via MXU matmuls) ----
    if fft_weight != 0.0:  # static: matches the `if FFT_WEIGHT == 0` branch
        w = win_ref[...].astype(jnp.float32)          # (1, T_pad)
        wp = p * w
        wt = t * w
        cos_m = cos_ref[...]                          # (T_pad, F_pad)
        sin_m = sin_ref[...]
        dot = functools.partial(jnp.dot,
                                precision=jax.lax.Precision.HIGHEST,
                                preferred_element_type=jnp.float32)
        p_re = dot(wp, cos_m)
        p_im = dot(wp, sin_m)
        t_re = dot(wt, cos_m)
        t_im = dot(wt, sin_m)
        p_mag = jnp.sqrt(p_re * p_re + p_im * p_im)
        t_mag = jnp.sqrt(t_re * t_re + t_im * t_im)
        ln10_inv = jnp.float32(_INV_LN10)
        p_log = jnp.log(jnp.maximum(p_mag, jnp.float32(_EPS))) * ln10_inv
        t_log = jnp.log(jnp.maximum(t_mag, jnp.float32(_EPS))) * ln10_inv
        d = p_log - t_log                             # padded bins/rows -> 0
        freq_acc[...] += d * d                        # (row_block, F_pad)

    @pl.when(step == pl.num_programs(0) - 1)
    def _finalize():
        corr_sum = jnp.sum(corr_acc[...])
        time_loss = jnp.float32(1.0) - corr_sum * jnp.float32(1.0 / n_rows)
        if fft_weight != 0.0:
            freq_loss = jnp.sum(freq_acc[...]) * jnp.float32(1.0 / (n_rows * n_freq))
            out_ref[0, 0] = time_loss + jnp.float32(fft_weight) * freq_loss
        else:
            out_ref[0, 0] = time_loss


def combined_time_freq_loss(pred, target, window=None, *,
                            fft_weight=FFT_WEIGHT, n_fft=2 ** OUTPUT_BITS):
    """time_loss + fft_weight * freq_loss, matching CombinedTimeFreqLoss.forward."""
    assert pred.shape == target.shape and pred.ndim == 3
    B, C, T = pred.shape
    assert T <= n_fft, "rfft(n=n_fft) with T > n_fft (truncation) is not supported"
    R = B * C
    if window is None:
        window = hann_window(T)

    # Tiling: last dim -> lanes (pad to 128), rows -> sublanes / grid axis.
    T_pad = _round_up(T, _LANES)
    row_block = min(_round_up(R, _SUBLANES), 512)     # <= ~0.5 MiB/input/buffer
    R_pad = _round_up(R, row_block)
    num_tiles = R_pad // row_block

    p2 = pred.reshape(R, T)
    t2 = target.reshape(R, T)
    if R_pad != R or T_pad != T:
        # Zero padding is loss-neutral: padded rows give corr = 0/(0+eps) = 0
        # and identical clamped log-magnitudes; padded lanes are masked in the
        # kernel.  True counts (R, T, F) are baked in as constants.
        p2 = jnp.pad(p2, ((0, R_pad - R), (0, T_pad - T)))
        t2 = jnp.pad(t2, ((0, R_pad - R), (0, T_pad - T)))

    win = jnp.zeros((1, T_pad), jnp.float32).at[0, :T].set(
        window.astype(jnp.float32))

    # Real-DFT matrices: X[k] = sum_t x[t] * exp(-2*pi*i*t*k / n_fft), k < n_fft//2+1.
    F_true = n_fft // 2 + 1
    F_pad = _round_up(F_true, _LANES)
    t_idx = jnp.arange(T, dtype=jnp.int32) % n_fft
    k_idx = jnp.arange(F_pad, dtype=jnp.int32) % n_fft
    tk = (t_idx[:, None] * k_idx[None, :]) % n_fft    # exact range reduction
    ang = (2.0 * jnp.pi / n_fft) * tk.astype(jnp.float32)
    col_mask = (jnp.arange(F_pad) < F_true).astype(jnp.float32)[None, :]
    cos_m = jnp.cos(ang) * col_mask
    sin_m = (-jnp.sin(ang)) * col_mask
    if T_pad != T:
        cos_m = jnp.pad(cos_m, ((0, T_pad - T), (0, 0)))
        sin_m = jnp.pad(sin_m, ((0, T_pad - T), (0, 0)))

    kernel = functools.partial(
        _combined_kernel, n_rows=R, n_freq=F_true, t_true=T,
        fft_weight=float(fft_weight))

    out = pl.pallas_call(
        kernel,
        out_shape=jax.ShapeDtypeStruct((1, 1), jnp.float32),
        grid_spec=pltpu.PrefetchScalarGridSpec(
            num_scalar_prefetch=0,
            grid=(num_tiles,),
            in_specs=[
                pl.BlockSpec((row_block, T_pad), lambda i: (i, 0)),   # pred
                pl.BlockSpec((row_block, T_pad), lambda i: (i, 0)),   # target
                pl.BlockSpec((1, T_pad), lambda i: (0, 0)),           # window
                pl.BlockSpec((T_pad, F_pad), lambda i: (0, 0)),       # cos DFT
                pl.BlockSpec((T_pad, F_pad), lambda i: (0, 0)),       # -sin DFT
            ],
            out_specs=pl.BlockSpec((1, 1), lambda i: (0, 0),
                                   memory_space=pltpu.SMEM),
            scratch_shapes=[
                pltpu.VMEM((row_block, 1), jnp.float32),       # corr accumulator
                pltpu.VMEM((row_block, F_pad), jnp.float32),   # freq accumulator
            ],
        ),
        compiler_params=pltpu.CompilerParams(
            dimension_semantics=("arbitrary",)),
    )(p2, t2, win, cos_m, sin_m)

    return out[0, 0]


def _reference_loss(pred, target, window, *, fft_weight=FFT_WEIGHT,
                    n_fft=2 ** OUTPUT_BITS, eps=_EPS):
    """Pure-JAX reference mirroring the PyTorch module (in f32)."""
    B, C, T = pred.shape
    pf = pred.reshape(B * C, T).astype(jnp.float32)
    tf = target.reshape(B * C, T).astype(jnp.float32)
    pc = pf - pf.mean(axis=-1, keepdims=True)
    tc = tf - tf.mean(axis=-1, keepdims=True)
    num = (pc * tc).sum(-1)
    den = jnp.sqrt((pc * pc).sum(-1) * (tc * tc).sum(-1)) + eps
    time_loss = 1.0 - (num / den).mean()
    if fft_weight == 0:
        return time_loss
    w = window.astype(jnp.float32)
    p_fft = jnp.fft.rfft(pf * w, n=n_fft, axis=-1)
    t_fft = jnp.fft.rfft(tf * w, n=n_fft, axis=-1)
    p_log = jnp.log10(jnp.maximum(jnp.abs(p_fft), eps))
    t_log = jnp.log10(jnp.maximum(jnp.abs(t_fft), eps))
    freq_loss = jnp.mean((p_log - t_log) ** 2)
    return time_loss + fft_weight * freq_loss


if __name__ == "__main__":
    key = jax.random.PRNGKey(0)
    k1, k2 = jax.random.split(key)
    B, C, T = 2, 4, 256            # (batch, channels, time); T == n_fft here
    pred = jax.random.uniform(k1, (B, C, T), dtype=jnp.float32) * 2.0 - 1.0
    target = jax.random.uniform(k2, (B, C, T), dtype=jnp.float32) * 2.0 - 1.0
    window = hann_window(T)

    loss = combined_time_freq_loss(pred, target, window)
    jax.block_until_ready(loss)

    ref = _reference_loss(pred, target, window)
    assert bool(jnp.isfinite(loss)), loss
    assert jnp.allclose(loss, ref, rtol=1e-2, atol=1e-2), (loss, ref)

    print("KERNEL_OK")
</pallas_src>

<mosaic_0001>
module attributes {stable_mosaic.version = 11 : i64} {
  func.func @_combined_kernel(%arg0: i32, %arg1: memref<8x256xf32, #tpu.memory_space<vmem>>, %arg2: memref<8x256xf32, #tpu.memory_space<vmem>>, %arg3: memref<1x256xf32, #tpu.memory_space<vmem>>, %arg4: memref<256x256xf32, #tpu.memory_space<vmem>>, %arg5: memref<256x256xf32, #tpu.memory_space<vmem>>, %arg6: memref<1x1xf32, #tpu.memory_space<smem>>, %arg7: memref<8x1xf32, #tpu.memory_space<vmem>>, %arg8: memref<8x256xf32, #tpu.memory_space<vmem>>) attributes {dimension_semantics = [#tpu.dimension_semantics<arbitrary>], iteration_bounds = array<i64: 1>, scalar_prefetch = 0 : i64, scratch_operands = 2 : i64, tpu.core_type = #tpu.core_type<tc>, window_params = [{transform_indices = @transform_0, window_bounds = array<i64: 8, 256>}, {transform_indices = @transform_1, window_bounds = array<i64: 8, 256>}, {pipeline_mode = #tpu.pipeline_mode<synchronous>, transform_indices = @transform_2, window_bounds = array<i64: 1, 256>}, {pipeline_mode = #tpu.pipeline_mode<synchronous>, transform_indices = @transform_3, window_bounds = array<i64: 256, 256>}, {pipeline_mode = #tpu.pipeline_mode<synchronous>, transform_indices = @transform_4, window_bounds = array<i64: 256, 256>}, {transform_indices = @transform_5, window_bounds = array<i64: 1, 1>}]} {
    %c0_i32 = arith.constant 0 : i32
    %0 = arith.cmpi eq, %arg0, %c0_i32 : i32
    %1 = arith.extui %0 : i1 to i32
    %c0_i32_0 = arith.constant 0 : i32
    %2 = arith.cmpi ne, %1, %c0_i32_0 : i32
    scf.if %2 {
      %cst_35 = arith.constant 0.000000e+00 : f32
      %71 = vector.broadcast %cst_35 : f32 to vector<8x1xf32>
      %c0_36 = arith.constant 0 : index
      %c0_37 = arith.constant 0 : index
      %72 = vector.load %arg7[%c0_36, %c0_37] : memref<8x1xf32, #tpu.memory_space<vmem>>, vector<8x1xf32>
      tpu.vector_store %arg7[%c0_36, %c0_37], %71 {strides = array<i32>} : memref<8x1xf32, #tpu.memory_space<vmem>>, vector<8x1xf32>,
      %cst_38 = arith.constant 0.000000e+00 : f32
      %73 = vector.broadcast %cst_38 : f32 to vector<8x256xf32>
      %c0_39 = arith.constant 0 : index
      %c0_40 = arith.constant 0 : index
      %74 = vector.load %arg8[%c0_39, %c0_40] : memref<8x256xf32, #tpu.memory_space<vmem>>, vector<8x256xf32>
      tpu.vector_store %arg8[%c0_39, %c0_40], %73 {strides = array<i32>} : memref<8x256xf32, #tpu.memory_space<vmem>>, vector<8x256xf32>,
    } else {
    }
    %c0 = arith.constant 0 : index
    %c0_1 = arith.constant 0 : index
    %3 = vector.load %arg1[%c0, %c0_1] : memref<8x256xf32, #tpu.memory_space<vmem>>, vector<8x256xf32>
    %c0_2 = arith.constant 0 : index
    %c0_3 = arith.constant 0 : index
    %4 = vector.load %arg2[%c0_2, %c0_3] : memref<8x256xf32, #tpu.memory_space<vmem>>, vector<8x256xf32>
    %cst = arith.constant dense<0.000000e+00> : vector<8xf32>
    %5 = vector.multi_reduction <add>, %3, %cst [1] : vector<8x256xf32> to vector<8xf32>
    %6 = vector.shape_cast %5 : vector<8xf32> to vector<8x1xf32>
    %cst_4 = arith.constant 3.906250e-03 : f32
    %7 = vector.broadcast %cst_4 : f32 to vector<8x1xf32>
    %8 = arith.mulf %6, %7 : vector<8x1xf32>
    %9 = vector.broadcast %8 : vector<8x1xf32> to vector<8x256xf32>
    %10 = arith.subf %3, %9 : vector<8x256xf32>
    %cst_5 = arith.constant dense<0.000000e+00> : vector<8xf32>
    %11 = vector.multi_reduction <add>, %4, %cst_5 [1] : vector<8x256xf32> to vector<8xf32>
    %12 = vector.shape_cast %11 : vector<8xf32> to vector<8x1xf32>
    %cst_6 = arith.constant 3.906250e-03 : f32
    %13 = vector.broadcast %cst_6 : f32 to vector<8x1xf32>
    %14 = arith.mulf %12, %13 : vector<8x1xf32>
    %15 = vector.broadcast %14 : vector<8x1xf32> to vector<8x256xf32>
    %16 = arith.subf %4, %15 : vector<8x256xf32>
    %17 = arith.mulf %10, %16 : vector<8x256xf32>
    %cst_7 = arith.constant dense<0.000000e+00> : vector<8xf32>
    %18 = vector.multi_reduction <add>, %17, %cst_7 [1] : vector<8x256xf32> to vector<8xf32>
    %19 = vector.shape_cast %18 : vector<8xf32> to vector<8x1xf32>
    %20 = arith.mulf %10, %10 : vector<8x256xf32>
    %cst_8 = arith.constant dense<0.000000e+00> : vector<8xf32>
    %21 = vector.multi_reduction <add>, %20, %cst_8 [1] : vector<8x256xf32> to vector<8xf32>
    %22 = vector.shape_cast %21 : vector<8xf32> to vector<8x1xf32>
    %23 = arith.mulf %16, %16 : vector<8x256xf32>
    %cst_9 = arith.constant dense<0.000000e+00> : vector<8xf32>
    %24 = vector.multi_reduction <add>, %23, %cst_9 [1] : vector<8x256xf32> to vector<8xf32>
    %25 = vector.shape_cast %24 : vector<8xf32> to vector<8x1xf32>
    %26 = arith.mulf %22, %25 : vector<8x1xf32>
    %27 = math.sqrt %26 : vector<8x1xf32>
    %cst_10 = arith.constant 9.99999993E-9 : f32
    %28 = vector.broadcast %cst_10 : f32 to vector<8x1xf32>
    %29 = arith.addf %27, %28 : vector<8x1xf32>
    %c0_11 = arith.constant 0 : index
    %c0_12 = arith.constant 0 : index
    %30 = vector.load %arg7[%c0_11, %c0_12] : memref<8x1xf32, #tpu.memory_space<vmem>>, vector<8x1xf32>
    %31 = arith.divf %19, %29 : vector<8x1xf32>
    %32 = arith.addf %30, %31 : vector<8x1xf32>
    %c0_13 = arith.constant 0 : index
    %c0_14 = arith.constant 0 : index
    %33 = vector.load %arg7[%c0_13, %c0_14] : memref<8x1xf32, #tpu.memory_space<vmem>>, vector<8x1xf32>
    tpu.vector_store %arg7[%c0_13, %c0_14], %32 {strides = array<i32>} : memref<8x1xf32, #tpu.memory_space<vmem>>, vector<8x1xf32>,
    %c0_15 = arith.constant 0 : index
    %c0_16 = arith.constant 0 : index
    %34 = vector.load %arg3[%c0_15, %c0_16] : memref<1x256xf32, #tpu.memory_space<vmem>>, vector<1x256xf32>
    %35 = vector.broadcast %34 : vector<1x256xf32> to vector<8x256xf32>
    %36 = arith.mulf %3, %35 : vector<8x256xf32>
    %37 = vector.broadcast %34 : vector<1x256xf32> to vector<8x256xf32>
    %38 = arith.mulf %4, %37 : vector<8x256xf32>
    %c0_17 = arith.constant 0 : index
    %c0_18 = arith.constant 0 : index
    %39 = vector.load %arg4[%c0_17, %c0_18] : memref<256x256xf32, #tpu.memory_space<vmem>>, vector<256x256xf32>
    %c0_19 = arith.constant 0 : index
    %c0_20 = arith.constant 0 : index
    %40 = vector.load %arg5[%c0_19, %c0_20] : memref<256x256xf32, #tpu.memory_space<vmem>>, vector<256x256xf32>
    %cst_21 = arith.constant dense<0.000000e+00> : vector<8x256xf32>
    %41 = tpu.matmul %36, %39, %cst_21 {dimension_numbers = #tpu.dot_dimension_numbers<[1], [0], [0], [1], [0, 0, 1, 1], [], []>, precision = #tpu.contract_precision<fp32>} : vector<8x256xf32>, vector<256x256xf32>, vector<8x256xf32> -> vector<8x256xf32>
    %cst_22 = arith.constant dense<0.000000e+00> : vector<8x256xf32>
    %42 = tpu.matmul %36, %40, %cst_22 {dimension_numbers = #tpu.dot_dimension_numbers<[1], [0], [0], [1], [0, 0, 1, 1], [], []>, precision = #tpu.contract_precision<fp32>} : vector<8x256xf32>, vector<256x256xf32>, vector<8x256xf32> -> vector<8x256xf32>
    %cst_23 = arith.constant dense<0.000000e+00> : vector<8x256xf32>
    %43 = tpu.matmul %38, %39, %cst_23 {dimension_numbers = #tpu.dot_dimension_numbers<[1], [0], [0], [1], [0, 0, 1, 1], [], []>, precision = #tpu.contract_precision<fp32>} : vector<8x256xf32>, vector<256x256xf32>, vector<8x256xf32> -> vector<8x256xf32>
    %cst_24 = arith.constant dense<0.000000e+00> : vector<8x256xf32>
    %44 = tpu.matmul %38, %40, %cst_24 {dimension_numbers = #tpu.dot_dimension_numbers<[1], [0], [0], [1], [0, 0, 1, 1], [], []>, precision = #tpu.contract_precision<fp32>} : vector<8x256xf32>, vector<256x256xf32>, vector<8x256xf32> -> vector<8x256xf32>
    %45 = arith.mulf %41, %41 : vector<8x256xf32>
    %46 = arith.mulf %42, %42 : vector<8x256xf32>
    %47 = arith.addf %45, %46 : vector<8x256xf32>
    %48 = math.sqrt %47 : vector<8x256xf32>
    %49 = arith.mulf %43, %43 : vector<8x256xf32>
    %50 = arith.mulf %44, %44 : vector<8x256xf32>
    %51 = arith.addf %49, %50 : vector<8x256xf32>
    %52 = math.sqrt %51 : vector<8x256xf32>
    %cst_25 = arith.constant 9.99999993E-9 : f32
    %53 = vector.broadcast %cst_25 : f32 to vector<8x256xf32>
    %54 = arith.maximumf %48, %53 : vector<8x256xf32>
    %55 = math.log %54 : vector<8x256xf32>
    %cst_26 = arith.constant 0.434294492 : f32
    %56 = vector.broadcast %cst_26 : f32 to vector<8x256xf32>
    %57 = arith.mulf %55, %56 : vector<8x256xf32>
    %cst_27 = arith.constant 9.99999993E-9 : f32
    %58 = vector.broadcast %cst_27 : f32 to vector<8x256xf32>
    %59 = arith.maximumf %52, %58 : vector<8x256xf32>
    %60 = math.log %59 : vector<8x256xf32>
    %cst_28 = arith.constant 0.434294492 : f32
    %61 = vector.broadcast %cst_28 : f32 to vector<8x256xf32>
    %62 = arith.mulf %60, %61 : vector<8x256xf32>
    %63 = arith.subf %57, %62 : vector<8x256xf32>
    %c0_29 = arith.constant 0 : index
    %c0_30 = arith.constant 0 : index
    %64 = vector.load %arg8[%c0_29, %c0_30] : memref<8x256xf32, #tpu.memory_space<vmem>>, vector<8x256xf32>
    %65 = arith.mulf %63, %63 : vector<8x256xf32>
    %66 = arith.addf %64, %65 : vector<8x256xf32>
    %c0_31 = arith.constant 0 : index
    %c0_32 = arith.constant 0 : index
    %67 = vector.load %arg8[%c0_31, %c0_32] : memref<8x256xf32, #tpu.memory_space<vmem>>, vector<8x256xf32>
    tpu.vector_store %arg8[%c0_31, %c0_32], %66 {strides = array<i32>} : memref<8x256xf32, #tpu.memory_space<vmem>>, vector<8x256xf32>,
    %c0_i32_33 = arith.constant 0 : i32
    %68 = arith.cmpi eq, %arg0, %c0_i32_33 : i32
    %69 = arith.extui %68 : i1 to i32
    %c0_i32_34 = arith.constant 0 : i32
    %70 = arith.cmpi ne, %69, %c0_i32_34 : i32
    scf.if %70 {
      %c0_35 = arith.constant 0 : index
      %c0_36 = arith.constant 0 : index
      %71 = vector.load %arg7[%c0_35, %c0_36] : memref<8x1xf32, #tpu.memory_space<vmem>>, vector<8x1xf32>
      %72 = vector.shape_cast %71 : vector<8x1xf32> to vector<1x8x1xf32>
      %cst_37 = arith.constant dense<0.000000e+00> : vector<1xf32>
      %73 = vector.multi_reduction <add>, %72, %cst_37 [1, 2] : vector<1x8x1xf32> to vector<1xf32>
      %74 = vector.shape_cast %73 : vector<1xf32> to vector<1x1x1xf32>
      %75 = vector.extract %74[0, 0, 0] : f32 from vector<1x1x1xf32>
      %cst_38 = arith.constant 1.250000e-01 : f32
      %76 = arith.mulf %75, %cst_38 : f32
      %cst_39 = arith.constant 1.000000e+00 : f32
      %77 = arith.subf %cst_39, %76 : f32
      %c0_40 = arith.constant 0 : index
      %c0_41 = arith.constant 0 : index
      %78 = vector.load %arg8[%c0_40, %c0_41] : memref<8x256xf32, #tpu.memory_space<vmem>>, vector<8x256xf32>
      %79 = vector.shape_cast %78 : vector<8x256xf32> to vector<1x8x256xf32>
      %cst_42 = arith.constant dense<0.000000e+00> : vector<1xf32>
      %80 = vector.multi_reduction <add>, %79, %cst_42 [1, 2] : vector<1x8x256xf32> to vector<1xf32>
      %81 = vector.shape_cast %80 : vector<1xf32> to vector<1x1x1xf32>
      %82 = vector.extract %81[0, 0, 0] : f32 from vector<1x1x1xf32>
      %cst_43 = arith.constant 9.68992244E-4 : f32
      %83 = arith.mulf %82, %cst_43 : f32
      %cst_44 = arith.constant 1.000000e+00 : f32
      %84 = arith.mulf %cst_44, %83 : f32
      %85 = arith.addf %77, %84 : f32
      %c0_45 = arith.constant 0 : index
      %c0_46 = arith.constant 0 : index
      %86 = memref.load %arg6[%c0_45, %c0_46] : memref<1x1xf32, #tpu.memory_space<smem>>
      memref.store %85, %arg6[%c0_45, %c0_46] : memref<1x1xf32, #tpu.memory_space<smem>>
    } else {
    }
    return
  }
  func.func @transform_0(%arg0: i32) -> (i32, i32) {
    %c0_i32 = arith.constant 0 : i32
    %c0_i32_0 = arith.constant 0 : i32
    return %arg0, %c0_i32 : i32, i32
  }
  func.func @transform_1(%arg0: i32) -> (i32, i32) {
    %c0_i32 = arith.constant 0 : i32
    %c0_i32_0 = arith.constant 0 : i32
    return %arg0, %c0_i32 : i32, i32
  }
  func.func @transform_2(%arg0: i32) -> (i32, i32) {
    %c0_i32 = arith.constant 0 : i32
    %c0_i32_0 = arith.constant 0 : i32
    %c0_i32_1 = arith.constant 0 : i32
    return %c0_i32, %c0_i32_0 : i32, i32
  }
  func.func @transform_3(%arg0: i32) -> (i32, i32) {
    %c0_i32 = arith.constant 0 : i32
    %c0_i32_0 = arith.constant 0 : i32
    %c0_i32_1 = arith.constant 0 : i32
    return %c0_i32, %c0_i32_0 : i32, i32
  }
  func.func @transform_4(%arg0: i32) -> (i32, i32) {
    %c0_i32 = arith.constant 0 : i32
    %c0_i32_0 = arith.constant 0 : i32
    %c0_i32_1 = arith.constant 0 : i32
    return %c0_i32, %c0_i32_0 : i32, i32
  }
  func.func @transform_5(%arg0: i32) -> (i32, i32) {
    %c0_i32 = arith.constant 0 : i32
    %c0_i32_0 = arith.constant 0 : i32
    %c0_i32_1 = arith.constant 0 : i32
    return %c0_i32, %c0_i32_0 : i32, i32
  }
}

</mosaic_0001>

<bundles_post_ra>
// kernel: tpu_custom_call.1
= control target key start
LH: loop header
LB: loop body
LE: loop exit
PB: predicated region body
PF: predicated region fallthrough
CT: control target
= control target key end

     0   :  { %10 = vsyncpa [#allocation5], 0  ;;  %s9131_s0 = inlined_call_operand.hbm [shape: f32[8,256], index: 0, kind: input, shape index: {}]   ;;  %s9132_s1 = inlined_call_operand.hbm [shape: f32[8,256], index: 1, kind: input, shape index: {}]   ;;  %s9133_s2 = inlined_call_operand.vmem [shape: f32[1,256], index: 2, kind: input, shape index: {}]   ;;  %s9134_s3 = inlined_call_operand.hbm [shape: f32[256,256], index: 3, kind: input, shape index: {}]   ;;  %s9135_s4 = inlined_call_operand.hbm [shape: f32[256,256], index: 4, kind: input, shape index: {}]   ;;  %s9136_s5 = inlined_call_operand.hbm [shape: f32[1,1], index: 5, kind: output, shape index: {}]  }
   0x1   :  { %11 = vsyncpa [#allocation8], 0 }
   0x2   :  { %12 = vsyncpa [#allocation11], 0 }
   0x3   :  { %13 = vsyncpa [#allocation6], 0  ;;  %s5652_s18 = smov [#allocation7]   ;;  %s5653_s20 = smov [#allocation4]  }
   0x4   :  { %s30_s19 = sshll.u32 %s5652_s18, 4  ;;  %s20_s21 = sshll.u32 %s5653_s20, 4  ;;  %s31_s19 = int_to_ptr.vmem [resolvable:$true] %s30_s19  ;;  %s21_s21 = int_to_ptr.vmem [resolvable:$true] %s20_s21 }
   0x5   :  { %s5564_s22 = scalar_lea.vmem %s31_s19, 256  ;;  %p5569_p1 = scmp.lt.s32.totalorder %s31_s19, %s31_s19 }
   0x6   :  { %p5565_p0 = scmp.ne.s32.totalorder %s31_s19, %s5564_s22  ;;  %p5570_p2 = scmp.lt.s32.totalorder %s5564_s22, %s5564_s22 }
   0x8   :  { %p5571_p3 = por %p5570_p2, %p5569_p1 }
   0xa   :  { %p5572_p4 = pnand %p5571_p3, %p5565_p0 }
   0xc   :  { %5575 = shalt.err (!%p5572_p4)
}
   0xd   :  { %33 = dma.hbm_to_vmem [thread:$0]  %s9132_s1, 256, %s31_s19, [#allocation8]  }
   0xe   :  { %s5584_s25 = scalar_lea.vmem %s21_s21, 256  ;;  %p5589_p6 = scmp.lt.s32.totalorder %s21_s21, %s21_s21 }
   0xf   :  { %p5585_p5 = scmp.ne.s32.totalorder %s21_s21, %s5584_s25  ;;  %p5590_p7 = scmp.lt.s32.totalorder %s5584_s25, %s5584_s25 }
  0x11   :  { %p5591_p8 = por %p5590_p7, %p5589_p6 }
  0x13   :  { %p5592_p9 = pnand %p5591_p8, %p5585_p5 }
  0x15   :  { %5595 = shalt.err (!%p5592_p9)
}
  0x16   :  { %23 = dma.hbm_to_vmem [thread:$0]  %s9131_s0, 256, %s21_s21, [#allocation5]  }
  0x17   :  { %s5654_s28 = smov [#allocation9]  }
  0x18   :  { %s41_s29 = sshll.u32 %s5654_s28, 4  ;;  %s42_s29 = int_to_ptr.vmem [resolvable:$true] %s41_s29 }
  0x19   :  { %s5604_s30 = scalar_lea.vmem %s42_s29, 8192  ;;  %p5609_p11 = scmp.lt.s32.totalorder %s42_s29, %s42_s29 }
  0x1a   :  { %p5605_p10 = scmp.ne.s32.totalorder %s42_s29, %s5604_s30  ;;  %p5610_p12 = scmp.lt.s32.totalorder %s5604_s30, %s5604_s30 }
  0x1c   :  { %p5611_p13 = por %p5610_p12, %p5609_p11 }
  0x1e   :  { %p5612_p0 = pnand %p5611_p13, %p5605_p10 }
  0x20   :  { %5615 = shalt.err (!%p5612_p0)
}
  0x21   :  { %s5655_s1 = smov 256   ;;  %s5656_s6 = smov 16  }
  0x22   :  { %47 = dma.hbm_to_vmem [thread:$0]  %s9134_s3, 8192, %s42_s29, [#allocation8], %s5655_s1, %s5655_s1, %s5656_s6  }
  0x23   :  { %s5657_s9 = smov [#allocation10]  }
  0x24   :  { %s53_s10 = sshll.u32 %s5657_s9, 4  ;;  %s54_s10 = int_to_ptr.vmem [resolvable:$true] %s53_s10 }
  0x25   :  { %s5624_s0 = scalar_lea.vmem %s54_s10, 8192  ;;  %p5629_p2 = scmp.lt.s32.totalorder %s54_s10, %s54_s10 }
  0x26   :  { %p5625_p1 = scmp.ne.s32.totalorder %s54_s10, %s5624_s0  ;;  %p5630_p3 = scmp.lt.s32.totalorder %s5624_s0, %s5624_s0 }
  0x28   :  { %p5631_p4 = por %p5630_p3, %p5629_p2 }
  0x2a   :  { %p5632_p5 = pnand %p5631_p4, %p5625_p1 }
  0x2c   :  { %5635 = shalt.err (!%p5632_p5)
}
  0x2d   :  { %59 = dma.hbm_to_vmem [thread:$0]  %s9135_s4, 8192, %s54_s10, [#allocation11], %s5655_s1, %s5655_s1, %s5656_s6  }
  0x2e   :  { %5644 = dma.done.wait [#allocation5], 256  }
  0x2f   :  { %5645 = vsyncadd [#allocation5], 4294967040 }
  0x30   :  { %5646 = dma.done.wait [#allocation8], 8448  }
  0x31   :  { %5647 = vsyncadd [#allocation8], 4294958848 }
  0x32   :  { %5648 = dma.done.wait [#allocation11], 8192  }
  0x33   :  { %5649 = vsyncadd [#allocation11], 4294959104  ;;  %v128_v0 = vlaneseq  ;;  %v173_v2 = vld [vmem:[#allocation9 + $0xf8] sm:$0xff]  ;;  %v172_v3 = vld [vmem:[#allocation9 + $0xf0] sm:$0xff]  ;;  %vm76_vm0 = vcmask 7168   ;;  %s5659_s18 = smov [#allocation12]  }
  0x34   :  { %v171_v4 = vld [vmem:[#allocation9 + $0xe8] sm:$0xff]  ;;  %v5706_v7 = vand.u32 4294901760, %v173_v2  ;;  %v5708_v8 = vand.u32 4294901760, %v172_v3  ;;  %v170_v10 = vld [vmem:[#allocation9 + $0xe0] sm:$0xff]  ;;  %v169_v11 = vld [vmem:[#allocation9 + $0xd8] sm:$0xff] }
  0x35   :  { %v5702_v1 = vshrl.u32 %v128_v0, 7  ;;  %v5710_v9 = vand.u32 4294901760, %v171_v4  ;;  %v168_v12 = vld [vmem:[#allocation9 + $0xd0] sm:$0xff]  ;;  %v5712_v13 = vand.u32 4294901760, %v170_v10  ;;  %v5714_v14 = vand.u32 4294901760, %v169_v11  ;;  %v167_v16 = vld [vmem:[#allocation9 + $0xc8] sm:$0xff] }
  0x36   :  { %10083 = vst [vmem:[#allocation17_spill] sm:$0xff] %v5706_v7  ;;  %10084 = vst [vmem:[#allocation18_spill] sm:$0xff] %v5708_v8  ;;  %v5716_v15 = vand.u32 4294901760, %v168_v12  ;;  %v166_v17 = vld [vmem:[#allocation9 + $0xc0] sm:$0xff]  ;;  %v165_v18 = vld [vmem:[#allocation9 + $0xb8] sm:$0xff]  ;;  %271 = vmatprep.subr.mxu0 %v5706_v7  ;;  %v5719_v19 = vand.u32 4294901760, %v167_v16  ;;  %v5726_v22 = vsub.f32 %v173_v2, %v5706_v7  ;;  %v5739_v27 = vsub.f32 %v172_v3, %v5708_v8 }
  0x37   :  { %10085 = vst [vmem:[#allocation19_spill] sm:$0xff] %v5710_v9  ;;  %10086 = vst [vmem:[#allocation20_spill] sm:$0xff] %v5712_v13  ;;  %v5721_v20 = vand.u32 4294901760, %v166_v17  ;;  %v5723_v21 = vand.u32 4294901760, %v165_v18  ;;  %v5728_v23 = vld [vmem:[#allocation9 + $0xb0] sm:$0xff]  ;;  %v5730_v24 = vld [vmem:[#allocation9 + $0xa8] sm:$0xff]  ;;  %273 = vmatpush1.msra.mxu0 %v5708_v8  ;;  %v5745_v29 = vsub.f32 %v171_v4, %v5710_v9  ;;  %v5761_v35 = vsub.f32 %v170_v10, %v5712_v13 }
  0x38   :  { %10087 = vst [vmem:[#allocation21_spill] sm:$0xff] %v5714_v14  ;;  %10088 = vst [vmem:[#allocation22_spill] sm:$0xff] %v5716_v15  ;;  %v5732_v25 = vld [vmem:[#allocation9 + $0xa0] sm:$0xff]  ;;  %v5736_v26 = vand.u32 4294901760, %v5728_v23  ;;  %v5742_v28 = vand.u32 4294901760, %v5730_v24  ;;  %v5747_v30 = vld [vmem:[#allocation9 + $0x98] sm:$0xff]  ;;  %275 = vmatprep.subr.mxu0 %v5710_v9  ;;  %v5774_v39 = vsub.f32 %v169_v11, %v5714_v14  ;;  %v5788_v44 = vsub.f32 %v168_v12, %v5716_v15 }
  0x39   :  { %10089 = vst [vmem:[#allocation23_spill] sm:$0xff] %v5719_v19  ;;  %10090 = vst [vmem:[#allocation24_spill] sm:$0xff] %v5721_v20  ;;  %v5749_v31 = vld [vmem:[#allocation9 + $0x90] sm:$0xff]  ;;  %v5751_v32 = vld [vmem:[#allocation9 + $0x88] sm:$0xff]  ;;  %v5755_v33 = vand.u32 4294901760, %v5726_v22  ;;  %v5758_v34 = vand.u32 4294901760, %v5732_v25  ;;  %277 = vmatpush1.msra.mxu0 %v5712_v13  ;;  %v5802_v49 = vsub.f32 %v167_v16, %v5719_v19  ;;  %v5838_v63 = vsub.f32 %v166_v17, %v5721_v20 }
  0x3a   :  { %10091 = vst [vmem:[#allocation25_spill] sm:$0xff] %v5723_v21  ;;  %10092 = vst [vmem:[#allocation26_spill] sm:$0xff] %v5726_v22  ;;  %v5764_v36 = vand.u32 4294901760, %v5747_v30  ;;  %v5768_v37 = vand.u32 4294901760, %v5739_v27  ;;  %v5771_v38 = vand.u32 4294901760, %v5745_v29  ;;  %v5777_v40 = vand.u32 4294901760, %v5749_v31  ;;  %279 = vmatprep.subr.mxu0 %v5714_v14 }
  0x3b   :  { %10093 = vst [vmem:[#allocation27_spill] sm:$0xff] %v5736_v26  ;;  %10094 = vst [vmem:[#allocation28_spill] sm:$0xff] %v5739_v27  ;;  %v5779_v41 = vld [vmem:[#allocation9 + $0x80] sm:$0xff]  ;;  %v418_v42 = vsub.f32 %v5726_v22, %v5755_v33  ;;  %v5785_v43 = vand.u32 4294901760, %v5761_v35  ;;  %v5791_v45 = vand.u32 4294901760, %v5751_v32  ;;  %281 = vmatpush1.msra.mxu0 %v5716_v15  ;;  %v5799_v48 = vand.u32 4294901760, %v5774_v39 }
  0x3c   :  { %10095 = vst [vmem:[#allocation29_spill] sm:$0xff] %v5742_v28  ;;  %10096 = vst [vmem:[#allocation30_spill] sm:$0xff] %v5745_v29  ;;  %v424_v46 = vsub.f32 %v5739_v27, %v5768_v37  ;;  %v430_v47 = vsub.f32 %v5745_v29, %v5771_v38  ;;  %v5804_v50 = vld [vmem:[#allocation9 + $0x78] sm:$0xff]  ;;  %283 = vmatprep.subr.mxu0 %v5719_v19  ;;  %v5812_v53 = vand.u32 4294901760, %v5788_v44  ;;  %v5815_v54 = vand.u32 4294901760, %v5779_v41  ;;  %v5817_v55 = vld [vmem:[#allocation9 + $0x70] sm:$0xff] }
  0x3d   :  { %10097 = vst [vmem:[#allocation31_spill] sm:$0xff] %v5755_v33  ;;  %10098 = vst [vmem:[#allocation32_spill] sm:$0xff] %v5758_v34  ;;  %v5807_v51 = vand.u32 4294901760, %v418_v42  ;;  %v436_v52 = vsub.f32 %v5761_v35, %v5785_v43  ;;  %285 = vmatpush1.msra.mxu0 %v5721_v20  ;;  %v442_v58 = vsub.f32 %v5774_v39, %v5799_v48  ;;  %v5827_v59 = vand.u32 4294901760, %v5802_v49  ;;  %v5829_v60 = vld [vmem:[#allocation9 + $0x68] sm:$0xff]  ;;  %v5843_v2 = vld [vmem:[#allocation9 + $0x60] sm:$0xff] }
  0x3e   :  { %10099 = vst [vmem:[#allocation33_spill] sm:$0xff] %v5761_v35  ;;  %10100 = vst [vmem:[#allocation34_spill] sm:$0xff] %v5764_v36  ;;  %v5820_v56 = vand.u32 4294901760, %v424_v46  ;;  %v5822_v57 = vand.u32 4294901760, %v430_v47  ;;  %287 = vmatprep.subr.mxu0 %v5723_v21  ;;  %v448_v62 = vsub.f32 %v5788_v44, %v5812_v53  ;;  %v5841_v0 = vand.u32 4294901760, %v5804_v50  ;;  %v5857_v12 = vld [vmem:[#allocation9 + $0x58] sm:$0xff] }
  0x3f   :  { %10101 = vst [vmem:[#allocation35_spill] sm:$0xff] %v5768_v37  ;;  %10102 = vst [vmem:[#allocation36_spill] sm:$0xff] %v5771_v38  ;;  %420 = vmatprep.subr.mxu1 %v5807_v51  ;;  %v5833_v61 = vand.u32 4294901760, %v436_v52  ;;  %289 = vmatpush1.msra.mxu0 %v5736_v26  ;;  %v5847_v3 = vand.u32 4294901760, %v442_v58  ;;  %v454_v4 = vsub.f32 %v5802_v49, %v5827_v59  ;;  %v5855_v11 = vand.u32 4294901760, %v5817_v55  ;;  %v5873_v46 = vld [vmem:[#allocation9 + $0x50] sm:$0xff] }
  0x40   :  { %10103 = vst [vmem:[#allocation37_spill] sm:$0xff] %v5774_v39  ;;  %10104 = vst [vmem:[#allocation38_spill] sm:$0xff] %v5777_v40  ;;  %426 = vmatpush1.msra.mxu1 %v5820_v56  ;;  %v5852_v10 = vsub.f32 %v165_v18, %v5723_v21  ;;  %291 = vmatprep.subr.mxu0 %v5742_v28  ;;  %v5861_v16 = vand.u32 4294901760, %v448_v62  ;;  %v5864_v17 = vand.u32 4294901760, %v5838_v63  ;;  %v5871_v18 = vand.u32 4294901760, %v5829_v60  ;;  %v5903_v5 = vld [vmem:[#allocation9 + $0x48] sm:$0xff] }
  0x41   :  { %10105 = vst [vmem:[#allocation39_spill] sm:$0xff] %v5785_v43  ;;  %10106 = vst [vmem:[#allocation40_spill] sm:$0xff] %v5788_v44  ;;  %432 = vmatprep.subr.mxu1 %v5822_v57  ;;  %v5868_v42 = vsub.f32 %v5728_v23, %v5736_v26  ;;  %293 = vmatpush1.msra.mxu0 %v5758_v34  ;;  %v5877_v47 = vand.u32 4294901760, %v454_v4  ;;  %v5884_v58 = vsub.f32 %v5730_v24, %v5742_v28  ;;  %v5989_v37 = vld [vmem:[#allocation9 + $0x20] sm:$0xff]  ;;  %v6005_v33 = vld [vmem:[#allocation9 + $0x18] sm:$0xff] }
  0x42   :  { %10107 = vst [vmem:[#allocation41_spill] sm:$0xff] %v5791_v45  ;;  %10108 = vst [vmem:[#allocation42_spill] sm:$0xff] %v5799_v48  ;;  %438 = vmatpush1.msra.mxu1 %v5833_v61  ;;  %v5880_v52 = vand.u32 4294901760, %v5852_v10  ;;  %v5887_v23 = vand.u32 4294901760, %v5843_v2  ;;  %295 = vmatprep.subr.mxu0 %v5764_v36  ;;  %v460_v62 = vsub.f32 %v5838_v63, %v5864_v17  ;;  %v5901_v24 = vand.u32 4294901760, %v5857_v12  ;;  %v5960_v48 = vld [vmem:[#allocation9 + $0x30] sm:$0xff] }
  0x43   :  { %10109 = vst [vmem:[#allocation43_spill] sm:$0xff] %v5802_v49  ;;  %10110 = vst [vmem:[#allocation44_spill] sm:$0xff] %v5807_v51  ;;  %444 = vmatprep.subr.mxu1 %v5847_v3  ;;  %v5894_v4 = vand.u32 4294901760, %v5868_v42  ;;  %v5898_v6 = vsub.f32 %v5732_v25, %v5758_v34  ;;  %297 = vmatpush1.msra.mxu0 %v5777_v40  ;;  %v5917_v25 = vand.u32 4294901760, %v5873_v46 }
  0x44   :  { %10111 = vst [vmem:[#allocation45_spill] sm:$0xff] %v5812_v53  ;;  %10112 = vst [vmem:[#allocation46_spill] sm:$0xff] %v5815_v54  ;;  %450 = vmatpush1.msra.mxu1 %v5861_v16  ;;  %299 = vmatprep.subr.mxu0 %v5791_v45  ;;  %v5973_v43 = vsub.f32 %v5779_v41, %v5815_v54 }
  0x45   :  { %10113 = vst [vmem:[#allocation47_spill] sm:$0xff] %v5820_v56  ;;  %10114 = vst [vmem:[#allocation48_spill] sm:$0xff] %v5822_v57  ;;  %v5914_v57 = vsub.f32 %v5747_v30, %v5764_v36  ;;  %456 = vmatprep.subr.mxu1 %v5877_v47  ;;  %v5921_v56 = vand.u32 4294901760, %v460_v62  ;;  %v5926_v51 = vand.u32 4294901760, %v5898_v6  ;;  %v5932_v30 = vld [vmem:[#allocation9 + $0x40] sm:$0xff]  ;;  %301 = vmatpush1.msra.mxu0 %v5815_v54 }
  0x46   :  { %10115 = vst [vmem:[#allocation49_spill] sm:$0xff] %v5827_v59  ;;  %10116 = vst [vmem:[#allocation50_spill] sm:$0xff] %v5833_v61  ;;  %v5910_v61 = vand.u32 4294901760, %v5884_v58  ;;  %v5945_v59 = vld [vmem:[#allocation9 + $0x38] sm:$0xff]  ;;  %303 = vmatprep.subr.mxu0 %v5841_v0  ;;  %v6015_v54 = vsub.f32 %v5817_v55, %v5855_v11  ;;  %v6032_v55 = vand.u32 4294901760, %v5989_v37  ;;  %v6078_v36 = vld [vmem:[#allocation9] sm:$0xff] }
  0x47   :  { %10117 = vst [vmem:[#allocation51_spill] sm:$0xff] %v5838_v63  ;;  %10118 = vst [vmem:[#allocation52_spill] sm:$0xff] %v5841_v0  ;;  %462 = vmatpush1.msra.mxu1 %v5921_v56  ;;  %305 = vmatpush1.msra.mxu0 %v5855_v11  ;;  %v5987_v38 = vand.u32 4294901760, %v5945_v59 }
  0x48   :  { %10119 = vst [vmem:[#allocation53_spill] sm:$0xff] %v5847_v3  ;;  %10120 = vst [vmem:[#allocation54_spill] sm:$0xff] %v5852_v10  ;;  %v466_v3 = vsub.f32 %v5852_v10, %v5880_v52  ;;  %v478_v62 = vsub.f32 %v5884_v58, %v5910_v61  ;;  %307 = vmatprep.subr.mxu0 %v5871_v18 }
  0x49   :  { %10121 = vst [vmem:[#allocation55_spill] sm:$0xff] %v5855_v11  ;;  %10122 = vst [vmem:[#allocation56_spill] sm:$0xff] %v5861_v16  ;;  %v472_v16 = vsub.f32 %v5868_v42, %v5894_v4  ;;  %309 = vmatpush1.msra.mxu0 %v5887_v23  ;;  %v6034_v11 = vld [vmem:[#allocation9 + $0x10] sm:$0xff] }
  0x4a   :  { %10123 = vst [vmem:[#allocation57_spill] sm:$0xff] %v5864_v17  ;;  %10124 = vst [vmem:[#allocation58_spill] sm:$0xff] %v5868_v42  ;;  %v5935_v17 = vand.u32 4294901760, %v466_v3  ;;  %v484_v3 = vsub.f32 %v5898_v6, %v5926_v51  ;;  %311 = vmatprep.subr.mxu0 %v5901_v24 }
  0x4b   :  { %10125 = vst [vmem:[#allocation59_spill] sm:$0xff] %v5871_v18  ;;  %10126 = vst [vmem:[#allocation60_spill] sm:$0xff] %v5877_v47  ;;  %v5940_v47 = vand.u32 4294901760, %v5914_v57  ;;  %313 = vmatpush1.msra.mxu0 %v5917_v25 }
  0x4c   :  { %10127 = vst [vmem:[#allocation61_spill] sm:$0xff] %v5880_v52  ;;  %10128 = vst [vmem:[#allocation62_spill] sm:$0xff] %v5884_v58  ;;  %v5930_v52 = vsub.f32 %v5749_v31, %v5777_v40  ;;  %v5949_v31 = vand.u32 4294901760, %v472_v16  ;;  %468 = vmatprep.subr.mxu1 %v5935_v17  ;;  %v6062_v40 = vsub.f32 %v5857_v12, %v5901_v24 }
  0x4d   :  { %10129 = vst [vmem:[#allocation63_spill] sm:$0xff] %v5887_v23  ;;  %10130 = vst [vmem:[#allocation64_spill] sm:$0xff] %v5894_v4  ;;  %v5943_v4 = vand.u32 4294901760, %v5903_v5  ;;  %v490_v16 = vsub.f32 %v5914_v57, %v5940_v47 }
  0x4e   :  { %10131 = vst [vmem:[#allocation65_spill] sm:$0xff] %v5898_v6  ;;  %10132 = vst [vmem:[#allocation66_spill] sm:$0xff] %v5901_v24  ;;  %v5954_v53 = vand.u32 4294901760, %v5930_v52  ;;  %474 = vmatpush1.msra.mxu1 %v5949_v31 }
  0x4f   :  { %10133 = vst [vmem:[#allocation67_spill] sm:$0xff] %v5910_v61  ;;  %10134 = vst [vmem:[#allocation68_spill] sm:$0xff] %v5914_v57  ;;  %v5958_v61 = vsub.f32 %v5751_v32, %v5791_v45  ;;  %v5975_v32 = vld [vmem:[#allocation9 + $0x28] sm:$0xff]  ;;  %v5993_v41 = vand.u32 4294901760, %v490_v16  ;;  %315 = vmatprep.subr.mxu0 %v5943_v4 }
  0x50   :  { %10135 = vst [vmem:[#allocation69_spill] sm:$0xff] %v5917_v25  ;;  %10136 = vst [vmem:[#allocation70_spill] sm:$0xff] %v5921_v56  ;;  %v5964_v56 = vand.u32 4294901760, %v478_v62  ;;  %v496_v62 = vsub.f32 %v5930_v52, %v5954_v53 }
  0x51   :  { %10137 = vst [vmem:[#allocation71_spill] sm:$0xff] %v5926_v51  ;;  %10138 = vst [vmem:[#allocation72_spill] sm:$0xff] %v5930_v52  ;;  %v5969_v51 = vand.u32 4294901760, %v5932_v30 }
  0x52   :  { %10139 = vst [vmem:[#allocation73_spill] sm:$0xff] %v5935_v17  ;;  %10140 = vst [vmem:[#allocation74_spill] sm:$0xff] %v5940_v47  ;;  %v5979_v17 = vand.u32 4294901760, %v484_v3  ;;  %v5984_v47 = vand.u32 4294901760, %v5958_v61  ;;  %480 = vmatprep.subr.mxu1 %v5964_v56  ;;  %v5996_v3 = vand.u32 4294901760, %v5973_v43 }
  0x53   :  { %10141 = vst [vmem:[#allocation75_spill] sm:$0xff] %v5943_v4  ;;  %10142 = vst [vmem:[#allocation76_spill] sm:$0xff] %v5949_v31  ;;  %v6000_v31 = vsub.f32 %v5804_v50, %v5841_v0  ;;  %v6018_v50 = vand.u32 4294901760, %v5975_v32  ;;  %v6045_v0 = vsub.f32 %v5843_v2, %v5887_v23  ;;  %317 = vmatpush1.msra.mxu0 %v5969_v51  ;;  %v6072_v23 = vand.u32 4294901760, %v6034_v11 }
  0x54   :  { %10143 = vst [vmem:[#allocation77_spill] sm:$0xff] %v5954_v53  ;;  %10144 = vst [vmem:[#allocation78_spill] sm:$0xff] %v5958_v61  ;;  %v6003_v53 = vand.u32 4294901760, %v5960_v48  ;;  %486 = vmatpush1.msra.mxu1 %v5979_v17  ;;  %v502_v16 = vsub.f32 %v5958_v61, %v5984_v47  ;;  %319 = vmatprep.subr.mxu0 %v5987_v38 }
  0x55   :  { %10145 = vst [vmem:[#allocation79_spill] sm:$0xff] %v5964_v56  ;;  %10146 = vst [vmem:[#allocation80_spill] sm:$0xff] %v5969_v51  ;;  %v6009_v56 = vand.u32 4294901760, %v496_v62  ;;  %492 = vmatprep.subr.mxu1 %v5993_v41  ;;  %v6025_v62 = vand.u32 4294901760, %v6000_v31 }
  0x56   :  { %10147 = vst [vmem:[#allocation81_spill] sm:$0xff] %v5973_v43  ;;  %10148 = vst [vmem:[#allocation82_spill] sm:$0xff] %v5979_v17  ;;  %v508_v17 = vsub.f32 %v5973_v43, %v5996_v3  ;;  %321 = vmatpush1.msra.mxu0 %v6003_v53 }
  0x57   :  { %10149 = vst [vmem:[#allocation83_spill] sm:$0xff] %v5984_v47  ;;  %10150 = vst [vmem:[#allocation84_spill] sm:$0xff] %v5987_v38  ;;  %v6029_v47 = vsub.f32 %v5829_v60, %v5871_v18  ;;  %498 = vmatpush1.msra.mxu1 %v6009_v56  ;;  %v6048_v60 = vand.u32 4294901760, %v6005_v33  ;;  %v6050_v18 = vld [vmem:[#allocation9 + $0x8] sm:$0xff]  ;;  %323 = vmatprep.subr.mxu0 %v6018_v50 }
  0x58   :  { %10151 = vst [vmem:[#allocation85_spill] sm:$0xff] %v5993_v41  ;;  %10152 = vst [vmem:[#allocation86_spill] sm:$0xff] %v5996_v3  ;;  %v6038_v41 = vand.u32 4294901760, %v502_v16  ;;  %v6041_v3 = vand.u32 4294901760, %v6015_v54  ;;  %v6053_v45 = vand.u32 4294901760, %v508_v17  ;;  %v514_v16 = vsub.f32 %v6000_v31, %v6025_v62  ;;  %325 = vmatpush1.msra.mxu0 %v6032_v55 }
  0x59   :  { %10153 = vst [vmem:[#allocation87_spill] sm:$0xff] %v6000_v31  ;;  %10154 = vst [vmem:[#allocation88_spill] sm:$0xff] %v6003_v53  ;;  %v6069_v17 = vand.u32 4294901760, %v6045_v0  ;;  %v6090_v24 = vand.u32 4294901760, %v6050_v18  ;;  %327 = vmatprep.subr.mxu0 %v6048_v60 }
  0x5a   :  { %10155 = vst [vmem:[#allocation89_spill] sm:$0xff] %v6009_v56  ;;  %10156 = vst [vmem:[#allocation90_spill] sm:$0xff] %v6015_v54  ;;  %v6058_v56 = vand.u32 4294901760, %v6029_v47  ;;  %504 = vmatprep.subr.mxu1 %v6038_v41  ;;  %v520_v2 = vsub.f32 %v6015_v54, %v6041_v3  ;;  %v6081_v12 = vand.u32 4294901760, %v514_v16  ;;  %v6092_v54 = vld [vmem:[#allocation9 + $0x1f8] sm:$0xff]  ;;  %329 = vmatpush1.msra.mxu0 %v6072_v23 }
  0x5b   :  { %10157 = vst [vmem:[#allocation91_spill] sm:$0xff] %v6018_v50  ;;  %10158 = vst [vmem:[#allocation92_spill] sm:$0xff] %v6025_v62  ;;  %v6076_v62 = vsub.f32 %v5873_v46, %v5917_v25  ;;  %510 = vmatpush1.msra.mxu1 %v6053_v45  ;;  %v532_v16 = vsub.f32 %v6045_v0, %v6069_v17  ;;  %v6106_v25 = vld [vmem:[#allocation9 + $0x1f0] sm:$0xff]  ;;  %331 = vmatprep.subr.mxu0 %v6090_v24 }
  0x5c   :  { %10159 = vst [vmem:[#allocation93_spill] sm:$0xff] %v6029_v47  ;;  %10160 = vst [vmem:[#allocation94_spill] sm:$0xff] %v6032_v55  ;;  %v6094_v46 = vand.u32 4294901760, %v520_v2  ;;  %516 = vmatprep.subr.mxu1 %v6081_v12 }
  0x5d   :  { %10161 = vst [vmem:[#allocation95_spill] sm:$0xff] %v6038_v41  ;;  %10162 = vst [vmem:[#allocation96_spill] sm:$0xff] %v6041_v3  ;;  %v526_v41 = vsub.f32 %v6029_v47, %v6058_v56  ;;  %v6087_v3 = vand.u32 4294901760, %v6062_v40 }
  0x5e   :  { %10163 = vst [vmem:[#allocation97_spill] sm:$0xff] %v6045_v0  ;;  %10164 = vst [vmem:[#allocation98_spill] sm:$0xff] %v6048_v60  ;;  %v6119_v0 = vsub.f32 %v5932_v30, %v5969_v51  ;;  %522 = vmatpush1.msra.mxu1 %v6094_v46  ;;  %v6151_v51 = vld [vmem:[#allocation9 + $0x1d8] sm:$0xff] }
  0x5f   :  { %10165 = vst [vmem:[#allocation99_spill] sm:$0xff] %v6053_v45  ;;  %10166 = vst [vmem:[#allocation100_spill] sm:$0xff] %v6058_v56  ;;  %v6100_v45 = vand.u32 4294901760, %v6076_v62  ;;  %v6104_v56 = vsub.f32 %v5903_v5, %v5943_v4  ;;  %v6109_v47 = vand.u32 4294901760, %v526_v41  ;;  %v538_v2 = vsub.f32 %v6062_v40, %v6087_v3  ;;  %v6121_v5 = vld [vmem:[#allocation9 + $0x1e8] sm:$0xff] }
  0x60   :  { %10167 = vst [vmem:[#allocation101_spill] sm:$0xff] %v6062_v40  ;;  %10168 = vst [vmem:[#allocation102_spill] sm:$0xff] %v6069_v17  ;;  %v6115_v17 = vand.u32 4294901760, %v6078_v36  ;;  %v6124_v4 = vand.u32 4294901760, %v532_v16  ;;  %v6135_v40 = vld [vmem:[#allocation9 + $0x1e0] sm:$0xff]  ;;  %v6142_v16 = vand.u32 4294901760, %v6119_v0 }
  0x61   :  { %10169 = vst [vmem:[#allocation103_spill] sm:$0xff] %v6072_v23  ;;  %10170 = vst [vmem:[#allocation104_spill] sm:$0xff] %v6076_v62  ;;  %v544_v41 = vsub.f32 %v6076_v62, %v6100_v45  ;;  %528 = vmatprep.subr.mxu1 %v6109_v47  ;;  %v6138_v30 = vand.u32 4294901760, %v538_v2 }
  0x62   :  { %10171 = vst [vmem:[#allocation105_spill] sm:$0xff] %v6081_v12  ;;  %10172 = vst [vmem:[#allocation106_spill] sm:$0xff] %v6087_v3  ;;  %v6130_v12 = vand.u32 4294901760, %v6104_v56  ;;  %v6133_v3 = vand.u32 4294901760, %v6092_v54  ;;  %534 = vmatpush1.msra.mxu1 %v6124_v4  ;;  %333 = vmatpush1.msra.mxu0 %v6115_v17 }
  0x63   :  { %10173 = vst [vmem:[#allocation107_spill] sm:$0xff] %v6090_v24  ;;  %10174 = vst [vmem:[#allocation108_spill] sm:$0xff] %v6094_v46  ;;  %v6146_v46 = vsub.f32 %v5945_v59, %v5987_v38  ;;  %v6154_v62 = vand.u32 4294901760, %v544_v41  ;;  %v6164_v59 = vand.u32 4294901760, %v6121_v5  ;;  %540 = vmatprep.subr.mxu1 %v6138_v30  ;;  %v556_v41 = vsub.f32 %v6119_v0, %v6142_v16 }
  0x64   :  { %10175 = vst [vmem:[#allocation109_spill] sm:$0xff] %v6100_v45  ;;  %10176 = vst [vmem:[#allocation110_spill] sm:$0xff] %v6104_v56  ;;  %v6149_v45 = vand.u32 4294901760, %v6106_v25  ;;  %v550_v2 = vsub.f32 %v6104_v56, %v6130_v12  ;;  %335 = vmatprep.subr.mxu0 %v6133_v3  ;;  %v6191_v38 = vsub.f32 %v5989_v37, %v6032_v55 }
  0x65   :  { %10177 = vst [vmem:[#allocation111_spill] sm:$0xff] %v6109_v47  ;;  %10178 = vst [vmem:[#allocation112_spill] sm:$0xff] %v6115_v17  ;;  %v6161_v47 = vsub.f32 %v5960_v48, %v6003_v53  ;;  %v6178_v48 = vand.u32 4294901760, %v6135_v40  ;;  %v6180_v53 = vld [vmem:[#allocation9 + $0x1d0] sm:$0xff]  ;;  %546 = vmatpush1.msra.mxu1 %v6154_v62  ;;  %v6208_v56 = vsub.f32 %v6005_v33, %v6048_v60 }
  0x66   :  { %10179 = vst [vmem:[#allocation113_spill] sm:$0xff] %v6119_v0  ;;  %10180 = vst [vmem:[#allocation114_spill] sm:$0xff] %v6124_v4  ;;  %v6171_v4 = vand.u32 4294901760, %v6146_v46  ;;  %v6198_v0 = vand.u32 4294901760, %v556_v41  ;;  %337 = vmatpush2.msra.mxu0 %v6149_v45  ;;  %v6215_v41 = vand.u32 4294901760, %v6191_v38  ;;  %v6222_v55 = vsub.f32 %v6034_v11, %v6072_v23  ;;  %v6252_v23 = vld [vmem:[#allocation9 + $0x1b0] sm:$0xff] }
  0x67   :  { %10181 = vst [vmem:[#allocation115_spill] sm:$0xff] %v6130_v12  ;;  %10182 = vst [vmem:[#allocation116_spill] sm:$0xff] %v6133_v3  ;;  %v6175_v12 = vsub.f32 %v5975_v32, %v6018_v50  ;;  %v6194_v32 = vand.u32 4294901760, %v6151_v51  ;;  %v6196_v50 = vld [vmem:[#allocation9 + $0x1c8] sm:$0xff]  ;;  %339 = vmatprep.subr.mxu0 %v6164_v59 }
  0x68   :  { %10183 = vst [vmem:[#allocation117_spill] sm:$0xff] %v6138_v30  ;;  %10184 = vst [vmem:[#allocation118_spill] sm:$0xff] %v6142_v16  ;;  %v6183_v30 = vand.u32 4294901760, %v550_v2  ;;  %v6187_v16 = vand.u32 4294901760, %v6161_v47  ;;  %v562_v2 = vsub.f32 %v6146_v46, %v6171_v4  ;;  %341 = vmatpush2.msra.mxu0 %v6178_v48  ;;  %v6236_v60 = vand.u32 4294901760, %v6196_v50 }
  0x69   :  { %10185 = vst [vmem:[#allocation119_spill] sm:$0xff] %v6146_v46  ;;  %10186 = vst [vmem:[#allocation120_spill] sm:$0xff] %v6149_v45  ;;  %v6224_v46 = vld [vmem:[#allocation9 + $0x1c0] sm:$0xff]  ;;  %343 = vmatprep.subr.mxu0 %v6194_v32 }
  0x6a   :  { %10187 = vst [vmem:[#allocation121_spill] sm:$0xff] %v6154_v62  ;;  %10188 = vst [vmem:[#allocation122_spill] sm:$0xff] %v6161_v47  ;;  %v6204_v62 = vand.u32 4294901760, %v6175_v12  ;;  %552 = vmatprep.subr.mxu1 %v6183_v30  ;;  %v568_v37 = vsub.f32 %v6161_v47, %v6187_v16  ;;  %v6227_v33 = vand.u32 4294901760, %v562_v2  ;;  %v6238_v47 = vld [vmem:[#allocation9 + $0x1b8] sm:$0xff]  ;;  %v6246_v2 = vand.u32 4294901760, %v6222_v55 }
  0x6b   :  { %10189 = vst [vmem:[#allocation123_spill] sm:$0xff] %v6164_v59  ;;  %10190 = vst [vmem:[#allocation124_spill] sm:$0xff] %v6171_v4  ;;  %v6218_v4 = vand.u32 4294901760, %v6180_v53  ;;  %558 = vmatpush1.msra.mxu1 %v6198_v0 }
  0x6c   :  { %10191 = vst [vmem:[#allocation125_spill] sm:$0xff] %v6175_v12  ;;  %10192 = vst [vmem:[#allocation126_spill] sm:$0xff] %v6178_v48  ;;  %v6240_v11 = vand.u32 4294901760, %v568_v37  ;;  %564 = vmatprep.subr.mxu1 %v6227_v33 }
  0x6d   :  { %10193 = vst [vmem:[#allocation127_spill] sm:$0xff] %v6183_v30  ;;  %10194 = vst [vmem:[#allocation128_spill] sm:$0xff] %v6187_v16  ;;  %v574_v30 = vsub.f32 %v6175_v12, %v6204_v62  ;;  %v6233_v16 = vand.u32 4294901760, %v6208_v56  ;;  %345 = vmatpush2.msra.mxu0 %v6218_v4 }
  0x6e   :  { %10195 = vst [vmem:[#allocation129_spill] sm:$0xff] %v6191_v38  ;;  %10196 = vst [vmem:[#allocation130_spill] sm:$0xff] %v6194_v32  ;;  %570 = vmatpush1.msra.mxu1 %v6240_v11  ;;  %347 = vmatprep.subr.mxu0 %v6236_v60 }
  0x6f   :  { %10197 = vst [vmem:[#allocation131_spill] sm:$0xff] %v6198_v0  ;;  %10198 = vst [vmem:[#allocation132_spill] sm:$0xff] %v6204_v62  ;;  %v580_v0 = vsub.f32 %v6191_v38, %v6215_v41  ;;  %v6250_v62 = vsub.f32 %v6050_v18, %v6090_v24  ;;  %v6255_v12 = vand.u32 4294901760, %v574_v30  ;;  %v586_v37 = vsub.f32 %v6208_v56, %v6233_v16  ;;  %v6267_v18 = vld [vmem:[#allocation9 + $0x1a8] sm:$0xff] }
  0x70   :  { %10199 = vst [vmem:[#allocation133_spill] sm:$0xff] %v6208_v56  ;;  %10200 = vst [vmem:[#allocation134_spill] sm:$0xff] %v6215_v41  ;;  %v6261_v41 = vand.u32 4294901760, %v6224_v46  ;;  %v6265_v38 = vsub.f32 %v6078_v36, %v6115_v17  ;;  %v592_v30 = vsub.f32 %v6222_v55, %v6246_v2  ;;  %v6281_v56 = vld [vmem:[#allocation9 + $0x1a0] sm:$0xff]  ;;  %v6297_v17 = vld [vmem:[#allocation9 + $0x198] sm:$0xff] }
  0x71   :  { %10201 = vst [vmem:[#allocation135_spill] sm:$0xff] %v6218_v4  ;;  %10202 = vst [vmem:[#allocation136_spill] sm:$0xff] %v6222_v55  ;;  %v6270_v24 = vand.u32 4294901760, %v580_v0  ;;  %576 = vmatprep.subr.mxu1 %v6255_v12  ;;  %v6284_v36 = vand.u32 4294901760, %v586_v37 }
  0x72   :  { %10203 = vst [vmem:[#allocation137_spill] sm:$0xff] %v6227_v33  ;;  %10204 = vst [vmem:[#allocation138_spill] sm:$0xff] %v6233_v16  ;;  %v6276_v33 = vand.u32 4294901760, %v6250_v62  ;;  %v6279_v16 = vand.u32 4294901760, %v6238_v47  ;;  %349 = vmatpush2.msra.mxu0 %v6261_v41  ;;  %v6288_v0 = vand.u32 4294901760, %v6265_v38  ;;  %v6300_v55 = vand.u32 4294901760, %v592_v30 }
  0x73   :  { %10205 = vst [vmem:[#allocation139_spill] sm:$0xff] %v6236_v60  ;;  %10206 = vst [vmem:[#allocation140_spill] sm:$0xff] %v6240_v11  ;;  %v6292_v11 = vsub.f32 %v6092_v54, %v6133_v3  ;;  %582 = vmatpush1.msra.mxu1 %v6270_v24  ;;  %v6310_v54 = vand.u32 4294901760, %v6267_v18 }
  0x74   :  { %10207 = vst [vmem:[#allocation141_spill] sm:$0xff] %v6246_v2  ;;  %10208 = vst [vmem:[#allocation142_spill] sm:$0xff] %v6250_v62  ;;  %v6295_v2 = vand.u32 4294901760, %v6252_v23  ;;  %v598_v37 = vsub.f32 %v6250_v62, %v6276_v33  ;;  %351 = vmatprep.subr.mxu0 %v6279_v16  ;;  %588 = vmatprep.subr.mxu1 %v6284_v36  ;;  %v604_v3 = vsub.f32 %v6265_v38, %v6288_v0 }
  0x75   :  { %10209 = vst [vmem:[#allocation143_spill] sm:$0xff] %v6255_v12  ;;  %10210 = vst [vmem:[#allocation144_spill] sm:$0xff] %v6261_v41  ;;  %v6307_v12 = vsub.f32 %v6106_v25, %v6149_v45  ;;  %v6316_v30 = vand.u32 4294901760, %v6292_v11  ;;  %v6324_v25 = vand.u32 4294901760, %v6281_v56  ;;  %594 = vmatpush1.msra.mxu1 %v6300_v55  ;;  %v6337_v45 = vsub.f32 %v6135_v40, %v6178_v48 }
  0x76   :  { %10211 = vst [vmem:[#allocation145_spill] sm:$0xff] %v6265_v38  ;;  %10212 = vst [vmem:[#allocation146_spill] sm:$0xff] %v6270_v24  ;;  %353 = vmatpush2.msra.mxu0 %v6295_v2  ;;  %v6321_v24 = vsub.f32 %v6121_v5, %v6164_v59  ;;  %v6340_v5 = vand.u32 4294901760, %v6297_v17  ;;  %v6342_v59 = vld [vmem:[#allocation9 + $0x188] sm:$0xff]  ;;  %v6344_v38 = vand.u32 4294901760, %v604_v3  ;;  %v6354_v62 = vsub.f32 %v6151_v51, %v6194_v32 }
  0x77   :  { %10213 = vst [vmem:[#allocation147_spill] sm:$0xff] %v6276_v33  ;;  %10214 = vst [vmem:[#allocation148_spill] sm:$0xff] %v6279_v16  ;;  %v6326_v33 = vld [vmem:[#allocation9 + $0x190] sm:$0xff]  ;;  %355 = vmatprep.subr.mxu0 %v6310_v54  ;;  %v6360_v3 = vand.u32 4294901760, %v6337_v45  ;;  %v6368_v48 = vsub.f32 %v6180_v53, %v6218_v4  ;;  %v6381_v32 = vand.u32 4294901760, %v6342_v59 }
  0x78   :  { %10215 = vst [vmem:[#allocation149_spill] sm:$0xff] %v6284_v36  ;;  %10216 = vst [vmem:[#allocation150_spill] sm:$0xff] %v6288_v0  ;;  %v6329_v36 = vand.u32 4294901760, %v598_v37  ;;  %v6332_v0 = vand.u32 4294901760, %v6307_v12  ;;  %v610_v37 = vsub.f32 %v6292_v11, %v6316_v30  ;;  %357 = vmatpush2.msra.mxu0 %v6324_v25 }
  0x79   :  { %10217 = vst [vmem:[#allocation151_spill] sm:$0xff] %v6292_v11  ;;  %10218 = vst [vmem:[#allocation152_spill] sm:$0xff] %v6295_v2  ;;  %359 = vmatprep.subr.mxu0 %v6340_v5  ;;  %v6370_v11 = vld [vmem:[#allocation9 + $0x180] sm:$0xff]  ;;  %v628_v53 = vsub.f32 %v6337_v45, %v6360_v3 }
  0x7a   :  { %10219 = vst [vmem:[#allocation153_spill] sm:$0xff] %v6300_v55  ;;  %10220 = vst [vmem:[#allocation154_spill] sm:$0xff] %v6307_v12  ;;  %v6349_v55 = vand.u32 4294901760, %v6321_v24  ;;  %600 = vmatprep.subr.mxu1 %v6329_v36  ;;  %v616_v40 = vsub.f32 %v6307_v12, %v6332_v0  ;;  %v6373_v51 = vand.u32 4294901760, %v610_v37  ;;  %v6383_v12 = vld [vmem:[#allocation9 + $0x178] sm:$0xff]  ;;  %v6391_v37 = vand.u32 4294901760, %v6368_v48 }
  0x7b   :  { %10221 = vst [vmem:[#allocation155_spill] sm:$0xff] %v6310_v54  ;;  %10222 = vst [vmem:[#allocation156_spill] sm:$0xff] %v6316_v30  ;;  %v6364_v30 = vand.u32 4294901760, %v6326_v33  ;;  %606 = vmatpush1.msra.mxu1 %v6344_v38 }
  0x7c   :  { %10223 = vst [vmem:[#allocation157_spill] sm:$0xff] %v6321_v24  ;;  %10224 = vst [vmem:[#allocation158_spill] sm:$0xff] %v6324_v25  ;;  %v6385_v31 = vand.u32 4294901760, %v616_v40  ;;  %612 = vmatprep.subr.mxu1 %v6373_v51 }
  0x7d   :  { %10225 = vst [vmem:[#allocation159_spill] sm:$0xff] %v6329_v36  ;;  %10226 = vst [vmem:[#allocation160_spill] sm:$0xff] %v6332_v0  ;;  %v622_v36 = vsub.f32 %v6321_v24, %v6349_v55  ;;  %v6378_v0 = vand.u32 4294901760, %v6354_v62  ;;  %361 = vmatpush2.msra.mxu0 %v6364_v30 }
  0x7e   :  { %10227 = vst [vmem:[#allocation161_spill] sm:$0xff] %v6337_v45  ;;  %10228 = vst [vmem:[#allocation162_spill] sm:$0xff] %v6340_v5  ;;  %363 = vmatprep.subr.mxu0 %v6381_v32  ;;  %v6410_v45 = vsub.f32 %v6224_v46, %v6261_v41  ;;  %618 = vmatpush2.msra.mxu1 %v6385_v31  ;;  %v6441_v41 = vld [vmem:[#allocation9 + $0x158] sm:$0xff] }
  0x7f   :  { %10229 = vst [vmem:[#allocation163_spill] sm:$0xff] %v6344_v38  ;;  %10230 = vst [vmem:[#allocation164_spill] sm:$0xff] %v6349_v55  ;;  %v6395_v38 = vsub.f32 %v6196_v50, %v6236_v60  ;;  %v6397_v55 = vld [vmem:[#allocation9 + $0x170] sm:$0xff]  ;;  %v6400_v4 = vand.u32 4294901760, %v622_v36  ;;  %v634_v40 = vsub.f32 %v6354_v62, %v6378_v0  ;;  %v6412_v50 = vld [vmem:[#allocation9 + $0x168] sm:$0xff]  ;;  %v6415_v60 = vand.u32 4294901760, %v628_v53 }
  0x80   :  { %10231 = vst [vmem:[#allocation165_spill] sm:$0xff] %v6354_v62  ;;  %10232 = vst [vmem:[#allocation166_spill] sm:$0xff] %v6360_v3  ;;  %v6406_v3 = vand.u32 4294901760, %v6370_v11  ;;  %v640_v36 = vsub.f32 %v6368_v48, %v6391_v37  ;;  %v6425_v62 = vld [vmem:[#allocation9 + $0x160] sm:$0xff]  ;;  %v6432_v53 = vand.u32 4294901760, %v6410_v45 }
  0x81   :  { %10233 = vst [vmem:[#allocation167_spill] sm:$0xff] %v6364_v30  ;;  %10234 = vst [vmem:[#allocation168_spill] sm:$0xff] %v6368_v48  ;;  %624 = vmatprep.subr.mxu1 %v6400_v4  ;;  %v6428_v46 = vand.u32 4294901760, %v634_v40 }
  0x82   :  { %10235 = vst [vmem:[#allocation169_spill] sm:$0xff] %v6373_v51  ;;  %10236 = vst [vmem:[#allocation170_spill] sm:$0xff] %v6378_v0  ;;  %v6420_v51 = vand.u32 4294901760, %v6395_v38  ;;  %v6423_v0 = vand.u32 4294901760, %v6383_v12  ;;  %365 = vmatpush2.msra.mxu0 %v6406_v3  ;;  %630 = vmatpush2.msra.mxu1 %v6415_v60  ;;  %v6444_v48 = vand.u32 4294901760, %v640_v36 }
  0x83   :  { %10237 = vst [vmem:[#allocation171_spill] sm:$0xff] %v6381_v32  ;;  %10238 = vst [vmem:[#allocation172_spill] sm:$0xff] %v6385_v31  ;;  %v6436_v31 = vsub.f32 %v6238_v47, %v6279_v16  ;;  %v6454_v47 = vand.u32 4294901760, %v6412_v50  ;;  %636 = vmatprep.subr.mxu1 %v6428_v46  ;;  %v652_v16 = vsub.f32 %v6410_v45, %v6432_v53 }
  0x84   :  { %10239 = vst [vmem:[#allocation173_spill] sm:$0xff] %v6391_v37  ;;  %10240 = vst [vmem:[#allocation174_spill] sm:$0xff] %v6395_v38  ;;  %v6439_v37 = vand.u32 4294901760, %v6397_v55  ;;  %v646_v40 = vsub.f32 %v6395_v38, %v6420_v51  ;;  %367 = vmatprep.subr.mxu0 %v6423_v0  ;;  %642 = vmatpush2.msra.mxu1 %v6444_v48  ;;  %v6498_v38 = vsub.f32 %v6297_v17, %v6340_v5 }
  0x85   :  { %10241 = vst [vmem:[#allocation175_spill] sm:$0xff] %v6400_v4  ;;  %10242 = vst [vmem:[#allocation176_spill] sm:$0xff] %v6406_v3  ;;  %v6451_v4 = vsub.f32 %v6252_v23, %v6295_v2  ;;  %v6460_v36 = vand.u32 4294901760, %v6436_v31  ;;  %v6468_v23 = vand.u32 4294901760, %v6425_v62  ;;  %v6481_v2 = vsub.f32 %v6281_v56, %v6324_v25 }
  0x86   :  { %10243 = vst [vmem:[#allocation177_spill] sm:$0xff] %v6410_v45  ;;  %10244 = vst [vmem:[#allocation178_spill] sm:$0xff] %v6415_v60  ;;  %369 = vmatpush2.msra.mxu0 %v6439_v37  ;;  %v6465_v60 = vsub.f32 %v6267_v18, %v6310_v54  ;;  %v6484_v18 = vand.u32 4294901760, %v6441_v41  ;;  %v6486_v54 = vld [vmem:[#allocation9 + $0x148] sm:$0xff]  ;;  %v6488_v45 = vand.u32 4294901760, %v652_v16  ;;  %v6512_v25 = vsub.f32 %v6326_v33, %v6364_v30 }
  0x87   :  { %10245 = vst [vmem:[#allocation179_spill] sm:$0xff] %v6420_v51  ;;  %10246 = vst [vmem:[#allocation180_spill] sm:$0xff] %v6423_v0  ;;  %v6470_v51 = vld [vmem:[#allocation9 + $0x150] sm:$0xff]  ;;  %371 = vmatprep.subr.mxu0 %v6454_v47  ;;  %v6504_v16 = vand.u32 4294901760, %v6481_v2  ;;  %v6525_v5 = vand.u32 4294901760, %v6486_v54 }
  0x88   :  { %10247 = vst [vmem:[#allocation181_spill] sm:$0xff] %v6428_v46  ;;  %10248 = vst [vmem:[#allocation182_spill] sm:$0xff] %v6432_v53  ;;  %v6473_v46 = vand.u32 4294901760, %v646_v40  ;;  %v6476_v53 = vand.u32 4294901760, %v6451_v4  ;;  %v658_v40 = vsub.f32 %v6436_v31, %v6460_v36  ;;  %373 = vmatpush2.msra.mxu0 %v6468_v23 }
  0x89   :  { %10249 = vst [vmem:[#allocation183_spill] sm:$0xff] %v6436_v31  ;;  %10250 = vst [vmem:[#allocation184_spill] sm:$0xff] %v6439_v37  ;;  %375 = vmatprep.subr.mxu0 %v6484_v18  ;;  %v6514_v31 = vld [vmem:[#allocation9 + $0x140] sm:$0xff]  ;;  %v676_v33 = vsub.f32 %v6481_v2, %v6504_v16 }
  0x8a   :  { %10251 = vst [vmem:[#allocation185_spill] sm:$0xff] %v6444_v48  ;;  %10252 = vst [vmem:[#allocation186_spill] sm:$0xff] %v6451_v4  ;;  %v6493_v48 = vand.u32 4294901760, %v6465_v60  ;;  %648 = vmatprep.subr.mxu1 %v6473_v46  ;;  %v664_v56 = vsub.f32 %v6451_v4, %v6476_v53  ;;  %v6517_v17 = vand.u32 4294901760, %v658_v40  ;;  %v6527_v4 = vld [vmem:[#allocation9 + $0x138] sm:$0xff]  ;;  %v6535_v40 = vand.u32 4294901760, %v6512_v25 }
  0x8b   :  { %10253 = vst [vmem:[#allocation187_spill] sm:$0xff] %v6454_v47  ;;  %10254 = vst [vmem:[#allocation188_spill] sm:$0xff] %v6460_v36  ;;  %v6508_v36 = vand.u32 4294901760, %v6470_v51  ;;  %654 = vmatpush2.msra.mxu1 %v6488_v45 }
  0x8c   :  { %10255 = vst [vmem:[#allocation189_spill] sm:$0xff] %v6465_v60  ;;  %10256 = vst [vmem:[#allocation190_spill] sm:$0xff] %v6468_v23  ;;  %v6529_v24 = vand.u32 4294901760, %v664_v56  ;;  %660 = vmatprep.subr.mxu1 %v6517_v17 }
  0x8d   :  { %10257 = vst [vmem:[#allocation191_spill] sm:$0xff] %v6473_v46  ;;  %10258 = vst [vmem:[#allocation192_spill] sm:$0xff] %v6476_v53  ;;  %v670_v46 = vsub.f32 %v6465_v60, %v6493_v48  ;;  %v6522_v53 = vand.u32 4294901760, %v6498_v38  ;;  %377 = vmatpush2.msra.mxu0 %v6508_v36 }
  0x8e   :  { %10259 = vst [vmem:[#allocation193_spill] sm:$0xff] %v6481_v2  ;;  %10260 = vst [vmem:[#allocation194_spill] sm:$0xff] %v6484_v18  ;;  %379 = vmatprep.subr.mxu0 %v6525_v5  ;;  %v6554_v2 = vsub.f32 %v6370_v11, %v6406_v3  ;;  %666 = vmatpush2.msra.mxu1 %v6529_v24  ;;  %v6585_v3 = vld [vmem:[#allocation9 + $0x118] sm:$0xff] }
  0x8f   :  { %10261 = vst [vmem:[#allocation195_spill] sm:$0xff] %v6488_v45  ;;  %10262 = vst [vmem:[#allocation196_spill] sm:$0xff] %v6493_v48  ;;  %v6539_v45 = vsub.f32 %v6342_v59, %v6381_v32  ;;  %v6541_v48 = vld [vmem:[#allocation9 + $0x130] sm:$0xff]  ;;  %v6544_v30 = vand.u32 4294901760, %v670_v46  ;;  %v682_v56 = vsub.f32 %v6498_v38, %v6522_v53  ;;  %v6556_v59 = vld [vmem:[#allocation9 + $0x128] sm:$0xff]  ;;  %v6559_v32 = vand.u32 4294901760, %v676_v33 }
  0x90   :  { %10263 = vst [vmem:[#allocation197_spill] sm:$0xff] %v6498_v38  ;;  %10264 = vst [vmem:[#allocation198_spill] sm:$0xff] %v6504_v16  ;;  %v6550_v16 = vand.u32 4294901760, %v6514_v31  ;;  %v688_v46 = vsub.f32 %v6512_v25, %v6535_v40  ;;  %v6569_v38 = vld [vmem:[#allocation9 + $0x120] sm:$0xff]  ;;  %v6576_v33 = vand.u32 4294901760, %v6554_v2 }
  0x91   :  { %10265 = vst [vmem:[#allocation199_spill] sm:$0xff] %v6508_v36  ;;  %10266 = vst [vmem:[#allocation200_spill] sm:$0xff] %v6512_v25  ;;  %672 = vmatprep.subr.mxu1 %v6544_v30  ;;  %v6572_v11 = vand.u32 4294901760, %v682_v56 }
  0x92   :  { %10267 = vst [vmem:[#allocation201_spill] sm:$0xff] %v6517_v17  ;;  %10268 = vst [vmem:[#allocation202_spill] sm:$0xff] %v6522_v53  ;;  %v6564_v17 = vand.u32 4294901760, %v6539_v45  ;;  %v6567_v53 = vand.u32 4294901760, %v6527_v4  ;;  %381 = vmatpush2.msra.mxu0 %v6550_v16  ;;  %678 = vmatpush2.msra.mxu1 %v6559_v32  ;;  %v6588_v25 = vand.u32 4294901760, %v688_v46 }
  0x93   :  { %10269 = vst [vmem:[#allocation203_spill] sm:$0xff] %v6525_v5  ;;  %10270 = vst [vmem:[#allocation204_spill] sm:$0xff] %v6529_v24  ;;  %v6580_v24 = vsub.f32 %v6383_v12, %v6423_v0  ;;  %v6598_v12 = vand.u32 4294901760, %v6556_v59  ;;  %684 = vmatprep.subr.mxu1 %v6572_v11  ;;  %v700_v0 = vsub.f32 %v6554_v2, %v6576_v33 }
  0x94   :  { %10271 = vst [vmem:[#allocation205_spill] sm:$0xff] %v6535_v40  ;;  %10272 = vst [vmem:[#allocation206_spill] sm:$0xff] %v6539_v45  ;;  %v6583_v40 = vand.u32 4294901760, %v6541_v48  ;;  %v694_v56 = vsub.f32 %v6539_v45, %v6564_v17  ;;  %383 = vmatprep.subr.mxu0 %v6567_v53  ;;  %690 = vmatpush2.msra.mxu1 %v6588_v25  ;;  %v6642_v45 = vsub.f32 %v6441_v41, %v6484_v18 }
  0x95   :  { %10273 = vst [vmem:[#allocation207_spill] sm:$0xff] %v6544_v30  ;;  %10274 = vst [vmem:[#allocation208_spill] sm:$0xff] %v6550_v16  ;;  %v6595_v30 = vsub.f32 %v6397_v55, %v6439_v37  ;;  %v6604_v46 = vand.u32 4294901760, %v6580_v24  ;;  %v6612_v55 = vand.u32 4294901760, %v6569_v38  ;;  %v6625_v37 = vsub.f32 %v6425_v62, %v6468_v23 }
  0x96   :  { %10275 = vst [vmem:[#allocation209_spill] sm:$0xff] %v6554_v2  ;;  %10276 = vst [vmem:[#allocation210_spill] sm:$0xff] %v6559_v32  ;;  %385 = vmatpush2.msra.mxu0 %v6583_v40  ;;  %v6609_v32 = vsub.f32 %v6412_v50, %v6454_v47  ;;  %v6628_v50 = vand.u32 4294901760, %v6585_v3  ;;  %v6630_v47 = vld [vmem:[#allocation9 + $0x108] sm:$0xff]  ;;  %v6632_v2 = vand.u32 4294901760, %v700_v0  ;;  %v6656_v23 = vsub.f32 %v6470_v51, %v6508_v36 }
  0x97   :  { %10277 = vst [vmem:[#allocation211_spill] sm:$0xff] %v6564_v17  ;;  %10278 = vst [vmem:[#allocation212_spill] sm:$0xff] %v6567_v53  ;;  %v6614_v17 = vld [vmem:[#allocation9 + $0x110] sm:$0xff]  ;;  %387 = vmatprep.subr.mxu0 %v6598_v12  ;;  %v6648_v0 = vand.u32 4294901760, %v6625_v37  ;;  %v6669_v18 = vand.u32 4294901760, %v6630_v47 }
  0x98   :  { %10279 = vst [vmem:[#allocation213_spill] sm:$0xff] %v6572_v11  ;;  %10280 = vst [vmem:[#allocation214_spill] sm:$0xff] %v6576_v33  ;;  %v6617_v11 = vand.u32 4294901760, %v694_v56  ;;  %v6620_v33 = vand.u32 4294901760, %v6595_v30  ;;  %v706_v56 = vsub.f32 %v6580_v24, %v6604_v46  ;;  %389 = vmatpush2.msra.mxu0 %v6612_v55  ;;  %v126_v51 = vld [vmem:[%s9133_s2] sm:$0x3] }
  0x99   :  { %10281 = vst [vmem:[#allocation215_spill] sm:$0xff] %v6580_v24  ;;  %10282 = vst [vmem:[#allocation216_spill] sm:$0xff] %v6583_v40  ;;  %391 = vmatprep.subr.mxu0 %v6628_v50  ;;  %v6658_v24 = vld [vmem:[#allocation9 + $0x100] sm:$0xff] }
  0x9a   :  { %10283 = vst [vmem:[#allocation217_spill] sm:$0xff] %v6588_v25  ;;  %10284 = vst [vmem:[#allocation218_spill] sm:$0xff] %v6595_v30  ;;  %v6637_v25 = vand.u32 4294901760, %v6609_v32  ;;  %696 = vmatprep.subr.mxu1 %v6617_v11  ;;  %v712_v62 = vsub.f32 %v6595_v30, %v6620_v33  ;;  %v6661_v41 = vand.u32 4294901760, %v706_v56  ;;  %v6680_v56 = vand.u32 4294901760, %v6656_v23  ;;  %v80_v30 = vld [vmem:[#allocation4] sm:$0xff] }
  0x9b   :  { %10285 = vst [vmem:[#allocation219_spill] sm:$0xff] %v6598_v12  ;;  %10286 = vst [vmem:[#allocation220_spill] sm:$0xff] %v6604_v46  ;;  %v6652_v46 = vand.u32 4294901760, %v6614_v17  ;;  %702 = vmatpush2.msra.mxu1 %v6632_v2 }
  0x9c   :  { %10287 = vst [vmem:[#allocation221_spill] sm:$0xff] %v6609_v32  ;;  %10288 = vst [vmem:[#allocation222_spill] sm:$0xff] %v6612_v55  ;;  %v6674_v36 = vand.u32 4294901760, %v712_v62  ;;  %708 = vmatprep.subr.mxu1 %v6661_v41 }
  0x9d   :  { %10289 = vst [vmem:[#allocation223_spill] sm:$0xff] %v6617_v11  ;;  %10290 = vst [vmem:[#allocation224_spill] sm:$0xff] %v6620_v33  ;;  %v718_v11 = vsub.f32 %v6609_v32, %v6637_v25  ;;  %v6666_v33 = vand.u32 4294901760, %v6642_v45  ;;  %393 = vmatpush2.msra.mxu0 %v6652_v46 }
  0x9e   :  { %10291 = vst [vmem:[#allocation225_spill] sm:$0xff] %v6625_v37  ;;  %10292 = vst [vmem:[#allocation226_spill] sm:$0xff] %v6628_v50  ;;  %395 = vmatprep.subr.mxu0 %v6669_v18  ;;  %714 = vmatpush2.msra.mxu1 %v6674_v36 }
  0x9f   :  { %10293 = vst [vmem:[#allocation227_spill] sm:$0xff] %v6632_v2  ;;  %10294 = vst [vmem:[#allocation228_spill] sm:$0xff] %v6637_v25  ;;  %v724_v2 = vsub.f32 %v6625_v37, %v6648_v0  ;;  %v6684_v25 = vsub.f32 %v6486_v54, %v6525_v5  ;;  %v6687_v32 = vand.u32 4294901760, %v718_v11  ;;  %v730_v62 = vsub.f32 %v6642_v45, %v6666_v33 }
  0xa0   :  { %10295 = vst [vmem:[#allocation229_spill] sm:$0xff] %v6642_v45  ;;  %10296 = vst [vmem:[#allocation230_spill] sm:$0xff] %v6648_v0  ;;  %v6693_v0 = vand.u32 4294901760, %v6658_v24  ;;  %v6697_v37 = vsub.f32 %v6514_v31, %v6550_v16  ;;  %v736_v11 = vsub.f32 %v6656_v23, %v6680_v56  ;;  %v10310_v5 = vsub.s32 0, %v5702_v1 }
  0xa1   :  { %10297 = vst [vmem:[#allocation231_spill] sm:$0xff] %v6652_v46  ;;  %10298 = vst [vmem:[#allocation232_spill] sm:$0xff] %v6656_v23  ;;  %v6700_v54 = vand.u32 4294901760, %v724_v2  ;;  %720 = vmatprep.subr.mxu1 %v6687_v32  ;;  %v6712_v31 = vand.u32 4294901760, %v730_v62  ;;  %v6724_v16 = vsub.f32 %v6527_v4, %v6567_v53 }
  0xa2   :  { %10299 = vst [vmem:[#allocation233_spill] sm:$0xff] %v6661_v41  ;;  %10300 = vst [vmem:[#allocation234_spill] sm:$0xff] %v6666_v33  ;;  %v6705_v41 = vand.u32 4294901760, %v6684_v25  ;;  %v81_v33 = vld [vmem:[#allocation4 + $0x8] sm:$0xff]  ;;  %v6709_v45 = vrot.slane %v126_v51, %v10310_v5  ;;  %397 = vmatpush2.msra.mxu0 %v6693_v0  ;;  %v6716_v2 = vand.u32 4294901760, %v6697_v37  ;;  %v6727_v5 = vand.u32 4294901760, %v736_v11 }
  0xa3   :  { %10301 = vst [vmem:[#allocation235_spill] sm:$0xff] %v6669_v18  ;;  %10302 = vst [vmem:[#allocation236_spill] sm:$0xff] %v6674_v36  ;;  %v10314_v36 = vsub.s32 1, %v5702_v1  ;;  %726 = vmatpush2.msra.mxu1 %v6700_v54  ;;  %810 = vmatprep.subr.mxu0 %v5726_v22  ;;  %v6735_v1 = vsub.f32 %v6541_v48, %v6583_v40  ;;  %v6746_v11 = vsub.f32 %v6556_v59, %v6598_v12 }
  0xa4   :  { %10303 = vst [vmem:[#allocation237_spill] sm:$0xff] %v6680_v56  ;;  %10304 = vst [vmem:[#allocation238_spill] sm:$0xff] %v6684_v25  ;;  %v742_v62 = vsub.f32 %v6684_v25, %v6705_v41  ;;  %732 = vmatprep.subr.mxu1 %v6712_v31  ;;  %v748_v4 = vsub.f32 %v6697_v37, %v6716_v2 }
  0xa5   :  { %10305 = vst [vmem:[#allocation239_spill] sm:$0xff] %v6687_v32  ;;  %10306 = vst [vmem:[#allocation240_spill] sm:$0xff] %v6693_v0  ;;  %v6720_v56 = vrot.slane %v126_v51, %v10314_v36  ;;  %v138_v32 = vmul.f32 %v6709_v45, %v80_v30  ;;  %v6742_v51 = vand.u32 4294901760, %v6724_v16  ;;  %738 = vmatpush2.msra.mxu1 %v6727_v5  ;;  %v6754_v22 = vand.u32 4294901760, %v6735_v1 }
  0xa6   :  { %10307 = vst [vmem:[#allocation241_spill] sm:$0xff] %v6697_v37  ;;  %10308 = vst [vmem:[#allocation242_spill] sm:$0xff] %v6700_v54  ;;  %v6749_v30 = vand.u32 4294901760, %v742_v62 }
  0xa7   :  { %10309 = vst [vmem:[#allocation243_spill] sm:$0xff] %v6705_v41  ;;  %10311 = vst [vmem:[#allocation244_spill] sm:$0xff] %v6709_v45  ;;  %v139_v36 = vmul.f32 %v6720_v56, %v81_v33  ;;  %v6751_v48 = vand.u32 4294901760, %v138_v32  ;;  %v6760_v33 = vand.u32 4294901760, %v748_v4  ;;  %v754_v59 = vsub.f32 %v6724_v16, %v6742_v51 }
  0xa8   :  { %10312 = vst [vmem:[#allocation245_spill] sm:$0xff] %v6712_v31  ;;  %10313 = vst [vmem:[#allocation246_spill] sm:$0xff] %v6716_v2  ;;  %v6758_v31 = vsub.f32 %v6569_v38, %v6612_v55  ;;  %744 = vmatprep.subr.mxu1 %v6749_v30  ;;  %v760_v45 = vsub.f32 %v6735_v1, %v6754_v22  ;;  %v6780_v4 = vsub.f32 %v6585_v3, %v6628_v50 }
  0xa9   :  { %10315 = vst [vmem:[#allocation247_spill] sm:$0xff] %v6720_v56  ;;  %10316 = vst [vmem:[#allocation248_spill] sm:$0xff] %v6724_v16  ;;  %v6762_v54 = vand.u32 4294901760, %v139_v36  ;;  %v6771_v62 = vsub.f32 %v138_v32, %v6751_v48  ;;  %750 = vmatpush2.msra.mxu1 %v6760_v33 }
  0xaa   :  { %10317 = vst [vmem:[#allocation249_spill] sm:$0xff] %v6727_v5  ;;  %10318 = vst [vmem:[#allocation250_spill] sm:$0xff] %v6735_v1  ;;  %v6767_v5 = vand.u32 4294901760, %v6746_v11  ;;  %v6776_v38 = vand.u32 4294901760, %v6758_v31  ;;  %v6798_v3 = vand.u32 4294901760, %v760_v45  ;;  %v6816_v45 = vsub.f32 %v6630_v47, %v6669_v18 }
  0xab   :  { %10319 = vst [vmem:[#allocation251_spill] sm:$0xff] %v6742_v51  ;;  %10320 = vst [vmem:[#allocation252_spill] sm:$0xff] %v6746_v11  ;;  %v6784_v56 = vsub.f32 %v139_v36, %v6762_v54  ;;  %v6786_v51 = vand.u32 4294901760, %v754_v59  ;;  %800 = vmatprep.mubr.f32.mxu1 %v6762_v54  ;;  %v6803_v59 = vand.u32 4294901760, %v6780_v4 }
  0xac   :  { %10321 = vst [vmem:[#allocation253_spill] sm:$0xff] %v6749_v30  ;;  %10322 = vst [vmem:[#allocation254_spill] sm:$0xff] %v6751_v48  ;;  %v766_v32 = vsub.f32 %v6746_v11, %v6767_v5  ;;  %v6792_v30 = vsub.f32 %v6614_v17, %v6652_v46  ;;  %v772_v36 = vsub.f32 %v6758_v31, %v6776_v38  ;;  %v6835_v41 = vand.u32 4294901760, %v6816_v45 }
  0xad   :  { %10323 = vst [vmem:[#allocation255_spill] sm:$0xff] %v6754_v22  ;;  %10324 = vst [vmem:[#allocation256_spill] sm:$0xff] %v6758_v31  ;;  %v6796_v22 = vand.u32 4294901760, %v6771_v62  ;;  %756 = vmatprep.subr.mxu1 %v6786_v51  ;;  %v778_v2 = vsub.f32 %v6780_v4, %v6803_v59 }
  0xae   :  { %10325 = vst [vmem:[#allocation257_spill] sm:$0xff] %v6760_v33  ;;  %10326 = vst [vmem:[#allocation258_spill] sm:$0xff] %v6762_v54  ;;  %v6806_v33 = vand.u32 4294901760, %v6784_v56  ;;  %v6809_v17 = vand.u32 4294901760, %v766_v32  ;;  %v6812_v54 = vand.u32 4294901760, %v6792_v30  ;;  %762 = vmatpush2.msra.mxu1 %v6798_v3  ;;  %v6827_v32 = vsub.f32 %v6658_v24, %v6693_v0 }
  0xaf   :  { %10327 = vst [vmem:[#allocation259_spill] sm:$0xff] %v6767_v5  ;;  %10328 = vst [vmem:[#allocation260_spill] sm:$0xff] %v6771_v62  ;;  %v6821_v5 = vand.u32 4294901760, %v772_v36 }
  0xb0   :  { %10329 = vst [vmem:[#allocation261_spill] sm:$0xff] %v6776_v38  ;;  %10330 = vst [vmem:[#allocation262_spill] sm:$0xff] %v6780_v4  ;;  %v407_v38 = vsub.f32 %v6771_v62, %v6796_v22  ;;  %768 = vmatprep.subr.mxu1 %v6809_v17  ;;  %v784_v47 = vsub.f32 %v6792_v30, %v6812_v54  ;;  %v6843_v24 = vand.u32 4294901760, %v6827_v32 }
  0xb1   :  { %10331 = vst [vmem:[#allocation263_spill] sm:$0xff] %v6784_v56  ;;  %10332 = vst [vmem:[#allocation264_spill] sm:$0xff] %v6786_v51  ;;  %v401_v51 = vsub.f32 %v6784_v56, %v6806_v33  ;;  %774 = vmatpush2.msra.mxu1 %v6821_v5 }
  0xb2   :  { %10333 = vst [vmem:[#allocation265_spill] sm:$0xff] %v6792_v30  ;;  %10334 = vst [vmem:[#allocation266_spill] sm:$0xff] %v6796_v22  ;;  %v6837_v36 = vand.u32 4294901760, %v407_v38  ;;  %v6847_v22 = vand.u32 4294901760, %v784_v47  ;;  %v796_v38 = vsub.f32 %v6827_v32, %v6843_v24  ;;  %v10352_v47 = vld [vmem:[#allocation34_spill] sm:$0xff] }
  0xb3   :  { %10335 = vst [vmem:[#allocation267_spill] sm:$0xff] %v6798_v3  ;;  %10336 = vst [vmem:[#allocation268_spill] sm:$0xff] %v6803_v59  ;;  %v6840_v3 = vand.u32 4294901760, %v778_v2  ;;  %v6845_v59 = vand.u32 4294901760, %v401_v51 }
  0xb4   :  { %10337 = vst [vmem:[#allocation269_spill] sm:$0xff] %v6806_v33  ;;  %10338 = vst [vmem:[#allocation270_spill] sm:$0xff] %v6809_v17  ;;  %v790_v17 = vsub.f32 %v6816_v45, %v6835_v41  ;;  %v6859_v51 = vand.u32 4294901760, %v796_v38  ;;  %v10353_v38 = vld [vmem:[#allocation90_spill] sm:$0xff] }
  0xb5   :  { %10339 = vst [vmem:[#allocation271_spill] sm:$0xff] %v6812_v54  ;;  %10340 = vst [vmem:[#allocation272_spill] sm:$0xff] %v6816_v45  ;;  %780 = vmatprep.subr.mxu1 %v6840_v3  ;;  %403 = vmatprep.mubr.f32.mxu0 %v6845_v59  ;;  %v10397_v54 = vld [vmem:[#allocation177_spill] sm:$0xff] }
  0xb6   :  { %10341 = vst [vmem:[#allocation273_spill] sm:$0xff] %v6821_v5  ;;  %10342 = vst [vmem:[#allocation274_spill] sm:$0xff] %v6827_v32  ;;  %786 = vmatpush2.msra.mxu1 %v6847_v22  ;;  %v6856_v2 = vand.u32 4294901760, %v790_v17  ;;  %409 = vmatmul.mubr.f32.vlgmr.msra.gmra.mxu0 %v6837_v36  ;;  %v10351_v17 = vld [vmem:[#allocation87_spill] sm:$0xff]  ;;  %v10381_v5 = vld [vmem:[#allocation145_spill] sm:$0xff] }
  0xb7   :  { %10343 = vst [vmem:[#allocation275_spill] sm:$0xff] %v6835_v41  ;;  %10344 = vst [vmem:[#allocation276_spill] sm:$0xff] %v6837_v36  ;;  %813 = vmatpush1.msra.mxu0 %v5739_v27  ;;  %v10385_v27 = vld [vmem:[#allocation154_spill] sm:$0xff]  ;;  %v10387_v36 = vld [vmem:[#allocation157_spill] sm:$0xff]  ;;  %1002 = vmatprep.mubr.f32.mxu0 %v6784_v56 }
  0xb8   :  { %10345 = vst [vmem:[#allocation277_spill] sm:$0xff] %v6840_v3  ;;  %10346 = vst [vmem:[#allocation278_spill] sm:$0xff] %v6843_v24  ;;  %792 = vmatprep.subr.mxu1 %v6856_v2  ;;  %816 = vmatprep.subr.mxu0 %v5745_v29  ;;  %v10377_v3 = vld [vmem:[#allocation136_spill] sm:$0xff]  ;;  %v10383_v29 = vld [vmem:[#allocation151_spill] sm:$0xff] }
  0xb9   :  { %10347 = vst [vmem:[#allocation279_spill] sm:$0xff] %v6845_v59  ;;  %10348 = vst [vmem:[#allocation280_spill] sm:$0xff] %v6847_v22  ;;  %798 = vmatpush2.msra.mxu1 %v6859_v51  ;;  %819 = vmatpush1.msra.mxu0 %v5761_v35  ;;  %v10373_v22 = vld [vmem:[#allocation129_spill] sm:$0xff]  ;;  %v10379_v35 = vld [vmem:[#allocation142_spill] sm:$0xff] }
  0xba   :  { %10349 = vst [vmem:[#allocation281_spill] sm:$0xff] %v6856_v2  ;;  %10350 = vst [vmem:[#allocation282_spill] sm:$0xff] %v6859_v51  ;;  %802 = vmatmul.mubr.f32.vlgmr.msra.gmra.mxu1 %v6751_v48  ;;  %822 = vmatprep.subr.mxu0 %v5774_v39  ;;  %v10365_v51 = vld [vmem:[#allocation113_spill] sm:$0xff]  ;;  %v10369_v2 = vld [vmem:[#allocation122_spill] sm:$0xff] }
  0xbb   :  { %1012 = vmatprep.subr.mxu1 %v5706_v7  ;;  %825 = vmatpush1.msra.mxu0 %v5788_v44  ;;  %v10371_v44 = vld [vmem:[#allocation125_spill] sm:$0xff]  ;;  %v10393_v24 = vld [vmem:[#allocation168_spill] sm:$0xff]  ;;  %v10395_v41 = vld [vmem:[#allocation174_spill] sm:$0xff] }
  0xbc   :  { %1014 = vmatpush1.msra.mxu1 %v5708_v8  ;;  %828 = vmatprep.subr.mxu0 %v5802_v49  ;;  %v10367_v49 = vld [vmem:[#allocation119_spill] sm:$0xff]  ;;  %v10375_v39 = vld [vmem:[#allocation133_spill] sm:$0xff] }
  0xbd   :  { %1016 = vmatprep.subr.mxu1 %v5710_v9  ;;  %831 = vmatpush1.msra.mxu0 %v5838_v63  ;;  %v10363_v63 = vld [vmem:[#allocation110_spill] sm:$0xff]  ;;  %v10389_v59 = vld [vmem:[#allocation161_spill] sm:$0xff] }
  0xbe   :  { %1018 = vmatpush1.msra.mxu1 %v5712_v13  ;;  %834 = vmatprep.subr.mxu0 %v5852_v10  ;;  %v10361_v10 = vld [vmem:[#allocation104_spill] sm:$0xff]  ;;  %v10391_v48 = vld [vmem:[#allocation165_spill] sm:$0xff]  ;;  %v10553_v56 = vld [vmem:[#allocation275_spill] sm:$0xff] }
  0xbf   :  { %1020 = vmatprep.subr.mxu1 %v5714_v14  ;;  %837 = vmatpush1.msra.mxu0 %v5868_v42  ;;  %v10359_v42 = vld [vmem:[#allocation101_spill] sm:$0xff] }
  0xc0   :  { %1022 = vmatpush1.msra.mxu1 %v5716_v15  ;;  %840 = vmatprep.subr.mxu0 %v5884_v58  ;;  %v10357_v58 = vld [vmem:[#allocation97_spill] sm:$0xff] }
  0xc1   :  { %1024 = vmatprep.subr.mxu1 %v5719_v19  ;;  %843 = vmatpush1.msra.mxu0 %v5898_v6  ;;  %v10355_v6 = vld [vmem:[#allocation93_spill] sm:$0xff] }
  0xc2   :  { %1026 = vmatpush1.msra.mxu1 %v5721_v20  ;;  %846 = vmatprep.subr.mxu0 %v5914_v57  ;;  %v10354_v57 = vld [vmem:[#allocation38_spill] sm:$0xff] }
  0xc3   :  { %1028 = vmatprep.subr.mxu1 %v5723_v21  ;;  %849 = vmatpush1.msra.mxu0 %v5930_v52  ;;  %v10356_v52 = vld [vmem:[#allocation41_spill] sm:$0xff] }
  0xc4   :  { %1030 = vmatpush1.msra.mxu1 %v5736_v26  ;;  %852 = vmatprep.subr.mxu0 %v5958_v61  ;;  %v10358_v61 = vld [vmem:[#allocation46_spill] sm:$0xff] }
  0xc5   :  { %1032 = vmatprep.subr.mxu1 %v5742_v28  ;;  %855 = vmatpush1.msra.mxu0 %v5973_v43  ;;  %v10360_v43 = vld [vmem:[#allocation52_spill] sm:$0xff] }
  0xc6   :  { %1034 = vmatpush1.msra.mxu1 %v5758_v34  ;;  %858 = vmatprep.subr.mxu0 %v10351_v17  ;;  %v10362_v17 = vld [vmem:[#allocation55_spill] sm:$0xff] }
  0xc7   :  { %1036 = vmatprep.subr.mxu1 %v10352_v47  ;;  %861 = vmatpush1.msra.mxu0 %v10353_v38  ;;  %v10364_v38 = vld [vmem:[#allocation59_spill] sm:$0xff] }
  0xc8   :  { %1038 = vmatpush1.msra.mxu1 %v10354_v57  ;;  %864 = vmatprep.subr.mxu0 %v10355_v6  ;;  %v10366_v6 = vld [vmem:[#allocation63_spill] sm:$0xff] }
  0xc9   :  { %1040 = vmatprep.subr.mxu1 %v10356_v52  ;;  %867 = vmatpush1.msra.mxu0 %v10357_v58  ;;  %v10368_v58 = vld [vmem:[#allocation66_spill] sm:$0xff] }
  0xca   :  { %1042 = vmatpush1.msra.mxu1 %v10358_v61  ;;  %870 = vmatprep.subr.mxu0 %v10359_v42  ;;  %v10370_v42 = vld [vmem:[#allocation69_spill] sm:$0xff] }
  0xcb   :  { %1044 = vmatprep.subr.mxu1 %v10360_v43  ;;  %873 = vmatpush1.msra.mxu0 %v10361_v10  ;;  %v10372_v10 = vld [vmem:[#allocation75_spill] sm:$0xff] }
  0xcc   :  { %1046 = vmatpush1.msra.mxu1 %v10362_v17  ;;  %876 = vmatprep.subr.mxu0 %v10363_v63  ;;  %v10374_v63 = vld [vmem:[#allocation80_spill] sm:$0xff] }
  0xcd   :  { %1048 = vmatprep.subr.mxu1 %v10364_v38  ;;  %879 = vmatpush1.msra.mxu0 %v10365_v51  ;;  %v10376_v51 = vld [vmem:[#allocation84_spill] sm:$0xff] }
  0xce   :  { %1050 = vmatpush1.msra.mxu1 %v10366_v6  ;;  %882 = vmatprep.subr.mxu0 %v10367_v49  ;;  %v10378_v49 = vld [vmem:[#allocation88_spill] sm:$0xff] }
  0xcf   :  { %1052 = vmatprep.subr.mxu1 %v10368_v58  ;;  %885 = vmatpush1.msra.mxu0 %v10369_v2  ;;  %v10380_v2 = vld [vmem:[#allocation91_spill] sm:$0xff] }
  0xd0   :  { %1054 = vmatpush1.msra.mxu1 %v10370_v42  ;;  %888 = vmatprep.subr.mxu0 %v10371_v44  ;;  %v10382_v44 = vld [vmem:[#allocation94_spill] sm:$0xff] }
  0xd1   :  { %1056 = vmatprep.subr.mxu1 %v10372_v10  ;;  %891 = vmatpush1.msra.mxu0 %v10373_v22  ;;  %v10384_v22 = vld [vmem:[#allocation98_spill] sm:$0xff] }
  0xd2   :  { %1058 = vmatpush1.msra.mxu1 %v10374_v63  ;;  %894 = vmatprep.subr.mxu0 %v10375_v39  ;;  %v10386_v39 = vld [vmem:[#allocation103_spill] sm:$0xff] }
  0xd3   :  { %1060 = vmatprep.subr.mxu1 %v10376_v51  ;;  %897 = vmatpush1.msra.mxu0 %v10377_v3  ;;  %v10388_v3 = vld [vmem:[#allocation107_spill] sm:$0xff] }
  0xd4   :  { %1062 = vmatpush1.msra.mxu1 %v10378_v49  ;;  %900 = vmatprep.subr.mxu0 %v10379_v35  ;;  %v10390_v35 = vld [vmem:[#allocation112_spill] sm:$0xff] }
  0xd5   :  { %1064 = vmatprep.subr.mxu1 %v10380_v2  ;;  %903 = vmatpush1.msra.mxu0 %v10381_v5  ;;  %v10392_v5 = vld [vmem:[#allocation116_spill] sm:$0xff] }
  0xd6   :  { %1066 = vmatpush1.msra.mxu1 %v10382_v44  ;;  %906 = vmatprep.subr.mxu0 %v10383_v29  ;;  %v10394_v29 = vld [vmem:[#allocation120_spill] sm:$0xff] }
  0xd7   :  { %1068 = vmatprep.subr.mxu1 %v10384_v22  ;;  %909 = vmatpush2.msra.mxu0 %v10385_v27  ;;  %v10396_v27 = vld [vmem:[#allocation123_spill] sm:$0xff] }
  0xd8   :  { %1070 = vmatpush1.msra.mxu1 %v10386_v39  ;;  %912 = vmatprep.subr.mxu0 %v10387_v36  ;;  %v10398_v36 = vld [vmem:[#allocation126_spill] sm:$0xff] }
  0xd9   :  { %1072 = vmatprep.subr.mxu1 %v10388_v3  ;;  %915 = vmatpush2.msra.mxu0 %v10389_v59  ;;  %v10399_v3 = vld [vmem:[#allocation183_spill] sm:$0xff]  ;;  %v10400_v59 = vld [vmem:[#allocation130_spill] sm:$0xff] }
  0xda   :  { %1074 = vmatpush1.msra.mxu1 %v10390_v35  ;;  %918 = vmatprep.subr.mxu0 %v10391_v48  ;;  %v10401_v35 = vld [vmem:[#allocation186_spill] sm:$0xff]  ;;  %v10402_v48 = vld [vmem:[#allocation135_spill] sm:$0xff] }
  0xdb   :  { %1076 = vmatprep.subr.mxu1 %v10392_v5  ;;  %921 = vmatpush2.msra.mxu0 %v10393_v24  ;;  %v10403_v24 = vld [vmem:[#allocation139_spill] sm:$0xff] }
  0xdc   :  { %1078 = vmatpush2.msra.mxu1 %v10394_v29  ;;  %924 = vmatprep.subr.mxu0 %v10395_v41  ;;  %v10404_v29 = vld [vmem:[#allocation193_spill] sm:$0xff]  ;;  %v10405_v41 = vld [vmem:[#allocation144_spill] sm:$0xff] }
  0xdd   :  { %1080 = vmatprep.subr.mxu1 %v10396_v27  ;;  %927 = vmatpush2.msra.mxu0 %v10397_v54  ;;  %v10406_v27 = vld [vmem:[#allocation197_spill] sm:$0xff]  ;;  %v10407_v54 = vld [vmem:[#allocation148_spill] sm:$0xff] }
  0xde   :  { %1082 = vmatpush2.msra.mxu1 %v10398_v36  ;;  %930 = vmatprep.subr.mxu0 %v10399_v3  ;;  %v10408_v36 = vld [vmem:[#allocation200_spill] sm:$0xff] }
  0xdf   :  { %1084 = vmatprep.subr.mxu1 %v10400_v59  ;;  %933 = vmatpush2.msra.mxu0 %v10401_v35  ;;  %v10409_v3 = vld [vmem:[#allocation152_spill] sm:$0xff]  ;;  %v10410_v59 = vld [vmem:[#allocation206_spill] sm:$0xff]  ;;  %v10411_v35 = vld [vmem:[#allocation155_spill] sm:$0xff] }
  0xe0   :  { %1086 = vmatpush2.msra.mxu1 %v10402_v48  ;;  %936 = vmatprep.subr.mxu0 %v6465_v60  ;;  %v10412_v48 = vld [vmem:[#allocation209_spill] sm:$0xff]  ;;  %v10413_v60 = vld [vmem:[#allocation158_spill] sm:$0xff] }
  0xe1   :  { %1088 = vmatprep.subr.mxu1 %v10403_v24  ;;  %939 = vmatpush2.msra.mxu0 %v10404_v29  ;;  %v10414_v24 = vld [vmem:[#allocation215_spill] sm:$0xff]  ;;  %v10415_v29 = vld [vmem:[#allocation162_spill] sm:$0xff] }
  0xe2   :  { %1090 = vmatpush2.msra.mxu1 %v10405_v41  ;;  %942 = vmatprep.subr.mxu0 %v10406_v27  ;;  %v10416_v41 = vld [vmem:[#allocation218_spill] sm:$0xff]  ;;  %v10417_v27 = vld [vmem:[#allocation167_spill] sm:$0xff] }
  0xe3   :  { %1092 = vmatprep.subr.mxu1 %v10407_v54  ;;  %945 = vmatpush2.msra.mxu0 %v10408_v36  ;;  %v10418_v54 = vld [vmem:[#allocation221_spill] sm:$0xff]  ;;  %v10419_v36 = vld [vmem:[#allocation171_spill] sm:$0xff] }
  0xe4   :  { %1094 = vmatpush2.msra.mxu1 %v10409_v3  ;;  %948 = vmatprep.subr.mxu0 %v10410_v59  ;;  %v10420_v3 = vld [vmem:[#allocation225_spill] sm:$0xff]  ;;  %v10421_v59 = vld [vmem:[#allocation176_spill] sm:$0xff] }
  0xe5   :  { %1096 = vmatprep.subr.mxu1 %v10411_v35  ;;  %951 = vmatpush2.msra.mxu0 %v10412_v48  ;;  %v10422_v35 = vld [vmem:[#allocation229_spill] sm:$0xff]  ;;  %v10423_v48 = vld [vmem:[#allocation180_spill] sm:$0xff] }
  0xe6   :  { %1098 = vmatpush2.msra.mxu1 %v10413_v60  ;;  %954 = vmatprep.subr.mxu0 %v10414_v24  ;;  %v10424_v24 = vld [vmem:[#allocation184_spill] sm:$0xff] }
  0xe7   :  { %1100 = vmatprep.subr.mxu1 %v10415_v29  ;;  %957 = vmatpush2.msra.mxu0 %v10416_v41  ;;  %v10425_v41 = vld [vmem:[#allocation187_spill] sm:$0xff] }
  0xe8   :  { %1102 = vmatpush2.msra.mxu1 %v10417_v27  ;;  %960 = vmatprep.subr.mxu0 %v10418_v54  ;;  %v10426_v54 = vld [vmem:[#allocation190_spill] sm:$0xff] }
  0xe9   :  { %1104 = vmatprep.subr.mxu1 %v10419_v36  ;;  %963 = vmatpush2.msra.mxu0 %v10420_v3  ;;  %v10427_v3 = vld [vmem:[#allocation194_spill] sm:$0xff] }
  0xea   :  { %1106 = vmatpush2.msra.mxu1 %v10421_v59  ;;  %966 = vmatprep.subr.mxu0 %v10422_v35  ;;  %v10428_v35 = vld [vmem:[#allocation199_spill] sm:$0xff] }
  0xeb   :  { %1108 = vmatprep.subr.mxu1 %v10423_v48  ;;  %969 = vmatpush2.msra.mxu0 %v6656_v23  ;;  %v10429_v23 = vld [vmem:[#allocation203_spill] sm:$0xff] }
  0xec   :  { %1110 = vmatpush2.msra.mxu1 %v10424_v24  ;;  %972 = vmatprep.subr.mxu0 %v6684_v25  ;;  %v10473_v25 = vld [vmem:[#allocation112_spill] sm:$0xff] }
  0xed   :  { %1112 = vmatprep.subr.mxu1 %v10425_v41  ;;  %975 = vmatpush2.msra.mxu0 %v6697_v37  ;;  %v10430_v37 = vld [vmem:[#allocation208_spill] sm:$0xff] }
  0xee   :  { %1114 = vmatpush2.msra.mxu1 %v10426_v54  ;;  %978 = vmatprep.subr.mxu0 %v6724_v16  ;;  %v10471_v16 = vld [vmem:[#allocation107_spill] sm:$0xff] }
  0xef   :  { %1116 = vmatprep.subr.mxu1 %v10427_v3  ;;  %981 = vmatpush2.msra.mxu0 %v6735_v1  ;;  %v10440_v1 = vld [vmem:[#allocation61_spill] sm:$0xff] }
  0xf0   :  { %1118 = vmatpush2.msra.mxu1 %v10428_v35  ;;  %984 = vmatprep.subr.mxu0 %v6746_v11  ;;  %v10432_v11 = vld [vmem:[#allocation35_spill] sm:$0xff] }
  0xf1   :  { %1120 = vmatprep.subr.mxu1 %v10429_v23  ;;  %987 = vmatpush2.msra.mxu0 %v6758_v31  ;;  %v10431_v31 = vld [vmem:[#allocation31_spill] sm:$0xff] }
  0xf2   :  { %990 = vmatprep.subr.mxu0 %v6780_v4  ;;  %1122 = vmatpush2.msra.mxu1 %v10430_v37  ;;  %v10433_v4 = vld [vmem:[#allocation36_spill] sm:$0xff] }
  0xf3   :  { %993 = vmatpush2.msra.mxu0 %v6792_v30  ;;  %1124 = vmatprep.subr.mxu1 %v6567_v53  ;;  %v10434_v30 = vld [vmem:[#allocation39_spill] sm:$0xff] }
  0xf4   :  { %996 = vmatprep.subr.mxu0 %v6816_v45  ;;  %1126 = vmatpush2.msra.mxu1 %v6583_v40  ;;  %v10435_v45 = vld [vmem:[#allocation42_spill] sm:$0xff] }
  0xf5   :  { %999 = vmatpush2.msra.mxu0 %v6827_v32  ;;  %1128 = vmatprep.subr.mxu1 %v6598_v12  ;;  %v10436_v32 = vld [vmem:[#allocation45_spill] sm:$0xff] }
  0xf6   :  { %1005 = vmatmul.mubr.f32.vlgmr.msra.gmra.mxu0 %v6771_v62  ;;  %1155 = vmatprep.subr.mxu0 %v10431_v31  ;;  %v10437_v31 = vld [vmem:[#allocation49_spill] sm:$0xff] }
  0xf7   :  { %1159 = vmatpush1.msra.mxu0 %v10432_v11  ;;  %1130 = vmatpush2.msra.mxu1 %v6612_v55  ;;  %v10438_v11 = vld [vmem:[#allocation57_spill] sm:$0xff] }
  0xf8   :  { %1163 = vmatprep.subr.mxu0 %v10433_v4  ;;  %1132 = vmatprep.subr.mxu1 %v6628_v50  ;;  %v10439_v4 = vld [vmem:[#allocation266_spill] sm:$0xff] }
  0xf9   :  { %1167 = vmatpush1.msra.mxu0 %v10434_v30  ;;  %1134 = vmatpush2.msra.mxu1 %v6652_v46  ;;  %v10441_v30 = vld [vmem:[#allocation64_spill] sm:$0xff] }
  0xfa   :  { %1171 = vmatprep.subr.mxu0 %v10435_v45  ;;  %1136 = vmatprep.subr.mxu1 %v6669_v18  ;;  %v10442_v45 = vld [vmem:[#allocation67_spill] sm:$0xff] }
  0xfb   :  { %1175 = vmatpush1.msra.mxu0 %v10436_v32  ;;  %1138 = vmatpush2.msra.mxu1 %v6693_v0  ;;  %v10443_v32 = vld [vmem:[#allocation71_spill] sm:$0xff] }
  0xfc   :  { %1179 = vmatprep.subr.mxu0 %v10437_v31  ;;  %1142 = vmatprep.mubr.f32.mxu1 %v6806_v33  ;;  %v10444_v31 = vld [vmem:[#allocation74_spill] sm:$0xff] }
  0xfd   :  { %1183 = vmatpush1.msra.mxu0 %v10438_v11  ;;  %1146 = vmatmul.mubr.f32.vlgmr.msra.gmra.mxu1 %v10439_v4  ;;  %v10445_v11 = vld [vmem:[#allocation77_spill] sm:$0xff]  ;;  %v10533_v4 = vld [vmem:[#allocation255_spill] sm:$0xff] }
  0xfe   :  { %1187 = vmatprep.subr.mxu0 %v10440_v1  ;;  %1418 = vmatprep.subr.mxu1 %v5706_v7  ;;  %v10446_v1 = vld [vmem:[#allocation83_spill] sm:$0xff] }
  0xff   :  { %1191 = vmatpush1.msra.mxu0 %v10441_v30  ;;  %1420 = vmatpush1.msra.mxu1 %v5708_v8  ;;  %v10447_v30 = vld [vmem:[#allocation86_spill] sm:$0xff] }
 0x100   :  { %1195 = vmatprep.subr.mxu0 %v10442_v45  ;;  %1422 = vmatprep.subr.mxu1 %v5710_v9  ;;  %v10448_v45 = vld [vmem:[#allocation92_spill] sm:$0xff]  ;;  %v10528_v9 = vld [vmem:[#allocation251_spill] sm:$0xff] }
 0x101   :  { %1199 = vmatpush1.msra.mxu0 %v10443_v32  ;;  %1424 = vmatpush1.msra.mxu1 %v5712_v13  ;;  %v10449_v32 = vld [vmem:[#allocation96_spill] sm:$0xff] }
 0x102   :  { %1203 = vmatprep.subr.mxu0 %v10444_v31  ;;  %1426 = vmatprep.subr.mxu1 %v5714_v14  ;;  %v10450_v31 = vld [vmem:[#allocation100_spill] sm:$0xff]  ;;  %v222_v14 = vld [vmem:[#allocation10 + $0x80] sm:$0xff] }
 0x103   :  { %1207 = vmatpush1.msra.mxu0 %v10445_v11  ;;  %1428 = vmatpush1.msra.mxu1 %v5716_v15  ;;  %v10451_v11 = vld [vmem:[#allocation102_spill] sm:$0xff] }
 0x104   :  { %1211 = vmatprep.subr.mxu0 %v10446_v1  ;;  %1430 = vmatprep.subr.mxu1 %v5719_v19  ;;  %v10452_v1 = vld [vmem:[#allocation106_spill] sm:$0xff] }
 0x105   :  { %1215 = vmatpush1.msra.mxu0 %v10447_v30  ;;  %1432 = vmatpush1.msra.mxu1 %v5721_v20  ;;  %v10453_v30 = vld [vmem:[#allocation109_spill] sm:$0xff]  ;;  %v10521_v20 = vld [vmem:[#allocation243_spill] sm:$0xff]  ;;  %v223_v19 = vld [vmem:[#allocation10 + $0x88] sm:$0xff] }
 0x106   :  { %1219 = vmatprep.subr.mxu0 %v10448_v45  ;;  %1434 = vmatprep.subr.mxu1 %v5723_v21  ;;  %v10454_v45 = vld [vmem:[#allocation115_spill] sm:$0xff]  ;;  %v10524_v15 = vld [vmem:[#allocation246_spill] sm:$0xff] }
 0x107   :  { %1223 = vmatpush1.msra.mxu0 %v10449_v32  ;;  %1436 = vmatpush1.msra.mxu1 %v5736_v26  ;;  %v10455_v32 = vld [vmem:[#allocation118_spill] sm:$0xff] }
 0x108   :  { %1227 = vmatprep.subr.mxu0 %v10450_v31  ;;  %1438 = vmatprep.subr.mxu1 %v5742_v28  ;;  %v10456_v31 = vld [vmem:[#allocation124_spill] sm:$0xff] }
 0x109   :  { %1231 = vmatpush1.msra.mxu0 %v10451_v11  ;;  %1440 = vmatpush1.msra.mxu1 %v5758_v34  ;;  %v10457_v11 = vld [vmem:[#allocation128_spill] sm:$0xff] }
 0x10a   :  { %1235 = vmatprep.subr.mxu0 %v10452_v1  ;;  %1442 = vmatprep.subr.mxu1 %v10352_v47  ;;  %v10458_v1 = vld [vmem:[#allocation132_spill] sm:$0xff] }
 0x10b   :  { %1239 = vmatpush1.msra.mxu0 %v10453_v30  ;;  %1444 = vmatpush1.msra.mxu1 %v10354_v57  ;;  %v10459_v30 = vld [vmem:[#allocation134_spill] sm:$0xff]  ;;  %v225_v28 = vld [vmem:[#allocation10 + $0x98] sm:$0xff] }
 0x10c   :  { %1243 = vmatprep.subr.mxu0 %v10454_v45  ;;  %1446 = vmatprep.subr.mxu1 %v10356_v52  ;;  %v10460_v45 = vld [vmem:[#allocation138_spill] sm:$0xff]  ;;  %v10506_v52 = vld [vmem:[#allocation228_spill] sm:$0xff] }
 0x10d   :  { %1247 = vmatpush1.msra.mxu0 %v10455_v32  ;;  %1448 = vmatpush1.msra.mxu1 %v10358_v61  ;;  %v10461_v32 = vld [vmem:[#allocation141_spill] sm:$0xff]  ;;  %v10502_v61 = vld [vmem:[#allocation224_spill] sm:$0xff]  ;;  %v227_v57 = vld [vmem:[#allocation10 + $0xa8] sm:$0xff] }
 0x10e   :  { %1251 = vmatprep.subr.mxu0 %v10456_v31  ;;  %1450 = vmatprep.subr.mxu1 %v10360_v43  ;;  %v10462_v31 = vld [vmem:[#allocation147_spill] sm:$0xff]  ;;  %v7147_v26 = vand.u32 4294901760, %v227_v57 }
 0x10f   :  { %1255 = vmatpush1.msra.mxu0 %v10457_v11  ;;  %1452 = vmatpush1.msra.mxu1 %v10362_v17  ;;  %v10463_v11 = vld [vmem:[#allocation150_spill] sm:$0xff]  ;;  %v229_v17 = vld [vmem:[#allocation10 + $0xb8] sm:$0xff] }
 0x110   :  { %1259 = vmatprep.subr.mxu0 %v10458_v1  ;;  %1454 = vmatprep.subr.mxu1 %v10364_v38  ;;  %v10464_v1 = vld [vmem:[#allocation156_spill] sm:$0xff]  ;;  %10518 = vst [vmem:[#allocation303_spill] sm:$0xff] %v7147_v26  ;;  %v7198_v33 = vsub.f32 %v227_v57, %v7147_v26 }
 0x111   :  { %1263 = vmatpush1.msra.mxu0 %v10459_v30  ;;  %1456 = vmatpush1.msra.mxu1 %v10366_v6  ;;  %v10465_v30 = vld [vmem:[#allocation160_spill] sm:$0xff] }
 0x112   :  { %1267 = vmatprep.subr.mxu0 %v10460_v45  ;;  %1458 = vmatprep.subr.mxu1 %v10368_v58  ;;  %v10466_v45 = vld [vmem:[#allocation164_spill] sm:$0xff]  ;;  %10536 = vst [vmem:[#allocation317_spill] sm:$0xff] %v7198_v33 }
 0x113   :  { %1271 = vmatpush1.msra.mxu0 %v10461_v32  ;;  %1460 = vmatpush1.msra.mxu1 %v10370_v42  ;;  %v10467_v32 = vld [vmem:[#allocation166_spill] sm:$0xff]  ;;  %v10490_v42 = vld [vmem:[#allocation211_spill] sm:$0xff]  ;;  %v10498_v38 = vld [vmem:[#allocation220_spill] sm:$0xff] }
 0x114   :  { %1275 = vmatprep.subr.mxu0 %v10462_v31  ;;  %1462 = vmatprep.subr.mxu1 %v10372_v10  ;;  %v10468_v31 = vld [vmem:[#allocation170_spill] sm:$0xff] }
 0x115   :  { %1279 = vmatpush1.msra.mxu0 %v10463_v11  ;;  %1464 = vmatpush1.msra.mxu1 %v10374_v63  ;;  %v10469_v11 = vld [vmem:[#allocation173_spill] sm:$0xff]  ;;  %v10484_v63 = vld [vmem:[#allocation202_spill] sm:$0xff] }
 0x116   :  { %1283 = vmatprep.subr.mxu0 %v10464_v1  ;;  %1466 = vmatprep.subr.mxu1 %v10376_v51  ;;  %v237_v1 = vld [vmem:[#allocation10 + $0xf8] sm:$0xff]  ;;  %v232_v51 = vld [vmem:[#allocation10 + $0xd0] sm:$0xff] }
 0x117   :  { %1287 = vmatpush2.msra.mxu0 %v10465_v30  ;;  %1468 = vmatpush1.msra.mxu1 %v10378_v49  ;;  %v10470_v30 = vld [vmem:[#allocation179_spill] sm:$0xff]  ;;  %v10482_v49 = vld [vmem:[#allocation126_spill] sm:$0xff]  ;;  %v7094_v6 = vand.u32 4294901760, %v232_v51 }
 0x118   :  { %1291 = vmatprep.subr.mxu0 %v10466_v45  ;;  %1470 = vmatprep.subr.mxu1 %v10380_v2  ;;  %v10472_v45 = vld [vmem:[#allocation182_spill] sm:$0xff]  ;;  %v10474_v2 = vld [vmem:[#allocation188_spill] sm:$0xff] }
 0x119   :  { %1295 = vmatpush2.msra.mxu0 %v10467_v32  ;;  %1472 = vmatpush1.msra.mxu1 %v10382_v44  ;;  %v236_v32 = vld [vmem:[#allocation10 + $0xf0] sm:$0xff]  ;;  %v10478_v44 = vld [vmem:[#allocation196_spill] sm:$0xff]  ;;  %10493 = vst [vmem:[#allocation289_spill] sm:$0xff] %v7094_v6 }
 0x11a   :  { %1299 = vmatprep.subr.mxu0 %v10468_v31  ;;  %1474 = vmatprep.subr.mxu1 %v10384_v22  ;;  %v7069_v31 = vand.u32 4294901760, %v237_v1  ;;  %v235_v22 = vld [vmem:[#allocation10 + $0xe8] sm:$0xff] }
 0x11b   :  { %1303 = vmatpush2.msra.mxu0 %v10469_v11  ;;  %1476 = vmatpush1.msra.mxu1 %v10386_v39  ;;  %v10476_v11 = vld [vmem:[#allocation192_spill] sm:$0xff] }
 0x11c   :  { %1307 = vmatprep.subr.mxu0 %v10470_v30  ;;  %1478 = vmatprep.subr.mxu1 %v10471_v16  ;;  %10475 = vst [vmem:[#allocation283_spill] sm:$0xff] %v7069_v31  ;;  %v10477_v39 = vld [vmem:[#allocation120_spill] sm:$0xff]  ;;  %v10479_v30 = vld [vmem:[#allocation123_spill] sm:$0xff]  ;;  %v7075_v16 = vand.u32 4294901760, %v236_v32 }
 0x11d   :  { %1311 = vmatpush2.msra.mxu0 %v10472_v45  ;;  %1480 = vmatpush1.msra.mxu1 %v10473_v25  ;;  %v234_v45 = vld [vmem:[#allocation10 + $0xe0] sm:$0xff]  ;;  %v10481_v25 = vld [vmem:[#allocation198_spill] sm:$0xff] }
 0x11e   :  { %1315 = vmatprep.subr.mxu0 %v10474_v2  ;;  %1482 = vmatprep.subr.mxu1 %v10392_v5  ;;  %10480 = vst [vmem:[#allocation284_spill] sm:$0xff] %v7075_v16  ;;  %v7079_v2 = vand.u32 4294901760, %v235_v22  ;;  %v233_v5 = vld [vmem:[#allocation10 + $0xd8] sm:$0xff]  ;;  %v7088_v10 = vand.u32 4294901760, %v234_v45 }
 0x11f   :  { %1319 = vmatpush2.msra.mxu0 %v10476_v11  ;;  %1484 = vmatpush2.msra.mxu1 %v10477_v39  ;;  %v10485_v11 = vld [vmem:[#allocation130_spill] sm:$0xff]  ;;  %v7084_v39 = vsub.f32 %v237_v1, %v7069_v31  ;;  %v7092_v58 = vand.u32 4294901760, %v233_v5 }
 0x120   :  { %1323 = vmatprep.subr.mxu0 %v10478_v44  ;;  %1486 = vmatprep.subr.mxu1 %v10479_v30  ;;  %10483 = vst [vmem:[#allocation285_spill] sm:$0xff] %v7079_v2  ;;  %v10487_v44 = vld [vmem:[#allocation205_spill] sm:$0xff]  ;;  %v10488_v30 = vld [vmem:[#allocation135_spill] sm:$0xff]  ;;  %10489 = vst [vmem:[#allocation287_spill] sm:$0xff] %v7088_v10 }
 0x121   :  { %1327 = vmatpush2.msra.mxu0 %v10481_v25  ;;  %1488 = vmatpush2.msra.mxu1 %v10482_v49  ;;  %10486 = vst [vmem:[#allocation286_spill] sm:$0xff] %v7084_v39  ;;  %v231_v25 = vld [vmem:[#allocation10 + $0xc8] sm:$0xff]  ;;  %v10491_v49 = vld [vmem:[#allocation139_spill] sm:$0xff]  ;;  %10492 = vst [vmem:[#allocation288_spill] sm:$0xff] %v7092_v58  ;;  %v7109_v43 = vand.u32 4294901760, %v7084_v39  ;;  %v7124_v47 = vsub.f32 %v233_v5, %v7092_v58 }
 0x122   :  { %1331 = vmatprep.subr.mxu0 %v10484_v63  ;;  %1490 = vmatprep.subr.mxu1 %v10485_v11  ;;  %v230_v63 = vld [vmem:[#allocation10 + $0xc0] sm:$0xff]  ;;  %v7097_v11 = vsub.f32 %v236_v32, %v7075_v16  ;;  %v10495_v1 = vld [vmem:[#allocation214_spill] sm:$0xff]  ;;  %v10503_v32 = vld [vmem:[#allocation152_spill] sm:$0xff] }
 0x123   :  { %1335 = vmatpush2.msra.mxu0 %v10487_v44  ;;  %1492 = vmatpush2.msra.mxu1 %v10488_v30  ;;  %v10496_v44 = vld [vmem:[#allocation144_spill] sm:$0xff]  ;;  %v7102_v30 = vsub.f32 %v235_v22, %v7079_v2  ;;  %10501 = vst [vmem:[#allocation293_spill] sm:$0xff] %v7109_v43  ;;  %v7116_v22 = vsub.f32 %v234_v45, %v7088_v10  ;;  %10509 = vst [vmem:[#allocation297_spill] sm:$0xff] %v7124_v47  ;;  %v7131_v45 = vand.u32 4294901760, %v229_v17 }
 0x124   :  { %1339 = vmatprep.subr.mxu0 %v10490_v42  ;;  %1494 = vmatprep.subr.mxu1 %v10491_v49  ;;  %10494 = vst [vmem:[#allocation290_spill] sm:$0xff] %v7097_v11  ;;  %v10499_v42 = vld [vmem:[#allocation148_spill] sm:$0xff]  ;;  %v7106_v49 = vand.u32 4294901760, %v231_v25  ;;  %v1702_v5 = vsub.f32 %v7084_v39, %v7109_v43 }
 0x125   :  { %1343 = vmatpush2.msra.mxu0 %v10495_v1  ;;  %1496 = vmatpush2.msra.mxu1 %v10496_v44  ;;  %10497 = vst [vmem:[#allocation291_spill] sm:$0xff] %v7102_v30  ;;  %v7113_v1 = vand.u32 4294901760, %v230_v63  ;;  %v228_v44 = vld [vmem:[#allocation10 + $0xb0] sm:$0xff]  ;;  %10505 = vst [vmem:[#allocation295_spill] sm:$0xff] %v7116_v22  ;;  %v7174_v13 = vsub.f32 %v229_v17, %v7131_v45  ;;  %v10545_v43 = vld [vmem:[#allocation268_spill] sm:$0xff] }
 0x126   :  { %1347 = vmatprep.subr.mxu0 %v10498_v38  ;;  %1498 = vmatprep.subr.mxu1 %v10499_v42  ;;  %10500 = vst [vmem:[#allocation292_spill] sm:$0xff] %v7106_v49  ;;  %v10507_v38 = vld [vmem:[#allocation155_spill] sm:$0xff]  ;;  %v7121_v42 = vand.u32 4294901760, %v7097_v11  ;;  %10512 = vst [vmem:[#allocation299_spill] sm:$0xff] %v7131_v45  ;;  %v7140_v34 = vand.u32 4294901760, %v228_v44  ;;  %v7178_v8 = vand.u32 4294901760, %v1702_v5 }
 0x127   :  { %1351 = vmatpush2.msra.mxu0 %v10502_v61  ;;  %1500 = vmatpush2.msra.mxu1 %v10503_v32  ;;  %10504 = vst [vmem:[#allocation294_spill] sm:$0xff] %v7113_v1  ;;  %v7127_v61 = vsub.f32 %v232_v51, %v7094_v6  ;;  %v10511_v32 = vld [vmem:[#allocation230_spill] sm:$0xff]  ;;  %v226_v51 = vld [vmem:[#allocation10 + $0xa0] sm:$0xff]  ;;  %v7153_v21 = vsub.f32 %v230_v63, %v7113_v1  ;;  %10527 = vst [vmem:[#allocation310_spill] sm:$0xff] %v7174_v13 }
 0x128   :  { %1355 = vmatprep.subr.mxu0 %v10506_v52  ;;  %1502 = vmatprep.subr.mxu1 %v10507_v38  ;;  %10508 = vst [vmem:[#allocation296_spill] sm:$0xff] %v7121_v42  ;;  %v7134_v52 = vand.u32 4294901760, %v7102_v30  ;;  %v10514_v38 = vld [vmem:[#allocation234_spill] sm:$0xff]  ;;  %10515 = vst [vmem:[#allocation301_spill] sm:$0xff] %v7140_v34  ;;  %v7186_v7 = vsub.f32 %v228_v44, %v7140_v34 }
 0x129   :  { %10510 = vst [vmem:[#allocation298_spill] sm:$0xff] %v7127_v61  ;;  %1359 = vmatpush2.msra.mxu0 %v10511_v32  ;;  %1504 = vmatpush2.msra.mxu1 %v10413_v60  ;;  %v7143_v32 = vsub.f32 %v231_v25, %v7106_v49  ;;  %v10517_v60 = vld [vmem:[#allocation237_spill] sm:$0xff]  ;;  %10520 = vst [vmem:[#allocation305_spill] sm:$0xff] %v7153_v21  ;;  %v1708_v25 = vsub.f32 %v7097_v11, %v7121_v42  ;;  %v7195_v5 = vand.u32 4294901760, %v7153_v21 }
 0x12a   :  { %10513 = vst [vmem:[#allocation300_spill] sm:$0xff] %v7134_v52  ;;  %1363 = vmatprep.subr.mxu0 %v10514_v38  ;;  %1506 = vmatprep.subr.mxu1 %v10415_v29  ;;  %v7150_v38 = vand.u32 4294901760, %v7116_v22  ;;  %v224_v29 = vld [vmem:[#allocation10 + $0x90] sm:$0xff]  ;;  %v1714_v63 = vsub.f32 %v7102_v30, %v7134_v52  ;;  %10529 = vst [vmem:[#allocation311_spill] sm:$0xff] %v7178_v8  ;;  %v10540_v42 = vld [vmem:[#allocation261_spill] sm:$0xff] }
 0x12b   :  { %10516 = vst [vmem:[#allocation302_spill] sm:$0xff] %v7143_v32  ;;  %1367 = vmatpush2.msra.mxu0 %v10517_v60  ;;  %1508 = vmatpush2.msra.mxu1 %v10417_v27  ;;  %v7160_v60 = vand.u32 4294901760, %v7124_v47  ;;  %v7163_v27 = vand.u32 4294901760, %v7127_v61  ;;  %10532 = vst [vmem:[#allocation314_spill] sm:$0xff] %v7186_v7  ;;  %v10537_v52 = vld [vmem:[#allocation259_spill] sm:$0xff]  ;;  %v7202_v44 = vand.u32 4294901760, %v1708_v25 }
 0x12c   :  { %10519 = vst [vmem:[#allocation304_spill] sm:$0xff] %v7150_v38  ;;  %1371 = vmatprep.subr.mxu0 %v10521_v20  ;;  %1510 = vmatprep.subr.mxu1 %v10419_v36  ;;  %v7169_v20 = vand.u32 4294901760, %v226_v51  ;;  %v7171_v36 = vand.u32 4294901760, %v225_v28  ;;  %v1720_v17 = vsub.f32 %v7116_v22, %v7150_v38  ;;  %10535 = vst [vmem:[#allocation316_spill] sm:$0xff] %v7195_v5  ;;  %v7208_v38 = vand.u32 4294901760, %v222_v14  ;;  %v215_v30 = vld [vmem:[#allocation10 + $0x48] sm:$0xff] }
 0x12d   :  { %10522 = vst [vmem:[#allocation306_spill] sm:$0xff] %v7160_v60  ;;  %10523 = vst [vmem:[#allocation307_spill] sm:$0xff] %v7163_v27  ;;  %1375 = vmatpush2.msra.mxu0 %v10524_v15  ;;  %1512 = vmatpush2.msra.mxu1 %v10421_v59  ;;  %v7180_v15 = vand.u32 4294901760, %v224_v29  ;;  %v7183_v59 = vand.u32 4294901760, %v7143_v32  ;;  %v7212_v57 = vand.u32 4294901760, %v1714_v63  ;;  %v7230_v63 = vand.u32 4294901760, %v7186_v7 }
 0x12e   :  { %10525 = vst [vmem:[#allocation308_spill] sm:$0xff] %v7169_v20  ;;  %10526 = vst [vmem:[#allocation309_spill] sm:$0xff] %v7171_v36  ;;  %1379 = vmatprep.subr.mxu0 %v10528_v9  ;;  %1514 = vmatprep.subr.mxu1 %v10423_v48  ;;  %v7192_v9 = vand.u32 4294901760, %v223_v19  ;;  %v221_v48 = vld [vmem:[#allocation10 + $0x78] sm:$0xff]  ;;  %v7218_v25 = vsub.f32 %v226_v51, %v7169_v20  ;;  %v10549_v51 = vld [vmem:[#allocation271_spill] sm:$0xff] }
 0x12f   :  { %10530 = vst [vmem:[#allocation312_spill] sm:$0xff] %v7180_v15  ;;  %10531 = vst [vmem:[#allocation313_spill] sm:$0xff] %v7183_v59  ;;  %1383 = vmatpush2.msra.mxu0 %v10533_v4  ;;  %1516 = vmatpush2.msra.mxu1 %v10424_v24  ;;  %v1726_v4 = vsub.f32 %v7124_v47, %v7160_v60  ;;  %v1732_v24 = vsub.f32 %v7127_v61, %v7163_v27  ;;  %v219_v27 = vld [vmem:[#allocation10 + $0x68] sm:$0xff]  ;;  %v216_v61 = vld [vmem:[#allocation10 + $0x50] sm:$0xff] }
 0x130   :  { %10534 = vst [vmem:[#allocation315_spill] sm:$0xff] %v7192_v9  ;;  %1387 = vmatprep.subr.mxu0 %v10537_v52  ;;  %1518 = vmatprep.subr.mxu1 %v10425_v41  ;;  %10538 = vst [vmem:[#allocation318_spill] sm:$0xff] %v7202_v44  ;;  %v7215_v52 = vand.u32 4294901760, %v7174_v13  ;;  %v220_v41 = vld [vmem:[#allocation10 + $0x70] sm:$0xff]  ;;  %v7221_v60 = vsub.f32 %v225_v28, %v7171_v36  ;;  %v7233_v62 = vsub.f32 %v224_v29, %v7180_v15 }
 0x131   :  { %10539 = vst [vmem:[#allocation319_spill] sm:$0xff] %v7208_v38  ;;  %1391 = vmatpush2.msra.mxu0 %v10540_v42  ;;  %1520 = vmatpush2.msra.mxu1 %v10426_v54  ;;  %10541 = vst [vmem:[#allocation320_spill] sm:$0xff] %v7212_v57  ;;  %v1738_v42 = vsub.f32 %v7143_v32, %v7183_v59  ;;  %v7227_v54 = vand.u32 4294901760, %v221_v48  ;;  %v7237_v28 = vand.u32 4294901760, %v1720_v17  ;;  %v7249_v29 = vand.u32 4294901760, %v1726_v4  ;;  %v218_v17 = vld [vmem:[#allocation10 + $0x60] sm:$0xff] }
 0x132   :  { %10542 = vst [vmem:[#allocation321_spill] sm:$0xff] %v7215_v52  ;;  %10543 = vst [vmem:[#allocation322_spill] sm:$0xff] %v7218_v25  ;;  %1395 = vmatprep.subr.mxu0 %v10545_v43  ;;  %1522 = vmatprep.subr.mxu1 %v10427_v3  ;;  %v1744_v43 = vsub.f32 %v7153_v21, %v7195_v5  ;;  %v7242_v3 = vand.u32 4294901760, %v7198_v33  ;;  %v7245_v59 = vsub.f32 %v223_v19, %v7192_v9  ;;  %v10558_v5 = vld [vmem:[#allocation278_spill] sm:$0xff] }
 0x133   :  { %10544 = vst [vmem:[#allocation323_spill] sm:$0xff] %v7221_v60  ;;  %10546 = vst [vmem:[#allocation324_spill] sm:$0xff] %v7227_v54  ;;  %1399 = vmatpush2.msra.mxu0 %v10549_v51  ;;  %1524 = vmatpush2.msra.mxu1 %v10428_v35  ;;  %v7251_v51 = vand.u32 4294901760, %v1732_v24  ;;  %v7253_v35 = vand.u32 4294901760, %v220_v41  ;;  %v7256_v32 = vsub.f32 %v222_v14, %v7208_v38  ;;  %v10559_v21 = vld [vmem:[#allocation258_spill] sm:$0xff]  ;;  %v7265_v4 = vand.u32 4294901760, %v7218_v25 }
 0x134   :  { %10547 = vst [vmem:[#allocation325_spill] sm:$0xff] %v7230_v63  ;;  %10548 = vst [vmem:[#allocation326_spill] sm:$0xff] %v7233_v62  ;;  %1403 = vmatprep.subr.mxu0 %v10553_v56  ;;  %1526 = vmatprep.subr.mxu1 %v10429_v23  ;;  %v1750_v19 = vsub.f32 %v7174_v13, %v7215_v52  ;;  %v7262_v56 = vand.u32 4294901760, %v219_v27  ;;  %v217_v24 = vld [vmem:[#allocation10 + $0x58] sm:$0xff]  ;;  %v7268_v23 = vand.u32 4294901760, %v7221_v60  ;;  %v10563_v14 = vld [vmem:[#allocation254_spill] sm:$0xff] }
 0x135   :  { %10550 = vst [vmem:[#allocation327_spill] sm:$0xff] %v7237_v28  ;;  %10551 = vst [vmem:[#allocation328_spill] sm:$0xff] %v7242_v3  ;;  %1407 = vmatpush2.msra.mxu0 %v10558_v5  ;;  %1409 = vmatprep.mubr.f32.mxu0 %v10559_v21  ;;  %v7272_v5 = vand.u32 4294901760, %v1738_v42  ;;  %v1756_v47 = vsub.f32 %v7186_v7, %v7230_v63  ;;  %v7277_v52 = vand.u32 4294901760, %v7233_v62  ;;  %v7284_v22 = vand.u32 4294901760, %v1744_v43  ;;  %v214_v7 = vld [vmem:[#allocation10 + $0x40] sm:$0xff] }
 0x136   :  { %10552 = vst [vmem:[#allocation329_spill] sm:$0xff] %v7245_v59  ;;  %10554 = vst [vmem:[#allocation330_spill] sm:$0xff] %v7249_v29  ;;  %1528 = vmatpush2.msra.mxu1 %v10430_v37  ;;  %1411 = vmatmul.mubr.f32.vlgmr.msra.gmra.mxu0 %v10563_v14  ;;  %v7280_v13 = vsub.f32 %v221_v48, %v7227_v54  ;;  %v1762_v37 = vsub.f32 %v7198_v33, %v7242_v3  ;;  %v7288_v42 = vand.u32 4294901760, %v218_v17 }
 0x137   :  { %10555 = vst [vmem:[#allocation331_spill] sm:$0xff] %v7251_v51  ;;  %10556 = vst [vmem:[#allocation332_spill] sm:$0xff] %v7253_v35  ;;  %1530 = vmatprep.subr.mxu1 %v6567_v53  ;;  %1555 = vmatprep.subr.mxu0 %v7069_v31  ;;  %v7291_v63 = vand.u32 4294901760, %v7245_v59  ;;  %v7295_v48 = vand.u32 4294901760, %v217_v24  ;;  %v7297_v53 = vand.u32 4294901760, %v216_v61  ;;  %v7300_v43 = vand.u32 4294901760, %v7256_v32 }
 0x138   :  { %10557 = vst [vmem:[#allocation333_spill] sm:$0xff] %v7256_v32  ;;  %10560 = vst [vmem:[#allocation334_spill] sm:$0xff] %v7262_v56  ;;  %1532 = vmatpush2.msra.mxu1 %v6583_v40  ;;  %1557 = vmatpush1.msra.mxu0 %v7075_v16  ;;  %v7303_v3 = vsub.f32 %v220_v41, %v7253_v35  ;;  %v7307_v33 = vand.u32 4294901760, %v1750_v19  ;;  %v1768_v40 = vsub.f32 %v7218_v25, %v7265_v4 }
 0x139   :  { %10561 = vst [vmem:[#allocation335_spill] sm:$0xff] %v7265_v4  ;;  %10562 = vst [vmem:[#allocation336_spill] sm:$0xff] %v7268_v23  ;;  %1534 = vmatprep.subr.mxu1 %v6598_v12  ;;  %1559 = vmatprep.subr.mxu0 %v7079_v2  ;;  %v1774_v16 = vsub.f32 %v7221_v60, %v7268_v23  ;;  %v7314_v31 = vsub.f32 %v219_v27, %v7262_v56  ;;  %v7318_v41 = vand.u32 4294901760, %v1756_v47  ;;  %v213_v2 = vld [vmem:[#allocation10 + $0x38] sm:$0xff]  ;;  %v212_v23 = vld [vmem:[#allocation10 + $0x30] sm:$0xff] }
 0x13a   :  { %10564 = vst [vmem:[#allocation337_spill] sm:$0xff] %v7272_v5  ;;  %10565 = vst [vmem:[#allocation338_spill] sm:$0xff] %v7277_v52  ;;  %1536 = vmatpush2.msra.mxu1 %v6612_v55  ;;  %1561 = vmatpush1.msra.mxu0 %v7088_v10  ;;  %v1780_v12 = vsub.f32 %v7233_v62, %v7277_v52  ;;  %v7322_v19 = vand.u32 4294901760, %v215_v30  ;;  %v7325_v4 = vand.u32 4294901760, %v7280_v13  ;;  %v7329_v27 = vand.u32 4294901760, %v1762_v37  ;;  %v211_v37 = vld [vmem:[#allocation10 + $0x28] sm:$0xff] }
 0x13b   :  { %10566 = vst [vmem:[#allocation339_spill] sm:$0xff] %v7280_v13  ;;  %10567 = vst [vmem:[#allocation340_spill] sm:$0xff] %v7284_v22  ;;  %1538 = vmatprep.subr.mxu1 %v6628_v50  ;;  %1563 = vmatprep.subr.mxu0 %v7092_v58  ;;  %v1786_v55 = vsub.f32 %v7245_v59, %v7291_v63  ;;  %v7333_v47 = vand.u32 4294901760, %v214_v7  ;;  %v7336_v52 = vsub.f32 %v218_v17, %v7288_v42  ;;  %v207_v60 = vld [vmem:[#allocation10 + $0x8] sm:$0xff] }
 0x13c   :  { %10568 = vst [vmem:[#allocation341_spill] sm:$0xff] %v7288_v42  ;;  %10569 = vst [vmem:[#allocation342_spill] sm:$0xff] %v7291_v63  ;;  %1540 = vmatpush2.msra.mxu1 %v6652_v46  ;;  %1565 = vmatpush1.msra.mxu0 %v7094_v6  ;;  %v1792_v50 = vsub.f32 %v7256_v32, %v7300_v43  ;;  %v7343_v62 = vand.u32 4294901760, %v7303_v3  ;;  %v7346_v58 = vsub.f32 %v217_v24, %v7295_v48  ;;  %v209_v32 = vld [vmem:[#allocation10 + $0x18] sm:$0xff]  ;;  %v208_v6 = vld [vmem:[#allocation10 + $0x10] sm:$0xff] }
 0x13d   :  { %10570 = vst [vmem:[#allocation343_spill] sm:$0xff] %v7295_v48  ;;  %10571 = vst [vmem:[#allocation344_spill] sm:$0xff] %v7297_v53  ;;  %v7349_v63 = vsub.f32 %v216_v61, %v7297_v53  ;;  %1542 = vmatprep.subr.mxu1 %v6669_v18  ;;  %1567 = vmatprep.subr.mxu0 %v7106_v49  ;;  %v7353_v17 = vand.u32 4294901760, %v1768_v40  ;;  %v7355_v46 = vand.u32 4294901760, %v1774_v16  ;;  %v7357_v59 = vand.u32 4294901760, %v213_v2  ;;  %v210_v40 = vld [vmem:[#allocation10 + $0x20] sm:$0xff] }
 0x13e   :  { %10572 = vst [vmem:[#allocation345_spill] sm:$0xff] %v7300_v43  ;;  %10573 = vst [vmem:[#allocation346_spill] sm:$0xff] %v7303_v3  ;;  %v7360_v43 = vand.u32 4294901760, %v7314_v31  ;;  %1544 = vmatpush2.msra.mxu1 %v6693_v0  ;;  %1546 = vmatprep.mubr.f32.mxu1 %v10559_v21  ;;  %v7364_v24 = vand.u32 4294901760, %v1780_v12  ;;  %v1798_v61 = vsub.f32 %v7280_v13, %v7325_v4  ;;  %v7368_v18 = vand.u32 4294901760, %v212_v23 }
 0x13f   :  { %10574 = vst [vmem:[#allocation347_spill] sm:$0xff] %v7307_v33  ;;  %10575 = vst [vmem:[#allocation348_spill] sm:$0xff] %v7314_v31  ;;  %v7371_v16 = vsub.f32 %v215_v30, %v7322_v19  ;;  %1569 = vmatpush1.msra.mxu0 %v7113_v1  ;;  %1548 = vmatmul.mubr.f32.vlgmr.msra.gmra.mxu1 %v10563_v14  ;;  %v7375_v49 = vand.u32 4294901760, %v1786_v55  ;;  %v7377_v0 = vand.u32 4294901760, %v211_v37  ;;  %v7380_v12 = vand.u32 4294901760, %v7336_v52 }
 0x140   :  { %10576 = vst [vmem:[#allocation349_spill] sm:$0xff] %v7318_v41  ;;  %10577 = vst [vmem:[#allocation350_spill] sm:$0xff] %v7322_v19  ;;  %1571 = vmatprep.subr.mxu0 %v7131_v45  ;;  %1704 = vmatprep.subr.mxu1 %v7178_v8  ;;  %v7387_v30 = vand.u32 4294901760, %v1792_v50  ;;  %v1804_v13 = vsub.f32 %v7303_v3, %v7343_v62  ;;  %v7392_v55 = vand.u32 4294901760, %v7346_v58  ;;  %v7395_v1 = vand.u32 4294901760, %v7349_v63  ;;  %v206_v45 = vld [vmem:[#allocation10] sm:$0xff] }
 0x141   :  { %10578 = vst [vmem:[#allocation351_spill] sm:$0xff] %v7325_v4  ;;  %10579 = vst [vmem:[#allocation352_spill] sm:$0xff] %v7329_v27  ;;  %v7383_v4 = vsub.f32 %v214_v7, %v7333_v47  ;;  %1573 = vmatpush1.msra.mxu0 %v7140_v34  ;;  %1710 = vmatpush1.msra.mxu1 %v7202_v44  ;;  %v1810_v7 = vsub.f32 %v7314_v31, %v7360_v43  ;;  %v7401_v8 = vand.u32 4294901760, %v210_v40 }
 0x142   :  { %10580 = vst [vmem:[#allocation353_spill] sm:$0xff] %v7333_v47  ;;  %10581 = vst [vmem:[#allocation354_spill] sm:$0xff] %v7336_v52  ;;  %v7403_v50 = vand.u32 4294901760, %v209_v32  ;;  %1575 = vmatprep.subr.mxu0 %v7147_v26  ;;  %1716 = vmatprep.subr.mxu1 %v7212_v57  ;;  %v7410_v3 = vand.u32 4294901760, %v1798_v61  ;;  %v7412_v34 = vand.u32 4294901760, %v208_v6  ;;  %v7415_v44 = vand.u32 4294901760, %v7371_v16 }
 0x143   :  { %10582 = vst [vmem:[#allocation355_spill] sm:$0xff] %v7343_v62  ;;  %10583 = vst [vmem:[#allocation356_spill] sm:$0xff] %v7346_v58  ;;  %v7406_v62 = vsub.f32 %v213_v2, %v7357_v59  ;;  %1577 = vmatpush1.msra.mxu0 %v7169_v20  ;;  %1722 = vmatpush1.msra.mxu1 %v7237_v28  ;;  %v1816_v2 = vsub.f32 %v7336_v52, %v7380_v12  ;;  %v7424_v26 = vand.u32 4294901760, %v207_v60  ;;  %v269_v57 = vld [vmem:[#allocation10 + $0x1f8] sm:$0xff] }
 0x144   :  { %10584 = vst [vmem:[#allocation357_spill] sm:$0xff] %v7349_v63  ;;  %10585 = vst [vmem:[#allocation358_spill] sm:$0xff] %v7353_v17  ;;  %v7427_v61 = vand.u32 4294901760, %v7383_v4  ;;  %v7430_v31 = vsub.f32 %v211_v37, %v7377_v0  ;;  %1579 = vmatprep.subr.mxu0 %v7171_v36  ;;  %1728 = vmatprep.subr.mxu1 %v7249_v29  ;;  %v1822_v28 = vsub.f32 %v7346_v58, %v7392_v55  ;;  %v268_v29 = vld [vmem:[#allocation10 + $0x1f0] sm:$0xff] }
 0x145   :  { %10586 = vst [vmem:[#allocation359_spill] sm:$0xff] %v7355_v46  ;;  %10587 = vst [vmem:[#allocation360_spill] sm:$0xff] %v7357_v59  ;;  %v7440_v20 = vand.u32 4294901760, %v206_v45  ;;  %1581 = vmatpush1.msra.mxu0 %v7180_v15  ;;  %1734 = vmatpush1.msra.mxu1 %v7251_v51  ;;  %v7444_v37 = vand.u32 4294901760, %v1810_v7  ;;  %v7447_v36 = vand.u32 4294901760, %v7406_v62  ;;  %v7459_v51 = vand.u32 4294901760, %v269_v57 }
 0x146   :  { %10588 = vst [vmem:[#allocation361_spill] sm:$0xff] %v7360_v43  ;;  %10589 = vst [vmem:[#allocation362_spill] sm:$0xff] %v7364_v24  ;;  %v7418_v43 = vsub.f32 %v212_v23, %v7368_v18  ;;  %v7434_v23 = vand.u32 4294901760, %v1804_v13  ;;  %v7450_v13 = vsub.f32 %v210_v40, %v7401_v8  ;;  %1583 = vmatprep.subr.mxu0 %v7192_v9  ;;  %1740 = vmatprep.subr.mxu1 %v7272_v5  ;;  %v267_v15 = vld [vmem:[#allocation10 + $0x1e8] sm:$0xff] }
 0x147   :  { %10590 = vst [vmem:[#allocation363_spill] sm:$0xff] %v7368_v18  ;;  %10591 = vst [vmem:[#allocation364_spill] sm:$0xff] %v7371_v16  ;;  %1585 = vmatpush1.msra.mxu0 %v7208_v38  ;;  %1746 = vmatpush1.msra.mxu1 %v7284_v22  ;;  %v1840_v40 = vsub.f32 %v7383_v4, %v7427_v61  ;;  %v7474_v5 = vand.u32 4294901760, %v7430_v31  ;;  %v7485_v22 = vand.u32 4294901760, %v268_v29 }
 0x148   :  { %10592 = vst [vmem:[#allocation365_spill] sm:$0xff] %v7375_v49  ;;  %10593 = vst [vmem:[#allocation366_spill] sm:$0xff] %v7377_v0  ;;  %v7462_v7 = vand.u32 4294901760, %v7418_v43  ;;  %1587 = vmatprep.subr.mxu0 %v7227_v54  ;;  %1752 = vmatprep.subr.mxu1 %v7307_v33  ;;  %v7488_v9 = vsub.f32 %v206_v45, %v7440_v20  ;;  %v264_v54 = vld [vmem:[#allocation10 + $0x1d0] sm:$0xff] }
 0x149   :  { %10594 = vst [vmem:[#allocation367_spill] sm:$0xff] %v7380_v12  ;;  %10595 = vst [vmem:[#allocation368_spill] sm:$0xff] %v7383_v4  ;;  %v1828_v12 = vsub.f32 %v7349_v63, %v7395_v1  ;;  %v7465_v63 = vsub.f32 %v208_v6, %v7412_v34  ;;  %v7481_v6 = vand.u32 4294901760, %v1822_v28  ;;  %1589 = vmatpush1.msra.mxu0 %v7253_v35  ;;  %1758 = vmatpush1.msra.mxu1 %v7318_v41 }
 0x14a   :  { %10596 = vst [vmem:[#allocation369_spill] sm:$0xff] %v7387_v30  ;;  %10597 = vst [vmem:[#allocation370_spill] sm:$0xff] %v7392_v55  ;;  %v7453_v55 = vsub.f32 %v209_v32, %v7403_v50  ;;  %v7469_v32 = vand.u32 4294901760, %v1816_v2  ;;  %v266_v2 = vld [vmem:[#allocation10 + $0x1e0] sm:$0xff]  ;;  %v7497_v28 = vand.u32 4294901760, %v7450_v13  ;;  %1591 = vmatprep.subr.mxu0 %v7262_v56  ;;  %1764 = vmatprep.subr.mxu1 %v7329_v27  ;;  %v263_v56 = vld [vmem:[#allocation10 + $0x1c8] sm:$0xff] }
 0x14b   :  { %10598 = vst [vmem:[#allocation371_spill] sm:$0xff] %v7395_v1  ;;  %10599 = vst [vmem:[#allocation372_spill] sm:$0xff] %v7401_v8  ;;  %v1834_v1 = vsub.f32 %v7371_v16, %v7415_v44  ;;  %v7483_v38 = vand.u32 4294901760, %v1828_v12  ;;  %v265_v12 = vld [vmem:[#allocation10 + $0x1d8] sm:$0xff]  ;;  %v1852_v41 = vsub.f32 %v7418_v43, %v7462_v7  ;;  %v7512_v35 = vsub.f32 %v269_v57, %v7459_v51 }
 0x14c   :  { %10600 = vst [vmem:[#allocation373_spill] sm:$0xff] %v7403_v50  ;;  %10601 = vst [vmem:[#allocation374_spill] sm:$0xff] %v7406_v62  ;;  %v7500_v33 = vand.u32 4294901760, %v7453_v55  ;;  %1593 = vmatpush1.msra.mxu0 %v7288_v42  ;;  %1770 = vmatpush1.msra.mxu1 %v7353_v17  ;;  %v1858_v27 = vsub.f32 %v7430_v31, %v7474_v5  ;;  %v7527_v57 = vand.u32 4294901760, %v265_v12  ;;  %v7529_v42 = vand.u32 4294901760, %v264_v54  ;;  %v262_v17 = vld [vmem:[#allocation10 + $0x1c0] sm:$0xff] }
 0x14d   :  { %10602 = vst [vmem:[#allocation375_spill] sm:$0xff] %v7410_v3  ;;  %10603 = vst [vmem:[#allocation376_spill] sm:$0xff] %v7412_v34  ;;  %v7504_v45 = vand.u32 4294901760, %v1834_v1  ;;  %v7520_v1 = vand.u32 4294901760, %v266_v2  ;;  %1595 = vmatprep.subr.mxu0 %v7295_v48  ;;  %1776 = vmatprep.subr.mxu1 %v7355_v46  ;;  %v1864_v46 = vsub.f32 %v7450_v13, %v7497_v28 }
 0x14e   :  { %10604 = vst [vmem:[#allocation377_spill] sm:$0xff] %v7415_v44  ;;  %10605 = vst [vmem:[#allocation378_spill] sm:$0xff] %v7418_v43  ;;  %v7477_v44 = vsub.f32 %v207_v60, %v7424_v26  ;;  %v1846_v60 = vsub.f32 %v7406_v62, %v7447_v36  ;;  %v7516_v62 = vand.u32 4294901760, %v1840_v40  ;;  %v7532_v40 = vand.u32 4294901760, %v7488_v9  ;;  %1597 = vmatpush1.msra.mxu0 %v7297_v53  ;;  %v261_v43 = vld [vmem:[#allocation10 + $0x1b8] sm:$0xff] }
 0x14f   :  { %10606 = vst [vmem:[#allocation379_spill] sm:$0xff] %v7424_v26  ;;  %10607 = vst [vmem:[#allocation380_spill] sm:$0xff] %v7427_v61  ;;  %v7494_v61 = vand.u32 4294901760, %v267_v15  ;;  %1782 = vmatpush1.msra.mxu1 %v7364_v24  ;;  %v1870_v48 = vsub.f32 %v7453_v55, %v7500_v33  ;;  %1599 = vmatprep.subr.mxu0 %v7322_v19  ;;  %v7554_v24 = vand.u32 4294901760, %v263_v56 }
 0x150   :  { %10608 = vst [vmem:[#allocation381_spill] sm:$0xff] %v7430_v31  ;;  %10609 = vst [vmem:[#allocation382_spill] sm:$0xff] %v7434_v23  ;;  %v7539_v31 = vand.u32 4294901760, %v1846_v60  ;;  %1788 = vmatprep.subr.mxu1 %v7375_v49  ;;  %1601 = vmatpush1.msra.mxu0 %v7333_v47  ;;  %v7565_v49 = vand.u32 4294901760, %v262_v17  ;;  %v7568_v19 = vsub.f32 %v266_v2, %v7520_v1  ;;  %v7574_v47 = vand.u32 4294901760, %v261_v43 }
 0x151   :  { %10610 = vst [vmem:[#allocation383_spill] sm:$0xff] %v7440_v20  ;;  %10611 = vst [vmem:[#allocation384_spill] sm:$0xff] %v7444_v37  ;;  %v7546_v4 = vsub.f32 %v267_v15, %v7494_v61  ;;  %1794 = vmatpush1.msra.mxu1 %v7387_v30  ;;  %v7561_v15 = vand.u32 4294901760, %v1858_v27  ;;  %1603 = vmatprep.subr.mxu0 %v7357_v59  ;;  %v259_v30 = vld [vmem:[#allocation10 + $0x1a8] sm:$0xff]  ;;  %v7584_v2 = vand.u32 4294901760, %v1864_v46  ;;  %v7586_v59 = vand.u32 4294901760, %v1870_v48 }
 0x152   :  { %10612 = vst [vmem:[#allocation385_spill] sm:$0xff] %v7447_v36  ;;  %10613 = vst [vmem:[#allocation386_spill] sm:$0xff] %v7450_v13  ;;  %v7509_v36 = vand.u32 4294901760, %v7465_v63  ;;  %1800 = vmatprep.subr.mxu1 %v7410_v3  ;;  %1605 = vmatpush1.msra.mxu0 %v7368_v18  ;;  %v257_v48 = vld [vmem:[#allocation10 + $0x198] sm:$0xff]  ;;  %v7603_v18 = vsub.f32 %v263_v56, %v7554_v24 }
 0x153   :  { %10614 = vst [vmem:[#allocation387_spill] sm:$0xff] %v7453_v55  ;;  %10615 = vst [vmem:[#allocation388_spill] sm:$0xff] %v7459_v51  ;;  %1806 = vmatpush1.msra.mxu1 %v7434_v23  ;;  %v7589_v3 = vand.u32 4294901760, %v7546_v4  ;;  %1607 = vmatprep.subr.mxu0 %v7377_v0  ;;  %v7609_v0 = vand.u32 4294901760, %v259_v30 }
 0x154   :  { %10616 = vst [vmem:[#allocation389_spill] sm:$0xff] %v7462_v7  ;;  %10617 = vst [vmem:[#allocation390_spill] sm:$0xff] %v7465_v63  ;;  %v7523_v7 = vand.u32 4294901760, %v7477_v44  ;;  %v1876_v60 = vsub.f32 %v7465_v63, %v7509_v36  ;;  %1812 = vmatprep.subr.mxu1 %v7444_v37  ;;  %1609 = vmatpush1.msra.mxu0 %v7401_v8  ;;  %v256_v37 = vld [vmem:[#allocation10 + $0x190] sm:$0xff] }
 0x155   :  { %10618 = vst [vmem:[#allocation391_spill] sm:$0xff] %v7469_v32  ;;  %10619 = vst [vmem:[#allocation392_spill] sm:$0xff] %v7474_v5  ;;  %v7535_v5 = vsub.f32 %v268_v29, %v7485_v22  ;;  %v7550_v29 = vand.u32 4294901760, %v1852_v41  ;;  %v260_v41 = vld [vmem:[#allocation10 + $0x1b0] sm:$0xff]  ;;  %1818 = vmatpush1.msra.mxu1 %v7469_v32  ;;  %1611 = vmatprep.subr.mxu0 %v7403_v50  ;;  %v7632_v50 = vand.u32 4294901760, %v257_v48 }
 0x156   :  { %10620 = vst [vmem:[#allocation393_spill] sm:$0xff] %v7477_v44  ;;  %10621 = vst [vmem:[#allocation394_spill] sm:$0xff] %v7481_v6  ;;  %v7600_v46 = vand.u32 4294901760, %v260_v41  ;;  %1824 = vmatprep.subr.mxu1 %v7481_v6  ;;  %1613 = vmatpush1.msra.mxu0 %v7412_v34  ;;  %v254_v6 = vld [vmem:[#allocation10 + $0x180] sm:$0xff]  ;;  %v7644_v34 = vand.u32 4294901760, %v256_v37 }
 0x157   :  { %10622 = vst [vmem:[#allocation395_spill] sm:$0xff] %v7483_v38  ;;  %10623 = vst [vmem:[#allocation396_spill] sm:$0xff] %v7485_v22  ;;  %v7577_v27 = vand.u32 4294901760, %v7535_v5  ;;  %1830 = vmatpush1.msra.mxu1 %v7483_v38  ;;  %1615 = vmatprep.subr.mxu0 %v7424_v26  ;;  %v7647_v38 = vand.u32 4294901760, %v7603_v18 }
 0x158   :  { %10624 = vst [vmem:[#allocation397_spill] sm:$0xff] %v7488_v9  ;;  %10625 = vst [vmem:[#allocation398_spill] sm:$0xff] %v7494_v61  ;;  %1836 = vmatprep.subr.mxu1 %v7504_v45  ;;  %1617 = vmatpush1.msra.mxu0 %v7440_v20  ;;  %v7670_v20 = vand.u32 4294901760, %v254_v6 }
 0x159   :  { %10626 = vst [vmem:[#allocation399_spill] sm:$0xff] %v7497_v28  ;;  %10627 = vst [vmem:[#allocation400_spill] sm:$0xff] %v7500_v33  ;;  %v7557_v28 = vand.u32 4294901760, %v7512_v35  ;;  %v1882_v33 = vsub.f32 %v7477_v44, %v7523_v7  ;;  %v1900_v32 = vsub.f32 %v7535_v5, %v7577_v27  ;;  %1842 = vmatpush1.msra.mxu1 %v7516_v62  ;;  %1619 = vmatprep.subr.mxu0 %v7459_v51 }
 0x15a   :  { %10628 = vst [vmem:[#allocation401_spill] sm:$0xff] %v7504_v45  ;;  %10629 = vst [vmem:[#allocation402_spill] sm:$0xff] %v7509_v36  ;;  %v1888_v36 = vsub.f32 %v7488_v9, %v7532_v40  ;;  %v7592_v9 = vsub.f32 %v264_v54, %v7529_v42  ;;  %v253_v45 = vld [vmem:[#allocation10 + $0x178] sm:$0xff]  ;;  %1848 = vmatprep.subr.mxu1 %v7539_v31  ;;  %1621 = vmatpush2.msra.mxu0 %v7485_v22 }
 0x15b   :  { %10630 = vst [vmem:[#allocation403_spill] sm:$0xff] %v7512_v35  ;;  %10631 = vst [vmem:[#allocation404_spill] sm:$0xff] %v7516_v62  ;;  %v1894_v23 = vsub.f32 %v7512_v35, %v7557_v28  ;;  %v7607_v54 = vand.u32 4294901760, %v1882_v33  ;;  %v255_v35 = vld [vmem:[#allocation10 + $0x188] sm:$0xff]  ;;  %1854 = vmatpush1.msra.mxu1 %v7550_v29  ;;  %1623 = vmatprep.subr.mxu0 %v7494_v61  ;;  %v7697_v22 = vsub.f32 %v256_v37, %v7644_v34 }
 0x15c   :  { %10632 = vst [vmem:[#allocation405_spill] sm:$0xff] %v7520_v1  ;;  %10633 = vst [vmem:[#allocation406_spill] sm:$0xff] %v7523_v7  ;;  %v7580_v7 = vsub.f32 %v265_v12, %v7527_v57  ;;  %v7596_v12 = vand.u32 4294901760, %v1876_v60  ;;  %v7612_v60 = vand.u32 4294901760, %v7568_v19  ;;  %v7619_v56 = vand.u32 4294901760, %v1888_v36  ;;  %1860 = vmatprep.subr.mxu1 %v7561_v15  ;;  %1625 = vmatpush2.msra.mxu0 %v7520_v1 }
 0x15d   :  { %10634 = vst [vmem:[#allocation407_spill] sm:$0xff] %v7527_v57  ;;  %10635 = vst [vmem:[#allocation408_spill] sm:$0xff] %v7529_v42  ;;  %v7635_v36 = vand.u32 4294901760, %v7592_v9  ;;  %v7656_v26 = vand.u32 4294901760, %v255_v35  ;;  %1866 = vmatpush1.msra.mxu1 %v7584_v2  ;;  %1627 = vmatprep.subr.mxu0 %v7527_v57  ;;  %v249_v57 = vld [vmem:[#allocation10 + $0x158] sm:$0xff] }
 0x15e   :  { %10636 = vst [vmem:[#allocation409_spill] sm:$0xff] %v7532_v40  ;;  %10637 = vst [vmem:[#allocation410_spill] sm:$0xff] %v7535_v5  ;;  %v258_v40 = vld [vmem:[#allocation10 + $0x1a0] sm:$0xff]  ;;  %v7626_v8 = vand.u32 4294901760, %v7580_v7  ;;  %v7642_v5 = vand.u32 4294901760, %v1894_v23  ;;  %1872 = vmatprep.subr.mxu1 %v7586_v59  ;;  %1629 = vmatpush2.msra.mxu0 %v7529_v42 }
 0x15f   :  { %10638 = vst [vmem:[#allocation411_spill] sm:$0xff] %v7539_v31  ;;  %10639 = vst [vmem:[#allocation412_spill] sm:$0xff] %v7546_v4  ;;  %v7623_v33 = vand.u32 4294901760, %v258_v40  ;;  %v1924_v51 = vsub.f32 %v7592_v9, %v7635_v36  ;;  %v252_v31 = vld [vmem:[#allocation10 + $0x170] sm:$0xff]  ;;  %v7709_v61 = vsub.f32 %v255_v35, %v7656_v26  ;;  %1878 = vmatpush1.msra.mxu1 %v7596_v12  ;;  %1631 = vmatprep.subr.mxu0 %v7554_v24 }
 0x160   :  { %10640 = vst [vmem:[#allocation413_spill] sm:$0xff] %v7550_v29  ;;  %10641 = vst [vmem:[#allocation414_spill] sm:$0xff] %v7554_v24  ;;  %v1918_v62 = vsub.f32 %v7580_v7, %v7626_v8  ;;  %v7691_v29 = vand.u32 4294901760, %v253_v45  ;;  %v7715_v1 = vand.u32 4294901760, %v252_v31  ;;  %1884 = vmatprep.subr.mxu1 %v7607_v54  ;;  %1633 = vmatpush2.msra.mxu0 %v7565_v49 }
 0x161   :  { %10642 = vst [vmem:[#allocation415_spill] sm:$0xff] %v7557_v28  ;;  %10643 = vst [vmem:[#allocation416_spill] sm:$0xff] %v7561_v15  ;;  %v7615_v28 = vsub.f32 %v262_v17, %v7565_v49  ;;  %v1906_v17 = vsub.f32 %v7546_v4, %v7589_v3  ;;  %v7662_v4 = vsub.f32 %v259_v30, %v7609_v0  ;;  %v7725_v35 = vand.u32 4294901760, %v1924_v51 }
 0x162   :  { %10644 = vst [vmem:[#allocation417_spill] sm:$0xff] %v7565_v49  ;;  %10645 = vst [vmem:[#allocation418_spill] sm:$0xff] %v7568_v19  ;;  %v7713_v37 = vand.u32 4294901760, %v1918_v62  ;;  %v7744_v42 = vsub.f32 %v253_v45, %v7691_v29  ;;  %1890 = vmatpush1.msra.mxu1 %v7619_v56  ;;  %1635 = vmatprep.subr.mxu0 %v7574_v47  ;;  %v7761_v49 = vand.u32 4294901760, %v249_v57 }
 0x163   :  { %10646 = vst [vmem:[#allocation419_spill] sm:$0xff] %v7574_v47  ;;  %10647 = vst [vmem:[#allocation420_spill] sm:$0xff] %v7577_v27  ;;  %v7638_v27 = vsub.f32 %v261_v43, %v7574_v47  ;;  %v1912_v43 = vsub.f32 %v7568_v19, %v7612_v60  ;;  %v7659_v23 = vand.u32 4294901760, %v7615_v28  ;;  %v7677_v30 = vand.u32 4294901760, %v1906_v17  ;;  %1896 = vmatprep.subr.mxu1 %v7642_v5 }
 0x164   :  { %10648 = vst [vmem:[#allocation421_spill] sm:$0xff] %v7580_v7  ;;  %10649 = vst [vmem:[#allocation422_spill] sm:$0xff] %v7584_v2  ;;  %v250_v2 = vld [vmem:[#allocation10 + $0x160] sm:$0xff]  ;;  %1637 = vmatpush2.msra.mxu0 %v7600_v46  ;;  %2084 = vmatprep.mubr.f32.mxu1 %v10559_v21  ;;  %v10803_v21 = vld [vmem:[#allocation378_spill] sm:$0xff] }
 0x165   :  { %10650 = vst [vmem:[#allocation423_spill] sm:$0xff] %v7586_v59  ;;  %10651 = vst [vmem:[#allocation424_spill] sm:$0xff] %v7589_v3  ;;  %v7650_v3 = vsub.f32 %v260_v41, %v7600_v46  ;;  %v7666_v41 = vand.u32 4294901760, %v1900_v32  ;;  %v7682_v32 = vand.u32 4294901760, %v7638_v27  ;;  %v1936_v15 = vsub.f32 %v7615_v28, %v7659_v23  ;;  %1639 = vmatprep.subr.mxu0 %v7609_v0 }
 0x166   :  { %10652 = vst [vmem:[#allocation425_spill] sm:$0xff] %v7592_v9  ;;  %10653 = vst [vmem:[#allocation426_spill] sm:$0xff] %v7596_v12  ;;  %v7741_v12 = vand.u32 4294901760, %v7697_v22  ;;  %1641 = vmatpush2.msra.mxu0 %v7623_v33 }
 0x167   :  { %10654 = vst [vmem:[#allocation427_spill] sm:$0xff] %v7600_v46  ;;  %10655 = vst [vmem:[#allocation428_spill] sm:$0xff] %v7603_v18  ;;  %v7694_v17 = vand.u32 4294901760, %v7650_v3  ;;  %v1942_v59 = vsub.f32 %v7638_v27, %v7682_v32  ;;  %1902 = vmatpush2.msra.mxu1 %v7666_v41  ;;  %v244_v46 = vld [vmem:[#allocation10 + $0x130] sm:$0xff]  ;;  %1643 = vmatprep.subr.mxu0 %v7632_v50 }
 0x168   :  { %10656 = vst [vmem:[#allocation429_spill] sm:$0xff] %v7607_v54  ;;  %10657 = vst [vmem:[#allocation430_spill] sm:$0xff] %v7609_v0  ;;  %v7752_v54 = vand.u32 4294901760, %v250_v2  ;;  %1908 = vmatprep.subr.mxu1 %v7677_v30  ;;  %v7811_v0 = vsub.f32 %v249_v57, %v7761_v49  ;;  %1645 = vmatpush2.msra.mxu0 %v7644_v34 }
 0x169   :  { %10658 = vst [vmem:[#allocation431_spill] sm:$0xff] %v7612_v60  ;;  %10659 = vst [vmem:[#allocation432_spill] sm:$0xff] %v7615_v28  ;;  %v7673_v60 = vsub.f32 %v258_v40, %v7623_v33  ;;  %v1930_v40 = vsub.f32 %v7603_v18, %v7647_v38  ;;  %v248_v18 = vld [vmem:[#allocation10 + $0x150] sm:$0xff]  ;;  %v1948_v51 = vsub.f32 %v7650_v3, %v7694_v17  ;;  %1647 = vmatprep.subr.mxu0 %v7656_v26 }
 0x16a   :  { %10660 = vst [vmem:[#allocation433_spill] sm:$0xff] %v7619_v56  ;;  %10661 = vst [vmem:[#allocation434_spill] sm:$0xff] %v7623_v33  ;;  %v7763_v56 = vand.u32 4294901760, %v248_v18  ;;  %1649 = vmatpush2.msra.mxu0 %v7670_v20 }
 0x16b   :  { %10662 = vst [vmem:[#allocation435_spill] sm:$0xff] %v7626_v8  ;;  %10663 = vst [vmem:[#allocation436_spill] sm:$0xff] %v7632_v50  ;;  %v7685_v8 = vsub.f32 %v257_v48, %v7632_v50  ;;  %v7701_v48 = vand.u32 4294901760, %v1912_v43  ;;  %v7718_v43 = vand.u32 4294901760, %v7673_v60  ;;  %v240_v50 = vld [vmem:[#allocation10 + $0x110] sm:$0xff]  ;;  %1651 = vmatprep.subr.mxu0 %v7691_v29 }
 0x16c   :  { %10664 = vst [vmem:[#allocation437_spill] sm:$0xff] %v7635_v36  ;;  %10665 = vst [vmem:[#allocation438_spill] sm:$0xff] %v7638_v27  ;;  %v251_v36 = vld [vmem:[#allocation10 + $0x168] sm:$0xff]  ;;  %v7748_v27 = vand.u32 4294901760, %v1936_v15  ;;  %v246_v15 = vld [vmem:[#allocation10 + $0x140] sm:$0xff]  ;;  %1653 = vmatpush2.msra.mxu0 %v7715_v1 }
 0x16d   :  { %10666 = vst [vmem:[#allocation439_spill] sm:$0xff] %v7642_v5  ;;  %10667 = vst [vmem:[#allocation440_spill] sm:$0xff] %v7644_v34  ;;  %v7729_v62 = vand.u32 4294901760, %v251_v36  ;;  %v7732_v28 = vand.u32 4294901760, %v7685_v8  ;;  %v1960_v45 = vsub.f32 %v7673_v60, %v7718_v43  ;;  %1914 = vmatpush2.msra.mxu1 %v7701_v48  ;;  %v241_v34 = vld [vmem:[#allocation10 + $0x118] sm:$0xff] }
 0x16e   :  { %10668 = vst [vmem:[#allocation441_spill] sm:$0xff] %v7647_v38  ;;  %10669 = vst [vmem:[#allocation442_spill] sm:$0xff] %v7650_v3  ;;  %v7706_v38 = vand.u32 4294901760, %v7662_v4  ;;  %1920 = vmatprep.subr.mxu1 %v7713_v37 }
 0x16f   :  { %10670 = vst [vmem:[#allocation443_spill] sm:$0xff] %v7656_v26  ;;  %10671 = vst [vmem:[#allocation444_spill] sm:$0xff] %v7659_v23  ;;  %v7721_v23 = vsub.f32 %v254_v6, %v7670_v20  ;;  %v7736_v6 = vand.u32 4294901760, %v1930_v40  ;;  %v1966_v5 = vsub.f32 %v7685_v8, %v7732_v28  ;;  %1926 = vmatpush2.msra.mxu1 %v7725_v35  ;;  %1655 = vmatprep.subr.mxu0 %v7729_v62 }
 0x170   :  { %10672 = vst [vmem:[#allocation445_spill] sm:$0xff] %v7662_v4  ;;  %10673 = vst [vmem:[#allocation446_spill] sm:$0xff] %v7666_v41  ;;  %v1954_v40 = vsub.f32 %v7662_v4, %v7706_v38  ;;  %v7781_v4 = vand.u32 4294901760, %v1948_v51  ;;  %v1972_v41 = vsub.f32 %v7697_v22, %v7741_v12  ;;  %1657 = vmatpush2.msra.mxu0 %v7752_v54 }
 0x171   :  { %10674 = vst [vmem:[#allocation447_spill] sm:$0xff] %v7670_v20  ;;  %10675 = vst [vmem:[#allocation448_spill] sm:$0xff] %v7673_v60  ;;  %v7766_v24 = vand.u32 4294901760, %v7721_v23  ;;  %v7777_v60 = vsub.f32 %v252_v31, %v7715_v1  ;;  %1932 = vmatprep.subr.mxu1 %v7736_v6  ;;  %1659 = vmatprep.subr.mxu0 %v7761_v49 }
 0x172   :  { %10676 = vst [vmem:[#allocation449_spill] sm:$0xff] %v7677_v30  ;;  %10677 = vst [vmem:[#allocation450_spill] sm:$0xff] %v7682_v32  ;;  %v247_v32 = vld [vmem:[#allocation10 + $0x148] sm:$0xff]  ;;  %v7793_v31 = vand.u32 4294901760, %v1954_v40  ;;  %v7797_v30 = vand.u32 4294901760, %v246_v15  ;;  %v7827_v57 = vand.u32 4294901760, %v1972_v41  ;;  %1938 = vmatpush2.msra.mxu1 %v7748_v27  ;;  %1661 = vmatpush2.msra.mxu0 %v7763_v56 }
 0x173   :  { %10678 = vst [vmem:[#allocation451_spill] sm:$0xff] %v7685_v8  ;;  %10679 = vst [vmem:[#allocation452_spill] sm:$0xff] %v7691_v29  ;;  %v7774_v47 = vand.u32 4294901760, %v247_v32  ;;  %v1984_v33 = vsub.f32 %v7721_v23, %v7766_v24  ;;  %v243_v40 = vld [vmem:[#allocation10 + $0x128] sm:$0xff]  ;;  %v7865_v29 = vand.u32 4294901760, %v241_v34 }
 0x174   :  { %10680 = vst [vmem:[#allocation453_spill] sm:$0xff] %v7694_v17  ;;  %10681 = vst [vmem:[#allocation454_spill] sm:$0xff] %v7697_v22  ;;  %v7755_v17 = vand.u32 4294901760, %v7709_v61 }
 0x175   :  { %10682 = vst [vmem:[#allocation455_spill] sm:$0xff] %v7701_v48  ;;  %10683 = vst [vmem:[#allocation456_spill] sm:$0xff] %v7706_v38  ;;  %v7770_v38 = vand.u32 4294901760, %v1942_v59  ;;  %v7786_v59 = vand.u32 4294901760, %v7744_v42  ;;  %1663 = vmatprep.subr.mxu0 %v7774_v47 }
 0x176   :  { %10684 = vst [vmem:[#allocation457_spill] sm:$0xff] %v7709_v61  ;;  %10685 = vst [vmem:[#allocation458_spill] sm:$0xff] %v7713_v37  ;;  %v1978_v51 = vsub.f32 %v7709_v61, %v7755_v17  ;;  %v242_v37 = vld [vmem:[#allocation10 + $0x120] sm:$0xff]  ;;  %1665 = vmatpush2.msra.mxu0 %v7797_v30 }
 0x177   :  { %10686 = vst [vmem:[#allocation459_spill] sm:$0xff] %v7715_v1  ;;  %10687 = vst [vmem:[#allocation460_spill] sm:$0xff] %v7718_v43  ;;  %v245_v43 = vld [vmem:[#allocation10 + $0x138] sm:$0xff]  ;;  %1944 = vmatprep.subr.mxu1 %v7770_v38  ;;  %v7853_v26 = vand.u32 4294901760, %v242_v37 }
 0x178   :  { %10688 = vst [vmem:[#allocation461_spill] sm:$0xff] %v7721_v23  ;;  %10689 = vst [vmem:[#allocation462_spill] sm:$0xff] %v7725_v35  ;;  %v7808_v48 = vand.u32 4294901760, %v245_v43  ;;  %v1990_v35 = vsub.f32 %v7744_v42, %v7786_v59  ;;  %v7835_v23 = vsub.f32 %v247_v32, %v7774_v47  ;;  %v7851_v32 = vand.u32 4294901760, %v1984_v33  ;;  %1950 = vmatpush2.msra.mxu1 %v7781_v4 }
 0x179   :  { %10690 = vst [vmem:[#allocation463_spill] sm:$0xff] %v7729_v62  ;;  %10691 = vst [vmem:[#allocation464_spill] sm:$0xff] %v7732_v28  ;;  %v7789_v28 = vsub.f32 %v251_v36, %v7729_v62  ;;  %v7804_v36 = vand.u32 4294901760, %v1960_v45  ;;  %v7820_v45 = vand.u32 4294901760, %v7777_v60  ;;  %v7867_v33 = vand.u32 4294901760, %v240_v50  ;;  %1956 = vmatprep.subr.mxu1 %v7793_v31 }
 0x17a   :  { %10692 = vst [vmem:[#allocation465_spill] sm:$0xff] %v7736_v6  ;;  %10693 = vst [vmem:[#allocation466_spill] sm:$0xff] %v7741_v12  ;;  %v7800_v12 = vsub.f32 %v250_v2, %v7752_v54  ;;  %v7815_v2 = vand.u32 4294901760, %v1966_v5  ;;  %v7841_v6 = vand.u32 4294901760, %v243_v40  ;;  %v7859_v20 = vsub.f32 %v245_v43, %v7808_v48  ;;  %1667 = vmatprep.subr.mxu0 %v7808_v48 }
 0x17b   :  { %10694 = vst [vmem:[#allocation467_spill] sm:$0xff] %v7744_v42  ;;  %10695 = vst [vmem:[#allocation468_spill] sm:$0xff] %v7748_v27  ;;  %v7832_v5 = vand.u32 4294901760, %v7789_v28  ;;  %v7856_v27 = vand.u32 4294901760, %v7811_v0  ;;  %v238_v42 = vld [vmem:[#allocation10 + $0x100] sm:$0xff]  ;;  %v7874_v43 = vand.u32 4294901760, %v1990_v35  ;;  %1962 = vmatpush2.msra.mxu1 %v7804_v36 }
 0x17c   :  { %10696 = vst [vmem:[#allocation469_spill] sm:$0xff] %v7752_v54  ;;  %10697 = vst [vmem:[#allocation470_spill] sm:$0xff] %v7755_v17  ;;  %v7817_v17 = vand.u32 4294901760, %v244_v46  ;;  %v7844_v41 = vand.u32 4294901760, %v7800_v12  ;;  %v7879_v1 = vand.u32 4294901760, %v7835_v23  ;;  %1968 = vmatprep.subr.mxu1 %v7815_v2 }
 0x17d   :  { %10698 = vst [vmem:[#allocation471_spill] sm:$0xff] %v7761_v49  ;;  %10699 = vst [vmem:[#allocation472_spill] sm:$0xff] %v7763_v56  ;;  %1974 = vmatpush2.msra.mxu1 %v7827_v57  ;;  %v7915_v49 = vsub.f32 %v241_v34, %v7865_v29 }
 0x17e   :  { %10700 = vst [vmem:[#allocation473_spill] sm:$0xff] %v7766_v24  ;;  %10701 = vst [vmem:[#allocation474_spill] sm:$0xff] %v7770_v38  ;;  %v7823_v24 = vsub.f32 %v248_v18, %v7763_v56  ;;  %v7839_v18 = vand.u32 4294901760, %v1978_v51  ;;  %v239_v51 = vld [vmem:[#allocation10 + $0x108] sm:$0xff]  ;;  %v2008_v62 = vsub.f32 %v7800_v12, %v7844_v41  ;;  %1669 = vmatpush2.msra.mxu0 %v7817_v17 }
 0x17f   :  { %10702 = vst [vmem:[#allocation475_spill] sm:$0xff] %v7774_v47  ;;  %10703 = vst [vmem:[#allocation476_spill] sm:$0xff] %v7777_v60  ;;  %1671 = vmatprep.subr.mxu0 %v7841_v6 }
 0x180   :  { %10704 = vst [vmem:[#allocation477_spill] sm:$0xff] %v7781_v4  ;;  %10705 = vst [vmem:[#allocation478_spill] sm:$0xff] %v7786_v59  ;;  %v7847_v59 = vsub.f32 %v246_v15, %v7797_v30  ;;  %v1996_v15 = vsub.f32 %v7777_v60, %v7820_v45  ;;  %v7870_v38 = vand.u32 4294901760, %v7823_v24  ;;  %v2002_v4 = vsub.f32 %v7789_v28, %v7832_v5 }
 0x181   :  { %10706 = vst [vmem:[#allocation479_spill] sm:$0xff] %v7789_v28  ;;  %10707 = vst [vmem:[#allocation480_spill] sm:$0xff] %v7793_v31  ;;  %v7888_v60 = vand.u32 4294901760, %v239_v51  ;;  %v7894_v31 = vsub.f32 %v243_v40, %v7841_v6  ;;  %1980 = vmatprep.subr.mxu1 %v7839_v18  ;;  %v7931_v34 = vand.u32 4294901760, %v2008_v62  ;;  %1673 = vmatpush2.msra.mxu0 %v7853_v26 }
 0x182   :  { %10708 = vst [vmem:[#allocation481_spill] sm:$0xff] %v7797_v30  ;;  %10709 = vst [vmem:[#allocation482_spill] sm:$0xff] %v7800_v12  ;;  %v7891_v35 = vand.u32 4294901760, %v7847_v59  ;;  %v7910_v40 = vand.u32 4294901760, %v1996_v15  ;;  %v7927_v15 = vsub.f32 %v240_v50, %v7867_v33  ;;  %1986 = vmatpush2.msra.mxu1 %v7851_v32  ;;  %1675 = vmatprep.subr.mxu0 %v7865_v29 }
 0x183   :  { %10710 = vst [vmem:[#allocation483_spill] sm:$0xff] %v7804_v36  ;;  %10711 = vst [vmem:[#allocation484_spill] sm:$0xff] %v7808_v48  ;;  %v7903_v36 = vand.u32 4294901760, %v7859_v20  ;;  %1992 = vmatprep.subr.mxu1 %v7874_v43  ;;  %1677 = vmatpush2.msra.mxu0 %v7867_v33 }
 0x184   :  { %10712 = vst [vmem:[#allocation485_spill] sm:$0xff] %v7811_v0  ;;  %10713 = vst [vmem:[#allocation486_spill] sm:$0xff] %v7815_v2  ;;  %v2020_v2 = vsub.f32 %v7823_v24, %v7870_v38  ;;  %1998 = vmatpush2.msra.mxu1 %v7910_v40  ;;  %1679 = vmatprep.subr.mxu0 %v7888_v60 }
 0x185   :  { %10714 = vst [vmem:[#allocation487_spill] sm:$0xff] %v7817_v17  ;;  %10715 = vst [vmem:[#allocation488_spill] sm:$0xff] %v7820_v45  ;;  %v7882_v45 = vsub.f32 %v244_v46, %v7817_v17  ;;  %v2014_v46 = vsub.f32 %v7811_v0, %v7856_v27 }
 0x186   :  { %10716 = vst [vmem:[#allocation489_spill] sm:$0xff] %v7823_v24  ;;  %10717 = vst [vmem:[#allocation490_spill] sm:$0xff] %v7827_v57  ;;  %v7939_v57 = vsub.f32 %v239_v51, %v7888_v60  ;;  %v7955_v51 = vand.u32 4294901760, %v2020_v2 }
 0x187   :  { %10718 = vst [vmem:[#allocation491_spill] sm:$0xff] %v7832_v5  ;;  %10719 = vst [vmem:[#allocation492_spill] sm:$0xff] %v7835_v23  ;;  %v7900_v5 = vand.u32 4294901760, %v238_v42  ;;  %v7924_v56 = vand.u32 4294901760, %v7882_v45  ;;  %v7943_v50 = vand.u32 4294901760, %v2014_v46 }
 0x188   :  { %10720 = vst [vmem:[#allocation493_spill] sm:$0xff] %v7839_v18  ;;  %10721 = vst [vmem:[#allocation494_spill] sm:$0xff] %v7841_v6  ;;  %v2032_v18 = vsub.f32 %v7847_v59, %v7891_v35 }
 0x189   :  { %10722 = vst [vmem:[#allocation495_spill] sm:$0xff] %v7844_v41  ;;  %10723 = vst [vmem:[#allocation496_spill] sm:$0xff] %v7847_v59  ;;  %v7906_v41 = vsub.f32 %v242_v37, %v7853_v26  ;;  %v2026_v37 = vsub.f32 %v7835_v23, %v7879_v1  ;;  %1681 = vmatpush2.msra.mxu0 %v7900_v5 }
 0x18a   :  { %10724 = vst [vmem:[#allocation497_spill] sm:$0xff] %v7851_v32  ;;  %10725 = vst [vmem:[#allocation498_spill] sm:$0xff] %v7853_v26  ;;  %v2038_v32 = vsub.f32 %v7859_v20, %v7903_v36  ;;  %v7971_v2 = vand.u32 4294901760, %v2032_v18  ;;  %2094 = vmatprep.subr.mxu0 %v7084_v39 }
 0x18b   :  { %10726 = vst [vmem:[#allocation499_spill] sm:$0xff] %v7856_v27  ;;  %10727 = vst [vmem:[#allocation500_spill] sm:$0xff] %v7859_v20  ;;  %v7919_v27 = vand.u32 4294901760, %v2002_v4  ;;  %v7936_v4 = vand.u32 4294901760, %v7894_v31  ;;  %v7948_v62 = vand.u32 4294901760, %v7906_v41  ;;  %v7962_v46 = vand.u32 4294901760, %v2026_v37 }
 0x18c   :  { %10728 = vst [vmem:[#allocation501_spill] sm:$0xff] %v7865_v29  ;;  %10729 = vst [vmem:[#allocation502_spill] sm:$0xff] %v7867_v33  ;;  %v7980_v37 = vand.u32 4294901760, %v2038_v32 }
 0x18d   :  { %10730 = vst [vmem:[#allocation503_spill] sm:$0xff] %v7870_v38  ;;  %10731 = vst [vmem:[#allocation504_spill] sm:$0xff] %v7874_v43  ;;  %2004 = vmatprep.subr.mxu1 %v7919_v27  ;;  %v2044_v43 = vsub.f32 %v7882_v45, %v7924_v56  ;;  %v10816_v38 = vld [vmem:[#allocation412_spill] sm:$0xff] }
 0x18e   :  { %10732 = vst [vmem:[#allocation505_spill] sm:$0xff] %v7879_v1  ;;  %10733 = vst [vmem:[#allocation506_spill] sm:$0xff] %v7882_v45  ;;  %v7958_v1 = vand.u32 4294901760, %v7915_v49  ;;  %2010 = vmatpush2.msra.mxu1 %v7931_v34 }
 0x18f   :  { %10734 = vst [vmem:[#allocation507_spill] sm:$0xff] %v7888_v60  ;;  %10735 = vst [vmem:[#allocation508_spill] sm:$0xff] %v7891_v35  ;;  %v7951_v35 = vsub.f32 %v238_v42, %v7900_v5  ;;  %v7967_v42 = vand.u32 4294901760, %v7927_v15  ;;  %2016 = vmatprep.subr.mxu1 %v7943_v50 }
 0x190   :  { %10736 = vst [vmem:[#allocation509_spill] sm:$0xff] %v7894_v31  ;;  %10737 = vst [vmem:[#allocation510_spill] sm:$0xff] %v7900_v5  ;;  %2022 = vmatpush2.msra.mxu1 %v7955_v51  ;;  %v2062_v18 = vsub.f32 %v7915_v49, %v7958_v1 }
 0x191   :  { %10738 = vst [vmem:[#allocation511_spill] sm:$0xff] %v7903_v36  ;;  %10739 = vst [vmem:[#allocation512_spill] sm:$0xff] %v7906_v41  ;;  %v7976_v36 = vand.u32 4294901760, %v7939_v57  ;;  %2028 = vmatprep.subr.mxu1 %v7962_v46  ;;  %v2068_v32 = vsub.f32 %v7927_v15, %v7967_v42 }
 0x192   :  { %10740 = vst [vmem:[#allocation513_spill] sm:$0xff] %v7910_v40  ;;  %10741 = vst [vmem:[#allocation514_spill] sm:$0xff] %v7915_v49  ;;  %v2050_v40 = vsub.f32 %v7894_v31, %v7936_v4  ;;  %2034 = vmatpush2.msra.mxu1 %v7971_v2 }
 0x193   :  { %10742 = vst [vmem:[#allocation515_spill] sm:$0xff] %v7919_v27  ;;  %10743 = vst [vmem:[#allocation516_spill] sm:$0xff] %v7924_v56  ;;  %v2056_v27 = vsub.f32 %v7906_v41, %v7948_v62  ;;  %v7985_v56 = vand.u32 4294901760, %v7951_v35  ;;  %2040 = vmatprep.subr.mxu1 %v7980_v37 }
 0x194   :  { %10744 = vst [vmem:[#allocation517_spill] sm:$0xff] %v7927_v15  ;;  %10745 = vst [vmem:[#allocation518_spill] sm:$0xff] %v7931_v34  ;;  %v7999_v34 = vand.u32 4294901760, %v2050_v40  ;;  %v8015_v40 = vand.u32 4294901760, %v2068_v32  ;;  %v10772_v32 = vld [vmem:[#allocation302_spill] sm:$0xff] }
 0x195   :  { %10746 = vst [vmem:[#allocation519_spill] sm:$0xff] %v7936_v4  ;;  %10747 = vst [vmem:[#allocation520_spill] sm:$0xff] %v7939_v57  ;;  %v10814_v4 = vld [vmem:[#allocation410_spill] sm:$0xff] }
 0x196   :  { %10748 = vst [vmem:[#allocation521_spill] sm:$0xff] %v7943_v50  ;;  %10749 = vst [vmem:[#allocation522_spill] sm:$0xff] %v7948_v62  ;;  %v7993_v50 = vand.u32 4294901760, %v2044_v43  ;;  %v10761_v62 = vld [vmem:[#allocation279_spill] sm:$0xff]  ;;  %v2080_v43 = vsub.f32 %v7951_v35, %v7985_v56 }
 0x197   :  { %10750 = vst [vmem:[#allocation523_spill] sm:$0xff] %v7951_v35  ;;  %10751 = vst [vmem:[#allocation524_spill] sm:$0xff] %v7955_v51  ;;  %v2074_v51 = vsub.f32 %v7939_v57, %v7976_v36  ;;  %1687 = vmatprep.mubr.f32.mxu0 %v10761_v62  ;;  %v10766_v62 = vld [vmem:[#allocation291_spill] sm:$0xff] }
 0x198   :  { %10752 = vst [vmem:[#allocation525_spill] sm:$0xff] %v7958_v1  ;;  %10753 = vst [vmem:[#allocation526_spill] sm:$0xff] %v7962_v46  ;;  %v8005_v1 = vand.u32 4294901760, %v2056_v27  ;;  %v10763_v46 = vld [vmem:[#allocation276_spill] sm:$0xff]  ;;  %2046 = vmatpush2.msra.mxu1 %v7993_v50  ;;  %v8023_v39 = vand.u32 4294901760, %v2080_v43  ;;  %v10774_v43 = vld [vmem:[#allocation310_spill] sm:$0xff] }
 0x199   :  { %10754 = vst [vmem:[#allocation527_spill] sm:$0xff] %v7967_v42  ;;  %10755 = vst [vmem:[#allocation528_spill] sm:$0xff] %v7971_v2  ;;  %1693 = vmatmul.mubr.f32.vlgmr.msra.gmra.mxu0 %v10763_v46  ;;  %v8011_v42 = vand.u32 4294901760, %v2062_v18  ;;  %2052 = vmatprep.subr.mxu1 %v7999_v34  ;;  %v8019_v27 = vand.u32 4294901760, %v2074_v51  ;;  %v10770_v46 = vld [vmem:[#allocation297_spill] sm:$0xff]  ;;  %v10771_v18 = vld [vmem:[#allocation298_spill] sm:$0xff] }
 0x19a   :  { %10756 = vst [vmem:[#allocation529_spill] sm:$0xff] %v7976_v36  ;;  %10757 = vst [vmem:[#allocation530_spill] sm:$0xff] %v7980_v37  ;;  %2097 = vmatpush1.msra.mxu0 %v7097_v11  ;;  %2058 = vmatpush2.msra.mxu1 %v8005_v1  ;;  %v10768_v37 = vld [vmem:[#allocation295_spill] sm:$0xff]  ;;  %v10773_v51 = vld [vmem:[#allocation305_spill] sm:$0xff] }
 0x19b   :  { %10758 = vst [vmem:[#allocation531_spill] sm:$0xff] %v7985_v56  ;;  %10759 = vst [vmem:[#allocation532_spill] sm:$0xff] %v7993_v50  ;;  %2100 = vmatprep.subr.mxu0 %v10766_v62  ;;  %2064 = vmatprep.subr.mxu1 %v8011_v42  ;;  %v10788_v62 = vld [vmem:[#allocation339_spill] sm:$0xff]  ;;  %v10792_v11 = vld [vmem:[#allocation348_spill] sm:$0xff] }
 0x19c   :  { %10760 = vst [vmem:[#allocation533_spill] sm:$0xff] %v7999_v34  ;;  %10762 = vst [vmem:[#allocation279_spill] sm:$0xff] %v8005_v1  ;;  %2103 = vmatpush1.msra.mxu0 %v10768_v37  ;;  %2070 = vmatpush2.msra.mxu1 %v8015_v40  ;;  %v10784_v37 = vld [vmem:[#allocation329_spill] sm:$0xff]  ;;  %v10790_v34 = vld [vmem:[#allocation346_spill] sm:$0xff] }
 0x19d   :  { %10764 = vst [vmem:[#allocation276_spill] sm:$0xff] %v8011_v42  ;;  %10765 = vst [vmem:[#allocation534_spill] sm:$0xff] %v8015_v40  ;;  %2106 = vmatprep.subr.mxu0 %v10770_v46  ;;  %2076 = vmatprep.subr.mxu1 %v8019_v27  ;;  %v10775_v42 = vld [vmem:[#allocation283_spill] sm:$0xff]  ;;  %v10776_v46 = vld [vmem:[#allocation314_spill] sm:$0xff] }
 0x19e   :  { %10767 = vst [vmem:[#allocation535_spill] sm:$0xff] %v8019_v27  ;;  %10769 = vst [vmem:[#allocation536_spill] sm:$0xff] %v8023_v39  ;;  %2109 = vmatpush1.msra.mxu0 %v10771_v18  ;;  %2082 = vmatpush2.msra.mxu1 %v8023_v39  ;;  %v10777_v40 = vld [vmem:[#allocation284_spill] sm:$0xff]  ;;  %v10778_v18 = vld [vmem:[#allocation317_spill] sm:$0xff] }
 0x19f   :  { %2112 = vmatprep.subr.mxu0 %v10772_v32  ;;  %2086 = vmatmul.mubr.f32.vlgmr.msra.gmra.mxu1 %v10563_v14  ;;  %v10779_v27 = vld [vmem:[#allocation285_spill] sm:$0xff]  ;;  %v10780_v39 = vld [vmem:[#allocation323_spill] sm:$0xff]  ;;  %v10782_v32 = vld [vmem:[#allocation326_spill] sm:$0xff] }
 0x1a0   :  { %2115 = vmatpush1.msra.mxu0 %v10773_v51  ;;  %2296 = vmatprep.subr.mxu1 %v10775_v42  ;;  %v10781_v51 = vld [vmem:[#allocation288_spill] sm:$0xff]  ;;  %v10786_v1 = vld [vmem:[#allocation333_spill] sm:$0xff]  ;;  %v10801_v14 = vld [vmem:[#allocation374_spill] sm:$0xff] }
 0x1a1   :  { %2118 = vmatprep.subr.mxu0 %v10774_v43  ;;  %2298 = vmatpush1.msra.mxu1 %v10777_v40  ;;  %v10783_v43 = vld [vmem:[#allocation289_spill] sm:$0xff]  ;;  %v10799_v2 = vld [vmem:[#allocation368_spill] sm:$0xff]  ;;  %v10812_v36 = vld [vmem:[#allocation403_spill] sm:$0xff] }
 0x1a2   :  { %2121 = vmatpush1.msra.mxu0 %v10776_v46  ;;  %2300 = vmatprep.subr.mxu1 %v10779_v27  ;;  %v10785_v46 = vld [vmem:[#allocation292_spill] sm:$0xff]  ;;  %v10796_v50 = vld [vmem:[#allocation357_spill] sm:$0xff] }
 0x1a3   :  { %2124 = vmatprep.subr.mxu0 %v10778_v18  ;;  %2302 = vmatpush1.msra.mxu1 %v7088_v10  ;;  %v10787_v18 = vld [vmem:[#allocation294_spill] sm:$0xff]  ;;  %v10805_v56 = vld [vmem:[#allocation381_spill] sm:$0xff] }
 0x1a4   :  { %2127 = vmatpush1.msra.mxu0 %v7218_v25  ;;  %2304 = vmatprep.subr.mxu1 %v10781_v51  ;;  %v10789_v25 = vld [vmem:[#allocation299_spill] sm:$0xff] }
 0x1a5   :  { %2130 = vmatprep.subr.mxu0 %v10780_v39  ;;  %2306 = vmatpush1.msra.mxu1 %v10783_v43  ;;  %v10791_v39 = vld [vmem:[#allocation301_spill] sm:$0xff] }
 0x1a6   :  { %2133 = vmatpush1.msra.mxu0 %v10782_v32  ;;  %2308 = vmatprep.subr.mxu1 %v10785_v46  ;;  %v10793_v32 = vld [vmem:[#allocation303_spill] sm:$0xff] }
 0x1a7   :  { %2136 = vmatprep.subr.mxu0 %v10784_v37  ;;  %2310 = vmatpush1.msra.mxu1 %v10787_v18  ;;  %v10794_v37 = vld [vmem:[#allocation308_spill] sm:$0xff] }
 0x1a8   :  { %2139 = vmatpush1.msra.mxu0 %v10786_v1  ;;  %2312 = vmatprep.subr.mxu1 %v10789_v25  ;;  %v10795_v1 = vld [vmem:[#allocation309_spill] sm:$0xff] }
 0x1a9   :  { %2142 = vmatprep.subr.mxu0 %v10788_v62  ;;  %2314 = vmatpush1.msra.mxu1 %v10791_v39  ;;  %v10797_v62 = vld [vmem:[#allocation312_spill] sm:$0xff] }
 0x1aa   :  { %2145 = vmatpush1.msra.mxu0 %v10790_v34  ;;  %2316 = vmatprep.subr.mxu1 %v10793_v32  ;;  %v10798_v34 = vld [vmem:[#allocation315_spill] sm:$0xff] }
 0x1ab   :  { %2148 = vmatprep.subr.mxu0 %v10792_v11  ;;  %2318 = vmatpush1.msra.mxu1 %v10794_v37  ;;  %v10800_v11 = vld [vmem:[#allocation319_spill] sm:$0xff] }
 0x1ac   :  { %2151 = vmatpush1.msra.mxu0 %v7336_v52  ;;  %2320 = vmatprep.subr.mxu1 %v10795_v1  ;;  %v10802_v52 = vld [vmem:[#allocation324_spill] sm:$0xff] }
 0x1ad   :  { %2154 = vmatprep.subr.mxu0 %v7346_v58  ;;  %2322 = vmatpush1.msra.mxu1 %v10797_v62  ;;  %v10804_v58 = vld [vmem:[#allocation332_spill] sm:$0xff] }
 0x1ae   :  { %2157 = vmatpush1.msra.mxu0 %v10796_v50  ;;  %2324 = vmatprep.subr.mxu1 %v10798_v34  ;;  %v10806_v50 = vld [vmem:[#allocation334_spill] sm:$0xff] }
 0x1af   :  { %2160 = vmatprep.subr.mxu0 %v7371_v16  ;;  %2326 = vmatpush1.msra.mxu1 %v10800_v11  ;;  %v10807_v16 = vld [vmem:[#allocation341_spill] sm:$0xff] }
 0x1b0   :  { %2163 = vmatpush1.msra.mxu0 %v10799_v2  ;;  %2328 = vmatprep.subr.mxu1 %v10802_v52  ;;  %v10808_v2 = vld [vmem:[#allocation343_spill] sm:$0xff] }
 0x1b1   :  { %2166 = vmatprep.subr.mxu0 %v10801_v14  ;;  %2330 = vmatpush1.msra.mxu1 %v10804_v58  ;;  %v10810_v14 = vld [vmem:[#allocation397_spill] sm:$0xff] }
 0x1b2   :  { %2169 = vmatpush1.msra.mxu0 %v10803_v21  ;;  %2332 = vmatprep.subr.mxu1 %v10806_v50  ;;  %v10809_v21 = vld [vmem:[#allocation350_spill] sm:$0xff] }
 0x1b3   :  { %2172 = vmatprep.subr.mxu0 %v10805_v56  ;;  %2334 = vmatpush1.msra.mxu1 %v10807_v16  ;;  %v10811_v56 = vld [vmem:[#allocation353_spill] sm:$0xff] }
 0x1b4   :  { %2175 = vmatpush1.msra.mxu0 %v7450_v13  ;;  %2336 = vmatprep.subr.mxu1 %v10808_v2  ;;  %v10813_v13 = vld [vmem:[#allocation360_spill] sm:$0xff] }
 0x1b5   :  { %2178 = vmatprep.subr.mxu0 %v7453_v55  ;;  %2338 = vmatpush1.msra.mxu1 %v7297_v53  ;;  %v10815_v55 = vld [vmem:[#allocation363_spill] sm:$0xff] }
 0x1b6   :  { %2181 = vmatpush1.msra.mxu0 %v7465_v63  ;;  %2340 = vmatprep.subr.mxu1 %v10809_v21  ;;  %v10817_v63 = vld [vmem:[#allocation366_spill] sm:$0xff] }
 0x1b7   :  { %2184 = vmatprep.subr.mxu0 %v7477_v44  ;;  %2342 = vmatpush1.msra.mxu1 %v10811_v56  ;;  %v10818_v44 = vld [vmem:[#allocation372_spill] sm:$0xff] }
 0x1b8   :  { %2187 = vmatpush1.msra.mxu0 %v10810_v14  ;;  %2344 = vmatprep.subr.mxu1 %v10813_v13  ;;  %v10819_v14 = vld [vmem:[#allocation373_spill] sm:$0xff]  ;;  %v10821_v13 = vld [vmem:[#allocation428_spill] sm:$0xff] }
 0x1b9   :  { %2190 = vmatprep.subr.mxu0 %v10812_v36  ;;  %2346 = vmatpush1.msra.mxu1 %v10815_v55  ;;  %v10820_v36 = vld [vmem:[#allocation376_spill] sm:$0xff] }
 0x1ba   :  { %2193 = vmatpush2.msra.mxu0 %v10814_v4  ;;  %2348 = vmatprep.subr.mxu1 %v10817_v63  ;;  %v10822_v4 = vld [vmem:[#allocation379_spill] sm:$0xff]  ;;  %v10823_v55 = vld [vmem:[#allocation432_spill] sm:$0xff]  ;;  %v10825_v63 = vld [vmem:[#allocation438_spill] sm:$0xff] }
 0x1bb   :  { %2196 = vmatprep.subr.mxu0 %v10816_v38  ;;  %2350 = vmatpush1.msra.mxu1 %v10818_v44  ;;  %v10824_v38 = vld [vmem:[#allocation383_spill] sm:$0xff] }
 0x1bc   :  { %2199 = vmatpush2.msra.mxu0 %v7568_v19  ;;  %2352 = vmatprep.subr.mxu1 %v10819_v14  ;;  %v10826_v19 = vld [vmem:[#allocation388_spill] sm:$0xff]  ;;  %v10828_v14 = vld [vmem:[#allocation445_spill] sm:$0xff] }
 0x1bd   :  { %2202 = vmatprep.subr.mxu0 %v7580_v7  ;;  %2354 = vmatpush1.msra.mxu1 %v10820_v36  ;;  %v10827_v7 = vld [vmem:[#allocation396_spill] sm:$0xff] }
 0x1be   :  { %2205 = vmatpush2.msra.mxu0 %v7592_v9  ;;  %2356 = vmatprep.subr.mxu1 %v10822_v4  ;;  %v10829_v9 = vld [vmem:[#allocation398_spill] sm:$0xff]  ;;  %v10830_v36 = vld [vmem:[#allocation448_spill] sm:$0xff] }
 0x1bf   :  { %2208 = vmatprep.subr.mxu0 %v10821_v13  ;;  %2358 = vmatpush1.msra.mxu1 %v10824_v38  ;;  %v10831_v13 = vld [vmem:[#allocation405_spill] sm:$0xff] }
 0x1c0   :  { %2211 = vmatpush2.msra.mxu0 %v10823_v55  ;;  %2360 = vmatprep.subr.mxu1 %v10826_v19  ;;  %v10832_v55 = vld [vmem:[#allocation407_spill] sm:$0xff] }
 0x1c1   :  { %2214 = vmatprep.subr.mxu0 %v10825_v63  ;;  %2362 = vmatpush2.msra.mxu1 %v10827_v7  ;;  %v10833_v63 = vld [vmem:[#allocation408_spill] sm:$0xff]  ;;  %v10835_v7 = vld [vmem:[#allocation461_spill] sm:$0xff] }
 0x1c2   :  { %2217 = vmatpush2.msra.mxu0 %v7650_v3  ;;  %2364 = vmatprep.subr.mxu1 %v10829_v9  ;;  %v10834_v3 = vld [vmem:[#allocation414_spill] sm:$0xff]  ;;  %v10837_v9 = vld [vmem:[#allocation467_spill] sm:$0xff] }
 0x1c3   :  { %2220 = vmatprep.subr.mxu0 %v10828_v14  ;;  %2366 = vmatpush2.msra.mxu1 %v10831_v13  ;;  %v10836_v14 = vld [vmem:[#allocation417_spill] sm:$0xff]  ;;  %v10839_v13 = vld [vmem:[#allocation476_spill] sm:$0xff] }
 0x1c4   :  { %2223 = vmatpush2.msra.mxu0 %v10830_v36  ;;  %2368 = vmatprep.subr.mxu1 %v10832_v55  ;;  %v10838_v36 = vld [vmem:[#allocation419_spill] sm:$0xff] }
 0x1c5   :  { %2226 = vmatprep.subr.mxu0 %v7685_v8  ;;  %2370 = vmatpush2.msra.mxu1 %v10833_v63  ;;  %v10840_v8 = vld [vmem:[#allocation427_spill] sm:$0xff] }
 0x1c6   :  { %2229 = vmatpush2.msra.mxu0 %v7697_v22  ;;  %2372 = vmatprep.subr.mxu1 %v10834_v3  ;;  %v10841_v22 = vld [vmem:[#allocation430_spill] sm:$0xff] }
 0x1c7   :  { %2232 = vmatprep.subr.mxu0 %v7709_v61  ;;  %2374 = vmatpush2.msra.mxu1 %v10836_v14  ;;  %v10842_v61 = vld [vmem:[#allocation434_spill] sm:$0xff] }
 0x1c8   :  { %2235 = vmatpush2.msra.mxu0 %v10835_v7  ;;  %2376 = vmatprep.subr.mxu1 %v10838_v36  ;;  %v10843_v7 = vld [vmem:[#allocation436_spill] sm:$0xff] }
 0x1c9   :  { %2238 = vmatprep.subr.mxu0 %v10837_v9  ;;  %2378 = vmatpush2.msra.mxu1 %v10840_v8  ;;  %v10844_v9 = vld [vmem:[#allocation440_spill] sm:$0xff] }
 0x1ca   :  { %2241 = vmatpush2.msra.mxu0 %v10839_v13  ;;  %2380 = vmatprep.subr.mxu1 %v10841_v22  ;;  %v10845_v13 = vld [vmem:[#allocation443_spill] sm:$0xff] }
 0x1cb   :  { %2244 = vmatprep.subr.mxu0 %v7789_v28  ;;  %2382 = vmatpush2.msra.mxu1 %v10842_v61  ;;  %v10846_v28 = vld [vmem:[#allocation447_spill] sm:$0xff] }
 0x1cc   :  { %2247 = vmatpush2.msra.mxu0 %v7800_v12  ;;  %2384 = vmatprep.subr.mxu1 %v10843_v7  ;;  %v10847_v12 = vld [vmem:[#allocation452_spill] sm:$0xff] }
 0x1cd   :  { %2250 = vmatprep.subr.mxu0 %v7811_v0  ;;  %2386 = vmatpush2.msra.mxu1 %v10844_v9  ;;  %v10848_v0 = vld [vmem:[#allocation459_spill] sm:$0xff] }
 0x1ce   :  { %2253 = vmatpush2.msra.mxu0 %v7823_v24  ;;  %2388 = vmatprep.subr.mxu1 %v10845_v13  ;;  %v10849_v24 = vld [vmem:[#allocation463_spill] sm:$0xff] }
 0x1cf   :  { %2256 = vmatprep.subr.mxu0 %v7835_v23  ;;  %2390 = vmatpush2.msra.mxu1 %v10846_v28  ;;  %v10892_v23 = vld [vmem:[#allocation424_spill] sm:$0xff] }
 0x1d0   :  { %2259 = vmatpush2.msra.mxu0 %v7847_v59  ;;  %2392 = vmatprep.subr.mxu1 %v10847_v12  ;;  %v10850_v59 = vld [vmem:[#allocation471_spill] sm:$0xff] }
 0x1d1   :  { %2262 = vmatprep.subr.mxu0 %v7859_v20  ;;  %2394 = vmatpush2.msra.mxu1 %v10848_v0  ;;  %v10851_v20 = vld [vmem:[#allocation472_spill] sm:$0xff] }
 0x1d2   :  { %2265 = vmatpush2.msra.mxu0 %v7882_v45  ;;  %2396 = vmatprep.subr.mxu1 %v10849_v24  ;;  %v10863_v45 = vld [vmem:[#allocation266_spill] sm:$0xff] }
 0x1d3   :  { %2268 = vmatprep.subr.mxu0 %v7894_v31  ;;  %2398 = vmatpush2.msra.mxu1 %v7752_v54  ;;  %v10852_v31 = vld [vmem:[#allocation263_spill] sm:$0xff] }
 0x1d4   :  { %2271 = vmatpush2.msra.mxu0 %v7906_v41  ;;  %2400 = vmatprep.subr.mxu1 %v10850_v59  ;;  %v10853_v41 = vld [vmem:[#allocation260_spill] sm:$0xff] }
 0x1d5   :  { %2274 = vmatprep.subr.mxu0 %v7915_v49  ;;  %2402 = vmatpush2.msra.mxu1 %v10851_v20  ;;  %v10854_v49 = vld [vmem:[#allocation293_spill] sm:$0xff] }
 0x1d6   :  { %2277 = vmatpush2.msra.mxu0 %v7927_v15  ;;  %2404 = vmatprep.subr.mxu1 %v7774_v47  ;;  %v10855_v15 = vld [vmem:[#allocation296_spill] sm:$0xff] }
 0x1d7   :  { %2280 = vmatprep.subr.mxu0 %v7939_v57  ;;  %2286 = vmatprep.mubr.f32.mxu0 %v10852_v31  ;;  %v10856_v57 = vld [vmem:[#allocation300_spill] sm:$0xff]  ;;  %v10858_v31 = vld [vmem:[#allocation306_spill] sm:$0xff] }
 0x1d8   :  { %2283 = vmatpush2.msra.mxu0 %v7951_v35  ;;  %2406 = vmatpush2.msra.mxu1 %v7797_v30  ;;  %v10857_v35 = vld [vmem:[#allocation304_spill] sm:$0xff] }
 0x1d9   :  { %2289 = vmatmul.mubr.f32.vlgmr.msra.gmra.mxu0 %v10853_v41  ;;  %2408 = vmatprep.subr.mxu1 %v7808_v48  ;;  %v10859_v41 = vld [vmem:[#allocation307_spill] sm:$0xff] }
 0x1da   :  { %2439 = vmatprep.subr.mxu0 %v10854_v49  ;;  %2410 = vmatpush2.msra.mxu1 %v7817_v17  ;;  %v10860_v49 = vld [vmem:[#allocation313_spill] sm:$0xff] }
 0x1db   :  { %2443 = vmatpush1.msra.mxu0 %v10855_v15  ;;  %2412 = vmatprep.subr.mxu1 %v7841_v6  ;;  %v10861_v15 = vld [vmem:[#allocation269_spill] sm:$0xff] }
 0x1dc   :  { %2447 = vmatprep.subr.mxu0 %v10856_v57  ;;  %2414 = vmatpush2.msra.mxu1 %v7853_v26  ;;  %v10862_v57 = vld [vmem:[#allocation316_spill] sm:$0xff] }
 0x1dd   :  { %2451 = vmatpush1.msra.mxu0 %v10857_v35  ;;  %2416 = vmatprep.subr.mxu1 %v7865_v29  ;;  %v10864_v35 = vld [vmem:[#allocation321_spill] sm:$0xff] }
 0x1de   :  { %2455 = vmatprep.subr.mxu0 %v10858_v31  ;;  %2418 = vmatpush2.msra.mxu1 %v7867_v33  ;;  %v10865_v31 = vld [vmem:[#allocation325_spill] sm:$0xff] }
 0x1df   :  { %2459 = vmatpush1.msra.mxu0 %v10859_v41  ;;  %2420 = vmatprep.subr.mxu1 %v7888_v60  ;;  %v10866_v41 = vld [vmem:[#allocation328_spill] sm:$0xff] }
 0x1e0   :  { %2463 = vmatprep.subr.mxu0 %v10860_v49  ;;  %2422 = vmatpush2.msra.mxu1 %v7900_v5  ;;  %v10867_v49 = vld [vmem:[#allocation335_spill] sm:$0xff] }
 0x1e1   :  { %2426 = vmatprep.mubr.f32.mxu1 %v10861_v15  ;;  %2467 = vmatpush1.msra.mxu0 %v10862_v57  ;;  %v10868_v15 = vld [vmem:[#allocation336_spill] sm:$0xff] }
 0x1e2   :  { %2430 = vmatmul.mubr.f32.vlgmr.msra.gmra.mxu1 %v10863_v45  ;;  %2471 = vmatprep.subr.mxu0 %v10864_v35  ;;  %v10869_v45 = vld [vmem:[#allocation338_spill] sm:$0xff]  ;;  %v10890_v57 = vld [vmem:[#allocation420_spill] sm:$0xff] }
 0x1e3   :  { %2702 = vmatprep.subr.mxu1 %v10775_v42  ;;  %2475 = vmatpush1.msra.mxu0 %v10865_v31  ;;  %v10870_v35 = vld [vmem:[#allocation342_spill] sm:$0xff]  ;;  %v10871_v31 = vld [vmem:[#allocation345_spill] sm:$0xff]  ;;  %v11037_v42 = vld [vmem:[#allocation199_spill] sm:$0xff] }
 0x1e4   :  { %2704 = vmatpush1.msra.mxu1 %v10777_v40  ;;  %2479 = vmatprep.subr.mxu0 %v10866_v41  ;;  %v10872_v41 = vld [vmem:[#allocation351_spill] sm:$0xff]  ;;  %v11034_v40 = vld [vmem:[#allocation194_spill] sm:$0xff] }
 0x1e5   :  { %2706 = vmatprep.subr.mxu1 %v10779_v27  ;;  %2483 = vmatpush1.msra.mxu0 %v10867_v49  ;;  %v10873_v49 = vld [vmem:[#allocation355_spill] sm:$0xff]  ;;  %v11032_v27 = vld [vmem:[#allocation190_spill] sm:$0xff] }
 0x1e6   :  { %2708 = vmatpush1.msra.mxu1 %v7088_v10  ;;  %2487 = vmatprep.subr.mxu0 %v10868_v15  ;;  %v10874_v15 = vld [vmem:[#allocation361_spill] sm:$0xff]  ;;  %v11030_v10 = vld [vmem:[#allocation187_spill] sm:$0xff] }
 0x1e7   :  { %2710 = vmatprep.subr.mxu1 %v10781_v51  ;;  %2491 = vmatpush1.msra.mxu0 %v10869_v45  ;;  %v10875_v45 = vld [vmem:[#allocation367_spill] sm:$0xff] }
 0x1e8   :  { %2712 = vmatpush1.msra.mxu1 %v10783_v43  ;;  %2495 = vmatprep.subr.mxu0 %v10870_v35  ;;  %v10876_v35 = vld [vmem:[#allocation370_spill] sm:$0xff]  ;;  %v11027_v43 = vld [vmem:[#allocation184_spill] sm:$0xff] }
 0x1e9   :  { %2714 = vmatprep.subr.mxu1 %v10785_v46  ;;  %2499 = vmatpush1.msra.mxu0 %v10871_v31  ;;  %v10877_v31 = vld [vmem:[#allocation371_spill] sm:$0xff]  ;;  %v11025_v46 = vld [vmem:[#allocation201_spill] sm:$0xff] }
 0x1ea   :  { %2716 = vmatpush1.msra.mxu1 %v10787_v18  ;;  %2503 = vmatprep.subr.mxu0 %v10872_v41  ;;  %v10878_v41 = vld [vmem:[#allocation377_spill] sm:$0xff]  ;;  %v11023_v18 = vld [vmem:[#allocation195_spill] sm:$0xff] }
 0x1eb   :  { %2718 = vmatprep.subr.mxu1 %v10789_v25  ;;  %2507 = vmatpush1.msra.mxu0 %v10873_v49  ;;  %v10879_v49 = vld [vmem:[#allocation380_spill] sm:$0xff] }
 0x1ec   :  { %2720 = vmatpush1.msra.mxu1 %v10791_v39  ;;  %2511 = vmatprep.subr.mxu0 %v10874_v15  ;;  %v10880_v15 = vld [vmem:[#allocation385_spill] sm:$0xff]  ;;  %v11014_v39 = vld [vmem:[#allocation162_spill] sm:$0xff] }
 0x1ed   :  { %2722 = vmatprep.subr.mxu1 %v10793_v32  ;;  %2515 = vmatpush1.msra.mxu0 %v10875_v45  ;;  %v10881_v45 = vld [vmem:[#allocation389_spill] sm:$0xff]  ;;  %v11012_v32 = vld [vmem:[#allocation158_spill] sm:$0xff] }
 0x1ee   :  { %2724 = vmatpush1.msra.mxu1 %v10794_v37  ;;  %2519 = vmatprep.subr.mxu0 %v10876_v35  ;;  %v10882_v35 = vld [vmem:[#allocation392_spill] sm:$0xff]  ;;  %v11011_v37 = vld [vmem:[#allocation175_spill] sm:$0xff] }
 0x1ef   :  { %2726 = vmatprep.subr.mxu1 %v10795_v1  ;;  %2523 = vmatpush1.msra.mxu0 %v10877_v31  ;;  %v10883_v31 = vld [vmem:[#allocation399_spill] sm:$0xff] }
 0x1f0   :  { %2728 = vmatpush1.msra.mxu1 %v10797_v62  ;;  %2527 = vmatprep.subr.mxu0 %v10878_v41  ;;  %v10884_v41 = vld [vmem:[#allocation400_spill] sm:$0xff]  ;;  %v11010_v1 = vld [vmem:[#allocation155_spill] sm:$0xff] }
 0x1f1   :  { %2730 = vmatprep.subr.mxu1 %v10798_v34  ;;  %2531 = vmatpush1.msra.mxu0 %v10879_v49  ;;  %v10885_v49 = vld [vmem:[#allocation402_spill] sm:$0xff]  ;;  %v11008_v34 = vld [vmem:[#allocation172_spill] sm:$0xff] }
 0x1f2   :  { %2732 = vmatpush1.msra.mxu1 %v10800_v11  ;;  %2535 = vmatprep.subr.mxu0 %v10880_v15  ;;  %v10886_v15 = vld [vmem:[#allocation406_spill] sm:$0xff]  ;;  %v11009_v62 = vld [vmem:[#allocation244_spill] sm:$0xff] }
 0x1f3   :  { %2734 = vmatprep.subr.mxu1 %v10802_v52  ;;  %2539 = vmatpush1.msra.mxu0 %v10881_v45  ;;  %v10887_v45 = vld [vmem:[#allocation409_spill] sm:$0xff] }
 0x1f4   :  { %2736 = vmatpush1.msra.mxu1 %v10804_v58  ;;  %2543 = vmatprep.subr.mxu0 %v10882_v35  ;;  %v10888_v35 = vld [vmem:[#allocation415_spill] sm:$0xff]  ;;  %v11005_v52 = vld [vmem:[#allocation169_spill] sm:$0xff] }
 0x1f5   :  { %2738 = vmatprep.subr.mxu1 %v10806_v50  ;;  %2547 = vmatpush1.msra.mxu0 %v10883_v31  ;;  %v10889_v31 = vld [vmem:[#allocation360_spill] sm:$0xff]  ;;  %v8363_v50 = vld [vmem:[#allocation7] sm:$0xff] }
 0x1f6   :  { %2740 = vmatpush1.msra.mxu1 %v10807_v16  ;;  %2551 = vmatprep.subr.mxu0 %v10884_v41  ;;  %v10891_v41 = vld [vmem:[#allocation363_spill] sm:$0xff]  ;;  %11001 = vst [vmem:[#allocation260_spill] sm:$0xff] %v8363_v50 }
 0x1f7   :  { %2742 = vmatprep.subr.mxu1 %v10808_v2  ;;  %2555 = vmatpush1.msra.mxu0 %v10885_v49  ;;  %v10893_v49 = vld [vmem:[#allocation366_spill] sm:$0xff]  ;;  %v10997_v2 = vld [vmem:[#allocation153_spill] sm:$0xff]  ;;  %v10999_v16 = vld [vmem:[#allocation139_spill] sm:$0xff] }
 0x1f8   :  { %2744 = vmatpush1.msra.mxu1 %v7297_v53  ;;  %2559 = vmatprep.subr.mxu0 %v10886_v15  ;;  %v10894_v53 = vld [vmem:[#allocation431_spill] sm:$0xff] }
 0x1f9   :  { %2746 = vmatprep.subr.mxu1 %v10809_v21  ;;  %2563 = vmatpush1.msra.mxu0 %v10887_v45  ;;  %v10895_v15 = vld [vmem:[#allocation435_spill] sm:$0xff]  ;;  %v10896_v45 = vld [vmem:[#allocation373_spill] sm:$0xff] }
 0x1fa   :  { %2748 = vmatpush1.msra.mxu1 %v10811_v56  ;;  %2567 = vmatprep.subr.mxu0 %v10888_v35  ;;  %v10897_v56 = vld [vmem:[#allocation437_spill] sm:$0xff]  ;;  %v10898_v35 = vld [vmem:[#allocation376_spill] sm:$0xff]  ;;  %v11003_v58 = vld [vmem:[#allocation163_spill] sm:$0xff] }
 0x1fb   :  { %2750 = vmatprep.subr.mxu1 %v10889_v31  ;;  %2571 = vmatpush2.msra.mxu0 %v10890_v57  ;;  %v10899_v31 = vld [vmem:[#allocation441_spill] sm:$0xff]  ;;  %v10900_v57 = vld [vmem:[#allocation444_spill] sm:$0xff] }
 0x1fc   :  { %2752 = vmatpush1.msra.mxu1 %v10891_v41  ;;  %2575 = vmatprep.subr.mxu0 %v10892_v23  ;;  %v10901_v23 = vld [vmem:[#allocation450_spill] sm:$0xff]  ;;  %v10995_v21 = vld [vmem:[#allocation149_spill] sm:$0xff] }
 0x1fd   :  { %2754 = vmatprep.subr.mxu1 %v10893_v49  ;;  %2579 = vmatpush2.msra.mxu0 %v10894_v53  ;;  %v10902_v53 = vld [vmem:[#allocation453_spill] sm:$0xff]  ;;  %v10991_v49 = vld [vmem:[#allocation143_spill] sm:$0xff]  ;;  %v10993_v41 = vld [vmem:[#allocation146_spill] sm:$0xff] }
 0x1fe   :  { %2756 = vmatpush1.msra.mxu1 %v10818_v44  ;;  %2583 = vmatprep.subr.mxu0 %v10895_v15  ;;  %v10903_v15 = vld [vmem:[#allocation396_spill] sm:$0xff] }
 0x1ff   :  { %2758 = vmatprep.subr.mxu1 %v10896_v45  ;;  %2587 = vmatpush2.msra.mxu0 %v10897_v56  ;;  %v10904_v45 = vld [vmem:[#allocation456_spill] sm:$0xff]  ;;  %v10905_v56 = vld [vmem:[#allocation398_spill] sm:$0xff] }
 0x200   :  { %2760 = vmatpush1.msra.mxu1 %v10898_v35  ;;  %2591 = vmatprep.subr.mxu0 %v10899_v31  ;;  %v10906_v35 = vld [vmem:[#allocation460_spill] sm:$0xff]  ;;  %v10907_v31 = vld [vmem:[#allocation405_spill] sm:$0xff] }
 0x201   :  { %2762 = vmatprep.subr.mxu1 %v10822_v4  ;;  %2595 = vmatpush2.msra.mxu0 %v10900_v57  ;;  %v10908_v4 = vld [vmem:[#allocation464_spill] sm:$0xff]  ;;  %v10909_v57 = vld [vmem:[#allocation466_spill] sm:$0xff] }
 0x202   :  { %2764 = vmatpush1.msra.mxu1 %v10824_v38  ;;  %2599 = vmatprep.subr.mxu0 %v10901_v23  ;;  %v10910_v23 = vld [vmem:[#allocation470_spill] sm:$0xff]  ;;  %v10987_v38 = vld [vmem:[#allocation137_spill] sm:$0xff]  ;;  %v10989_v44 = vld [vmem:[#allocation140_spill] sm:$0xff] }
 0x203   :  { %2766 = vmatprep.subr.mxu1 %v10826_v19  ;;  %2603 = vmatpush2.msra.mxu0 %v10902_v53  ;;  %v10911_v53 = vld [vmem:[#allocation473_spill] sm:$0xff]  ;;  %v10985_v19 = vld [vmem:[#allocation131_spill] sm:$0xff] }
 0x204   :  { %2768 = vmatpush2.msra.mxu1 %v10903_v15  ;;  %2607 = vmatprep.subr.mxu0 %v10904_v45  ;;  %v10912_v45 = vld [vmem:[#allocation478_spill] sm:$0xff]  ;;  %v10983_v15 = vld [vmem:[#allocation127_spill] sm:$0xff] }
 0x205   :  { %2770 = vmatprep.subr.mxu1 %v10905_v56  ;;  %2611 = vmatpush2.msra.mxu0 %v10906_v35  ;;  %v10913_v35 = vld [vmem:[#allocation488_spill] sm:$0xff]  ;;  %v10981_v56 = vld [vmem:[#allocation121_spill] sm:$0xff] }
 0x206   :  { %2772 = vmatpush2.msra.mxu1 %v10907_v31  ;;  %2615 = vmatprep.subr.mxu0 %v10908_v4  ;;  %v10914_v4 = vld [vmem:[#allocation491_spill] sm:$0xff]  ;;  %v10979_v31 = vld [vmem:[#allocation117_spill] sm:$0xff] }
 0x207   :  { %2774 = vmatprep.subr.mxu1 %v10832_v55  ;;  %2619 = vmatpush2.msra.mxu0 %v10909_v57  ;;  %v10915_v57 = vld [vmem:[#allocation495_spill] sm:$0xff]  ;;  %v10977_v55 = vld [vmem:[#allocation114_spill] sm:$0xff] }
 0x208   :  { %2776 = vmatpush2.msra.mxu1 %v10833_v63  ;;  %2623 = vmatprep.subr.mxu0 %v10910_v23  ;;  %v10916_v23 = vld [vmem:[#allocation499_spill] sm:$0xff] }
 0x209   :  { %2778 = vmatprep.subr.mxu1 %v10834_v3  ;;  %2627 = vmatpush2.msra.mxu0 %v10911_v53  ;;  %v10917_v53 = vld [vmem:[#allocation503_spill] sm:$0xff]  ;;  %v10973_v3 = vld [vmem:[#allocation108_spill] sm:$0xff] }
 0x20a   :  { %2780 = vmatpush2.msra.mxu1 %v10836_v14  ;;  %2631 = vmatprep.subr.mxu0 %v10912_v45  ;;  %v10918_v45 = vld [vmem:[#allocation505_spill] sm:$0xff]  ;;  %v10975_v63 = vld [vmem:[#allocation111_spill] sm:$0xff] }
 0x20b   :  { %2782 = vmatprep.subr.mxu1 %v10838_v36  ;;  %2635 = vmatpush2.msra.mxu0 %v10913_v35  ;;  %v10919_v35 = vld [vmem:[#allocation508_spill] sm:$0xff]  ;;  %v10969_v36 = vld [vmem:[#allocation99_spill] sm:$0xff]  ;;  %v10971_v14 = vld [vmem:[#allocation105_spill] sm:$0xff] }
 0x20c   :  { %2784 = vmatpush2.msra.mxu1 %v10840_v8  ;;  %2639 = vmatprep.subr.mxu0 %v10914_v4  ;;  %v10920_v4 = vld [vmem:[#allocation511_spill] sm:$0xff] }
 0x20d   :  { %2786 = vmatprep.subr.mxu1 %v10841_v22  ;;  %2643 = vmatpush2.msra.mxu0 %v10915_v57  ;;  %v10921_v57 = vld [vmem:[#allocation516_spill] sm:$0xff]  ;;  %v10965_v22 = vld [vmem:[#allocation89_spill] sm:$0xff]  ;;  %v10967_v8 = vld [vmem:[#allocation95_spill] sm:$0xff] }
 0x20e   :  { %2788 = vmatpush2.msra.mxu1 %v10842_v61  ;;  %2647 = vmatprep.subr.mxu0 %v10916_v23  ;;  %v10922_v23 = vld [vmem:[#allocation519_spill] sm:$0xff]  ;;  %v10963_v61 = vld [vmem:[#allocation85_spill] sm:$0xff] }
 0x20f   :  { %2790 = vmatprep.subr.mxu1 %v10843_v7  ;;  %2651 = vmatpush2.msra.mxu0 %v10917_v53  ;;  %v10923_v53 = vld [vmem:[#allocation522_spill] sm:$0xff] }
 0x210   :  { %2792 = vmatpush2.msra.mxu1 %v10844_v9  ;;  %2655 = vmatprep.subr.mxu0 %v10918_v45  ;;  %v10924_v45 = vld [vmem:[#allocation525_spill] sm:$0xff]  ;;  %v10959_v9 = vld [vmem:[#allocation79_spill] sm:$0xff]  ;;  %v10961_v7 = vld [vmem:[#allocation82_spill] sm:$0xff] }
 0x211   :  { %2794 = vmatprep.subr.mxu1 %v10845_v13  ;;  %2659 = vmatpush2.msra.mxu0 %v10919_v35  ;;  %v10925_v35 = vld [vmem:[#allocation527_spill] sm:$0xff]  ;;  %v10957_v13 = vld [vmem:[#allocation76_spill] sm:$0xff] }
 0x212   :  { %2796 = vmatpush2.msra.mxu1 %v10846_v28  ;;  %2663 = vmatprep.subr.mxu0 %v10920_v4  ;;  %v10926_v4 = vld [vmem:[#allocation529_spill] sm:$0xff] }
 0x213   :  { %2798 = vmatprep.subr.mxu1 %v10847_v12  ;;  %2667 = vmatpush2.msra.mxu0 %v10921_v57  ;;  %v10927_v57 = vld [vmem:[#allocation531_spill] sm:$0xff]  ;;  %v10953_v12 = vld [vmem:[#allocation70_spill] sm:$0xff]  ;;  %v10955_v28 = vld [vmem:[#allocation73_spill] sm:$0xff] }
 0x214   :  { %2800 = vmatpush2.msra.mxu1 %v10848_v0  ;;  %2671 = vmatprep.subr.mxu0 %v10922_v23  ;;  %v10928_v23 = vld [vmem:[#allocation258_spill] sm:$0xff]  ;;  %v10951_v0 = vld [vmem:[#allocation60_spill] sm:$0xff] }
 0x215   :  { %2802 = vmatprep.subr.mxu1 %v10849_v24  ;;  %2675 = vmatpush2.msra.mxu0 %v10923_v53  ;;  %v10929_v53 = vld [vmem:[#allocation254_spill] sm:$0xff]  ;;  %v10949_v24 = vld [vmem:[#allocation56_spill] sm:$0xff] }
 0x216   :  { %2804 = vmatpush2.msra.mxu1 %v7752_v54  ;;  %2679 = vmatprep.subr.mxu0 %v10924_v45  ;;  %v10930_v45 = vld [vmem:[#allocation17_spill] sm:$0xff] }
 0x217   :  { %2806 = vmatprep.subr.mxu1 %v10850_v59  ;;  %2683 = vmatpush2.msra.mxu0 %v10925_v35  ;;  %v10931_v35 = vld [vmem:[#allocation18_spill] sm:$0xff]  ;;  %v10944_v59 = vld [vmem:[#allocation32_spill] sm:$0xff]  ;;  %v10947_v54 = vld [vmem:[#allocation53_spill] sm:$0xff] }
 0x218   :  { %2808 = vmatpush2.msra.mxu1 %v10851_v20  ;;  %2687 = vmatprep.subr.mxu0 %v10926_v4  ;;  %v10932_v4 = vld [vmem:[#allocation19_spill] sm:$0xff]  ;;  %v10942_v20 = vld [vmem:[#allocation29_spill] sm:$0xff] }
 0x219   :  { %2810 = vmatprep.subr.mxu1 %v7774_v47  ;;  %2691 = vmatpush2.msra.mxu0 %v10927_v57  ;;  %v10933_v57 = vld [vmem:[#allocation20_spill] sm:$0xff]  ;;  %v10940_v47 = vld [vmem:[#allocation27_spill] sm:$0xff] }
 0x21a   :  { %2693 = vmatprep.mubr.f32.mxu0 %v10928_v23  ;;  %2812 = vmatpush2.msra.mxu1 %v7797_v30  ;;  %v10934_v30 = vld [vmem:[#allocation21_spill] sm:$0xff] }
 0x21b   :  { %2695 = vmatmul.mubr.f32.vlgmr.msra.gmra.mxu0 %v10929_v53  ;;  %2814 = vmatprep.subr.mxu1 %v7808_v48  ;;  %v10935_v48 = vld [vmem:[#allocation22_spill] sm:$0xff] }
 0x21c   :  { %2839 = vmatprep.subr.mxu0 %v10930_v45  ;;  %2816 = vmatpush2.msra.mxu1 %v7817_v17  ;;  %v10936_v17 = vld [vmem:[#allocation23_spill] sm:$0xff] }
 0x21d   :  { %2841 = vmatpush1.msra.mxu0 %v10931_v35  ;;  %2818 = vmatprep.subr.mxu1 %v7841_v6  ;;  %v10937_v6 = vld [vmem:[#allocation24_spill] sm:$0xff] }
 0x21e   :  { %2843 = vmatprep.subr.mxu0 %v10932_v4  ;;  %2820 = vmatpush2.msra.mxu1 %v7853_v26  ;;  %v10938_v26 = vld [vmem:[#allocation25_spill] sm:$0xff] }
 0x21f   :  { %2845 = vmatpush1.msra.mxu0 %v10933_v57  ;;  %2822 = vmatprep.subr.mxu1 %v7865_v29  ;;  %v10939_v29 = vld [vmem:[#allocation44_spill] sm:$0xff] }
 0x220   :  { %2847 = vmatprep.subr.mxu0 %v10934_v30  ;;  %2824 = vmatpush2.msra.mxu1 %v7867_v33  ;;  %v10941_v33 = vld [vmem:[#allocation47_spill] sm:$0xff] }
 0x221   :  { %2849 = vmatpush1.msra.mxu0 %v10935_v48  ;;  %2826 = vmatprep.subr.mxu1 %v7888_v60  ;;  %v10943_v60 = vld [vmem:[#allocation48_spill] sm:$0xff] }
 0x222   :  { %2851 = vmatprep.subr.mxu0 %v10936_v17  ;;  %2828 = vmatpush2.msra.mxu1 %v7900_v5  ;;  %v10945_v5 = vld [vmem:[#allocation50_spill] sm:$0xff] }
 0x223   :  { %2830 = vmatprep.mubr.f32.mxu1 %v10928_v23  ;;  %2853 = vmatpush1.msra.mxu0 %v10937_v6  ;;  %v10946_v23 = vld [vmem:[#allocation34_spill] sm:$0xff] }
 0x224   :  { %2832 = vmatmul.mubr.f32.vlgmr.msra.gmra.mxu1 %v10929_v53  ;;  %2855 = vmatprep.subr.mxu0 %v10938_v26  ;;  %v10948_v53 = vld [vmem:[#allocation38_spill] sm:$0xff] }
 0x225   :  { %2988 = vmatprep.subr.mxu1 %v10939_v29  ;;  %2857 = vmatpush1.msra.mxu0 %v10940_v47  ;;  %v10950_v29 = vld [vmem:[#allocation41_spill] sm:$0xff] }
 0x226   :  { %2994 = vmatpush1.msra.mxu1 %v10941_v33  ;;  %2859 = vmatprep.subr.mxu0 %v10942_v20  ;;  %v10952_v33 = vld [vmem:[#allocation46_spill] sm:$0xff] }
 0x227   :  { %3000 = vmatprep.subr.mxu1 %v10943_v60  ;;  %2861 = vmatpush1.msra.mxu0 %v10944_v59  ;;  %v10954_v60 = vld [vmem:[#allocation52_spill] sm:$0xff] }
 0x228   :  { %3006 = vmatpush1.msra.mxu1 %v10945_v5  ;;  %2863 = vmatprep.subr.mxu0 %v10946_v23  ;;  %v10956_v5 = vld [vmem:[#allocation55_spill] sm:$0xff] }
 0x229   :  { %3012 = vmatprep.subr.mxu1 %v10947_v54  ;;  %2865 = vmatpush1.msra.mxu0 %v10948_v53  ;;  %v10958_v54 = vld [vmem:[#allocation59_spill] sm:$0xff] }
 0x22a   :  { %3018 = vmatpush1.msra.mxu1 %v10949_v24  ;;  %2867 = vmatprep.subr.mxu0 %v10950_v29  ;;  %v10960_v24 = vld [vmem:[#allocation63_spill] sm:$0xff] }
 0x22b   :  { %3024 = vmatprep.subr.mxu1 %v10951_v0  ;;  %2869 = vmatpush1.msra.mxu0 %v10952_v33  ;;  %v10962_v0 = vld [vmem:[#allocation66_spill] sm:$0xff] }
 0x22c   :  { %3030 = vmatpush1.msra.mxu1 %v10953_v12  ;;  %2871 = vmatprep.subr.mxu0 %v10954_v60  ;;  %v10964_v12 = vld [vmem:[#allocation69_spill] sm:$0xff] }
 0x22d   :  { %3036 = vmatprep.subr.mxu1 %v10955_v28  ;;  %2873 = vmatpush1.msra.mxu0 %v10956_v5  ;;  %v10966_v28 = vld [vmem:[#allocation75_spill] sm:$0xff] }
 0x22e   :  { %3042 = vmatpush1.msra.mxu1 %v10957_v13  ;;  %2875 = vmatprep.subr.mxu0 %v10958_v54  ;;  %v10968_v13 = vld [vmem:[#allocation80_spill] sm:$0xff] }
 0x22f   :  { %3048 = vmatprep.subr.mxu1 %v10959_v9  ;;  %2877 = vmatpush1.msra.mxu0 %v10960_v24  ;;  %v10970_v9 = vld [vmem:[#allocation84_spill] sm:$0xff] }
 0x230   :  { %3054 = vmatpush1.msra.mxu1 %v10961_v7  ;;  %2879 = vmatprep.subr.mxu0 %v10962_v0  ;;  %v10972_v7 = vld [vmem:[#allocation88_spill] sm:$0xff] }
 0x231   :  { %3060 = vmatprep.subr.mxu1 %v10963_v61  ;;  %2881 = vmatpush1.msra.mxu0 %v10964_v12  ;;  %v10974_v61 = vld [vmem:[#allocation91_spill] sm:$0xff] }
 0x232   :  { %3066 = vmatpush1.msra.mxu1 %v10965_v22  ;;  %2883 = vmatprep.subr.mxu0 %v10966_v28  ;;  %v10976_v22 = vld [vmem:[#allocation94_spill] sm:$0xff] }
 0x233   :  { %3072 = vmatprep.subr.mxu1 %v10967_v8  ;;  %2885 = vmatpush1.msra.mxu0 %v10968_v13  ;;  %v10978_v8 = vld [vmem:[#allocation98_spill] sm:$0xff] }
 0x234   :  { %3078 = vmatpush1.msra.mxu1 %v10969_v36  ;;  %2887 = vmatprep.subr.mxu0 %v10970_v9  ;;  %v10980_v36 = vld [vmem:[#allocation103_spill] sm:$0xff] }
 0x235   :  { %3084 = vmatprep.subr.mxu1 %v10971_v14  ;;  %2889 = vmatpush1.msra.mxu0 %v10972_v7  ;;  %v10982_v14 = vld [vmem:[#allocation107_spill] sm:$0xff] }
 0x236   :  { %3090 = vmatpush1.msra.mxu1 %v10973_v3  ;;  %2891 = vmatprep.subr.mxu0 %v10974_v61  ;;  %v10984_v3 = vld [vmem:[#allocation112_spill] sm:$0xff] }
 0x237   :  { %3096 = vmatprep.subr.mxu1 %v10975_v63  ;;  %2893 = vmatpush1.msra.mxu0 %v10976_v22  ;;  %v10986_v63 = vld [vmem:[#allocation116_spill] sm:$0xff] }
 0x238   :  { %3102 = vmatpush1.msra.mxu1 %v10977_v55  ;;  %2895 = vmatprep.subr.mxu0 %v10978_v8  ;;  %v10988_v55 = vld [vmem:[#allocation120_spill] sm:$0xff] }
 0x239   :  { %3108 = vmatprep.subr.mxu1 %v10979_v31  ;;  %2897 = vmatpush1.msra.mxu0 %v10980_v36  ;;  %v10990_v31 = vld [vmem:[#allocation123_spill] sm:$0xff] }
 0x23a   :  { %3114 = vmatpush1.msra.mxu1 %v10981_v56  ;;  %2899 = vmatprep.subr.mxu0 %v10982_v14  ;;  %v10992_v56 = vld [vmem:[#allocation126_spill] sm:$0xff] }
 0x23b   :  { %3120 = vmatprep.subr.mxu1 %v10983_v15  ;;  %2901 = vmatpush1.msra.mxu0 %v10984_v3  ;;  %v10994_v15 = vld [vmem:[#allocation130_spill] sm:$0xff] }
 0x23c   :  { %3126 = vmatpush1.msra.mxu1 %v10985_v19  ;;  %2903 = vmatprep.subr.mxu0 %v10986_v63  ;;  %v10996_v19 = vld [vmem:[#allocation135_spill] sm:$0xff] }
 0x23d   :  { %3132 = vmatprep.subr.mxu1 %v10987_v38  ;;  %2905 = vmatpush2.msra.mxu0 %v10988_v55  ;;  %v8359_v38 = vld [vmem:[#allocation7 + $0x8] sm:$0xff] }
 0x23e   :  { %3138 = vmatpush1.msra.mxu1 %v10989_v44  ;;  %2907 = vmatprep.subr.mxu0 %v10990_v31  ;;  %10998 = vst [vmem:[#allocation263_spill] sm:$0xff] %v8359_v38  ;;  %v11000_v44 = vld [vmem:[#allocation159_spill] sm:$0xff] }
 0x23f   :  { %3144 = vmatprep.subr.mxu1 %v10991_v49  ;;  %2909 = vmatpush2.msra.mxu0 %v10992_v56  ;;  %v11002_v49 = vld [vmem:[#allocation144_spill] sm:$0xff] }
 0x240   :  { %3150 = vmatpush1.msra.mxu1 %v10993_v41  ;;  %2911 = vmatprep.subr.mxu0 %v10994_v15  ;;  %v11004_v41 = vld [vmem:[#allocation148_spill] sm:$0xff] }
 0x241   :  { %3156 = vmatprep.subr.mxu1 %v10995_v21  ;;  %2913 = vmatpush2.msra.mxu0 %v10996_v19  ;;  %v11006_v21 = vld [vmem:[#allocation247_spill] sm:$0xff] }
 0x242   :  { %3162 = vmatpush1.msra.mxu1 %v10997_v2  ;;  %2915 = vmatprep.subr.mxu0 %v10999_v16  ;;  %v141_v11 = vmul.f32 %v11006_v21, %v8359_v38  ;;  %v11007_v2 = vld [vmem:[#allocation152_spill] sm:$0xff]  ;;  %v11017_v38 = vld [vmem:[#allocation167_spill] sm:$0xff] }
 0x243   :  { %3168 = vmatprep.subr.mxu1 %v11000_v44  ;;  %2917 = vmatpush2.msra.mxu0 %v11002_v49  ;;  %v140_v44 = vmul.f32 %v11009_v62, %v8363_v50  ;;  %v11020_v62 = vld [vmem:[#allocation171_spill] sm:$0xff] }
 0x244   :  { %3174 = vmatpush1.msra.mxu1 %v11003_v58  ;;  %2919 = vmatprep.subr.mxu0 %v11004_v41  ;;  %v11013_v58 = vld [vmem:[#allocation178_spill] sm:$0xff]  ;;  %v8381_v21 = vand.u32 4294901760, %v141_v11  ;;  %v11021_v50 = vld [vmem:[#allocation191_spill] sm:$0xff] }
 0x245   :  { %3180 = vmatprep.subr.mxu1 %v11005_v52  ;;  %2921 = vmatpush2.msra.mxu0 %v11007_v2  ;;  %v11015_v52 = vld [vmem:[#allocation181_spill] sm:$0xff]  ;;  %v8385_v25 = vand.u32 4294901760, %v140_v44 }
 0x246   :  { %3186 = vmatpush2.msra.mxu1 %v11008_v34  ;;  %2923 = vmatprep.subr.mxu0 %v11010_v1  ;;  %11016 = vst [vmem:[#allocation269_spill] sm:$0xff] %v8381_v21  ;;  %v11018_v34 = vld [vmem:[#allocation185_spill] sm:$0xff] }
 0x247   :  { %3192 = vmatprep.subr.mxu1 %v11011_v37  ;;  %2925 = vmatpush2.msra.mxu0 %v11012_v32  ;;  %11019 = vst [vmem:[#allocation266_spill] sm:$0xff] %v8385_v25  ;;  %v11022_v37 = vld [vmem:[#allocation176_spill] sm:$0xff]  ;;  %v8399_v51 = vsub.f32 %v140_v44, %v8385_v25 }
 0x248   :  { %3198 = vmatpush2.msra.mxu1 %v11013_v58  ;;  %2927 = vmatprep.subr.mxu0 %v11014_v39  ;;  %v11024_v58 = vld [vmem:[#allocation180_spill] sm:$0xff] }
 0x249   :  { %3204 = vmatprep.subr.mxu1 %v11015_v52  ;;  %2929 = vmatpush2.msra.mxu0 %v11017_v38  ;;  %v8394_v52 = vsub.f32 %v141_v11, %v8381_v21  ;;  %11029 = vst [vmem:[#allocation254_spill] sm:$0xff] %v8399_v51  ;;  %v8413_v44 = vand.u32 4294901760, %v8399_v51 }
 0x24a   :  { %3210 = vmatpush2.msra.mxu1 %v11018_v34  ;;  %2931 = vmatprep.subr.mxu0 %v11020_v62  ;;  %v11028_v34 = vld [vmem:[#allocation204_spill] sm:$0xff] }
 0x24b   :  { %3216 = vmatprep.subr.mxu1 %v11021_v50  ;;  %2933 = vmatpush2.msra.mxu0 %v11022_v37  ;;  %11026 = vst [vmem:[#allocation258_spill] sm:$0xff] %v8394_v52  ;;  %v11031_v50 = vld [vmem:[#allocation207_spill] sm:$0xff]  ;;  %v8408_v11 = vand.u32 4294901760, %v8394_v52  ;;  %11039 = vst [vmem:[#allocation18_spill] sm:$0xff] %v8413_v44 }
 0x24c   :  { %3222 = vmatpush2.msra.mxu1 %v11023_v18  ;;  %2935 = vmatprep.subr.mxu0 %v11024_v58  ;;  %v11033_v18 = vld [vmem:[#allocation210_spill] sm:$0xff]  ;;  %v11048_v58 = vld [vmem:[#allocation219_spill] sm:$0xff] }
 0x24d   :  { %3228 = vmatprep.subr.mxu1 %v11025_v46  ;;  %2937 = vmatpush2.msra.mxu0 %v11027_v43  ;;  %v11035_v46 = vld [vmem:[#allocation213_spill] sm:$0xff]  ;;  %11036 = vst [vmem:[#allocation17_spill] sm:$0xff] %v8408_v11  ;;  %v11046_v43 = vld [vmem:[#allocation216_spill] sm:$0xff] }
 0x24e   :  { %3234 = vmatpush2.msra.mxu1 %v11028_v34  ;;  %2939 = vmatprep.subr.mxu0 %v11030_v10  ;;  %v11038_v34 = vld [vmem:[#allocation217_spill] sm:$0xff]  ;;  %v11040_v10 = vld [vmem:[#allocation203_spill] sm:$0xff] }
 0x24f   :  { %3240 = vmatprep.subr.mxu1 %v11031_v50  ;;  %2941 = vmatpush2.msra.mxu0 %v11032_v27  ;;  %v11041_v50 = vld [vmem:[#allocation223_spill] sm:$0xff]  ;;  %v11042_v27 = vld [vmem:[#allocation208_spill] sm:$0xff] }
 0x250   :  { %3246 = vmatpush2.msra.mxu1 %v11033_v18  ;;  %2943 = vmatprep.subr.mxu0 %v11034_v40  ;;  %v11043_v18 = vld [vmem:[#allocation227_spill] sm:$0xff]  ;;  %v11044_v40 = vld [vmem:[#allocation212_spill] sm:$0xff] }
 0x251   :  { %3252 = vmatprep.subr.mxu1 %v11035_v46  ;;  %2945 = vmatpush2.msra.mxu0 %v11037_v42  ;;  %v11045_v46 = vld [vmem:[#allocation233_spill] sm:$0xff]  ;;  %v2969_v42 = vsub.f32 %v8394_v52, %v8408_v11 }
 0x252   :  { %3258 = vmatpush2.msra.mxu1 %v11038_v34  ;;  %2947 = vmatprep.subr.mxu0 %v11040_v10  ;;  %v11047_v34 = vld [vmem:[#allocation236_spill] sm:$0xff]  ;;  %v2975_v10 = vsub.f32 %v8399_v51, %v8413_v44  ;;  %v11058_v44 = vld [vmem:[#allocation235_spill] sm:$0xff] }
 0x253   :  { %3264 = vmatprep.subr.mxu1 %v11041_v50  ;;  %2949 = vmatpush2.msra.mxu0 %v11042_v27  ;;  %v11049_v50 = vld [vmem:[#allocation239_spill] sm:$0xff]  ;;  %v11050_v27 = vld [vmem:[#allocation222_spill] sm:$0xff]  ;;  %v8433_v11 = vand.u32 4294901760, %v2969_v42 }
 0x254   :  { %3270 = vmatpush2.msra.mxu1 %v11043_v18  ;;  %2951 = vmatprep.subr.mxu0 %v11044_v40  ;;  %v11051_v18 = vld [vmem:[#allocation242_spill] sm:$0xff]  ;;  %v8437_v52 = vand.u32 4294901760, %v2975_v10  ;;  %v11065_v10 = vld [vmem:[#allocation28_spill] sm:$0xff] }
 0x255   :  { %3276 = vmatprep.subr.mxu1 %v11045_v46  ;;  %2953 = vmatpush2.msra.mxu0 %v11046_v43  ;;  %v11052_v40 = vld [vmem:[#allocation226_spill] sm:$0xff]  ;;  %v11053_v46 = vld [vmem:[#allocation245_spill] sm:$0xff]  ;;  %11054 = vst [vmem:[#allocation19_spill] sm:$0xff] %v8433_v11  ;;  %v11055_v43 = vld [vmem:[#allocation231_spill] sm:$0xff] }
 0x256   :  { %3282 = vmatpush2.msra.mxu1 %v11047_v34  ;;  %2955 = vmatprep.subr.mxu0 %v11048_v58  ;;  %v11056_v34 = vld [vmem:[#allocation249_spill] sm:$0xff]  ;;  %11057 = vst [vmem:[#allocation20_spill] sm:$0xff] %v8437_v52  ;;  %v11063_v42 = vld [vmem:[#allocation26_spill] sm:$0xff] }
 0x257   :  { %3288 = vmatprep.subr.mxu1 %v11049_v50  ;;  %2957 = vmatpush2.msra.mxu0 %v11050_v27  ;;  %v11059_v58 = vld [vmem:[#allocation253_spill] sm:$0xff]  ;;  %v11060_v50 = vld [vmem:[#allocation240_spill] sm:$0xff] }
 0x258   :  { %3294 = vmatpush2.msra.mxu1 %v11051_v18  ;;  %2959 = vmatprep.subr.mxu0 %v11052_v40  ;;  %v11061_v27 = vld [vmem:[#allocation257_spill] sm:$0xff]  ;;  %v11062_v18 = vld [vmem:[#allocation264_spill] sm:$0xff] }
 0x259   :  { %3300 = vmatprep.subr.mxu1 %v11053_v46  ;;  %2961 = vmatpush2.msra.mxu0 %v11055_v43  ;;  %v11064_v46 = vld [vmem:[#allocation267_spill] sm:$0xff] }
 0x25a   :  { %3306 = vmatpush2.msra.mxu1 %v11056_v34  ;;  %2963 = vmatprep.subr.mxu0 %v11058_v44  ;;  %v11066_v34 = vld [vmem:[#allocation270_spill] sm:$0xff] }
 0x25b   :  { %3312 = vmatprep.subr.mxu1 %v11059_v58  ;;  %2965 = vmatpush2.msra.mxu0 %v11060_v50  ;;  %v11067_v44 = vld [vmem:[#allocation30_spill] sm:$0xff]  ;;  %v11068_v58 = vld [vmem:[#allocation273_spill] sm:$0xff] }
 0x25c   :  { %3318 = vmatpush2.msra.mxu1 %v11061_v27  ;;  %2971 = vmatprep.mubr.f32.mxu0 %v8433_v11  ;;  %v11069_v50 = vld [vmem:[#allocation33_spill] sm:$0xff] }
 0x25d   :  { %3324 = vmatprep.subr.mxu1 %v11062_v18  ;;  %3378 = vmatprep.subr.mxu0 %v11063_v42  ;;  %v11070_v27 = vld [vmem:[#allocation277_spill] sm:$0xff]  ;;  %v11072_v18 = vld [vmem:[#allocation280_spill] sm:$0xff] }
 0x25e   :  { %2977 = vmatmul.mubr.f32.vlgmr.msra.gmra.mxu0 %v8437_v52  ;;  %3330 = vmatpush2.msra.mxu1 %v11064_v46  ;;  %v11071_v11 = vld [vmem:[#allocation37_spill] sm:$0xff]  ;;  %v11073_v42 = vld [vmem:[#allocation40_spill] sm:$0xff]  ;;  %v11075_v46 = vld [vmem:[#allocation43_spill] sm:$0xff] }
 0x25f   :  { %3381 = vmatpush1.msra.mxu0 %v11065_v10  ;;  %3336 = vmatprep.subr.mxu1 %v11066_v34  ;;  %v11074_v52 = vld [vmem:[#allocation281_spill] sm:$0xff]  ;;  %v11076_v10 = vld [vmem:[#allocation282_spill] sm:$0xff] }
 0x260   :  { %3384 = vmatprep.subr.mxu0 %v11067_v44  ;;  %3342 = vmatpush2.msra.mxu1 %v11068_v58  ;;  %v11077_v44 = vld [vmem:[#allocation51_spill] sm:$0xff]  ;;  %v11080_v34 = vld [vmem:[#allocation62_spill] sm:$0xff]  ;;  %v11082_v58 = vld [vmem:[#allocation68_spill] sm:$0xff] }
 0x261   :  { %3387 = vmatpush1.msra.mxu0 %v11069_v50  ;;  %3348 = vmatprep.subr.mxu1 %v11070_v27  ;;  %v11078_v50 = vld [vmem:[#allocation54_spill] sm:$0xff]  ;;  %v11083_v27 = vld [vmem:[#allocation72_spill] sm:$0xff] }
 0x262   :  { %3390 = vmatprep.subr.mxu0 %v11071_v11  ;;  %3354 = vmatpush2.msra.mxu1 %v11072_v18  ;;  %v11079_v11 = vld [vmem:[#allocation58_spill] sm:$0xff] }
 0x263   :  { %3393 = vmatpush1.msra.mxu0 %v11073_v42  ;;  %3360 = vmatprep.subr.mxu1 %v11074_v52  ;;  %v11081_v52 = vld [vmem:[#allocation65_spill] sm:$0xff]  ;;  %v11084_v18 = vld [vmem:[#allocation78_spill] sm:$0xff] }
 0x264   :  { %3396 = vmatprep.subr.mxu0 %v11075_v46  ;;  %3366 = vmatpush2.msra.mxu1 %v11076_v10  ;;  %v11085_v42 = vld [vmem:[#allocation81_spill] sm:$0xff]  ;;  %v11086_v46 = vld [vmem:[#allocation87_spill] sm:$0xff]  ;;  %v11087_v10 = vld [vmem:[#allocation90_spill] sm:$0xff] }
 0x265   :  { %3368 = vmatprep.mubr.f32.mxu1 %v8381_v21  ;;  %3399 = vmatpush1.msra.mxu0 %v11077_v44  ;;  %v11088_v44 = vld [vmem:[#allocation93_spill] sm:$0xff]  ;;  %v11140_v21 = vld [vmem:[#allocation274_spill] sm:$0xff] }
 0x266   :  { %3370 = vmatmul.mubr.f32.vlgmr.msra.gmra.mxu1 %v8385_v25  ;;  %3402 = vmatprep.subr.mxu0 %v11078_v50  ;;  %v11089_v50 = vld [vmem:[#allocation97_spill] sm:$0xff]  ;;  %v11138_v25 = vld [vmem:[#allocation272_spill] sm:$0xff] }
 0x267   :  { %3580 = vmatprep.subr.mxu1 %v10930_v45  ;;  %3405 = vmatpush1.msra.mxu0 %v11079_v11  ;;  %v11090_v11 = vld [vmem:[#allocation101_spill] sm:$0xff] }
 0x268   :  { %3582 = vmatpush1.msra.mxu1 %v10931_v35  ;;  %3408 = vmatprep.subr.mxu0 %v11080_v34  ;;  %v11091_v34 = vld [vmem:[#allocation104_spill] sm:$0xff] }
 0x269   :  { %3584 = vmatprep.subr.mxu1 %v10932_v4  ;;  %3411 = vmatpush1.msra.mxu0 %v11081_v52  ;;  %v11092_v52 = vld [vmem:[#allocation110_spill] sm:$0xff] }
 0x26a   :  { %3586 = vmatpush1.msra.mxu1 %v10933_v57  ;;  %3414 = vmatprep.subr.mxu0 %v11082_v58  ;;  %v11093_v58 = vld [vmem:[#allocation113_spill] sm:$0xff] }
 0x26b   :  { %3588 = vmatprep.subr.mxu1 %v10934_v30  ;;  %3417 = vmatpush1.msra.mxu0 %v11083_v27  ;;  %v11094_v27 = vld [vmem:[#allocation119_spill] sm:$0xff] }
 0x26c   :  { %3590 = vmatpush1.msra.mxu1 %v10935_v48  ;;  %3420 = vmatprep.subr.mxu0 %v11084_v18  ;;  %v11095_v18 = vld [vmem:[#allocation122_spill] sm:$0xff] }
 0x26d   :  { %3592 = vmatprep.subr.mxu1 %v10936_v17  ;;  %3423 = vmatpush1.msra.mxu0 %v11085_v42  ;;  %v11096_v42 = vld [vmem:[#allocation125_spill] sm:$0xff] }
 0x26e   :  { %3594 = vmatpush1.msra.mxu1 %v10937_v6  ;;  %3426 = vmatprep.subr.mxu0 %v11086_v46  ;;  %v11097_v46 = vld [vmem:[#allocation129_spill] sm:$0xff] }
 0x26f   :  { %3596 = vmatprep.subr.mxu1 %v10938_v26  ;;  %3429 = vmatpush1.msra.mxu0 %v11087_v10  ;;  %v11098_v10 = vld [vmem:[#allocation133_spill] sm:$0xff] }
 0x270   :  { %3598 = vmatpush1.msra.mxu1 %v10940_v47  ;;  %3432 = vmatprep.subr.mxu0 %v11088_v44  ;;  %v11099_v44 = vld [vmem:[#allocation136_spill] sm:$0xff] }
 0x271   :  { %3600 = vmatprep.subr.mxu1 %v10942_v20  ;;  %3435 = vmatpush1.msra.mxu0 %v11089_v50  ;;  %v11100_v50 = vld [vmem:[#allocation142_spill] sm:$0xff] }
 0x272   :  { %3602 = vmatpush1.msra.mxu1 %v10944_v59  ;;  %3438 = vmatprep.subr.mxu0 %v11090_v11  ;;  %v11101_v11 = vld [vmem:[#allocation145_spill] sm:$0xff] }
 0x273   :  { %3604 = vmatprep.subr.mxu1 %v10946_v23  ;;  %3441 = vmatpush1.msra.mxu0 %v11091_v34  ;;  %v11102_v34 = vld [vmem:[#allocation151_spill] sm:$0xff] }
 0x274   :  { %3606 = vmatpush1.msra.mxu1 %v10948_v53  ;;  %3444 = vmatprep.subr.mxu0 %v11092_v52  ;;  %v11103_v52 = vld [vmem:[#allocation154_spill] sm:$0xff] }
 0x275   :  { %3608 = vmatprep.subr.mxu1 %v10950_v29  ;;  %3447 = vmatpush1.msra.mxu0 %v11093_v58  ;;  %v11104_v58 = vld [vmem:[#allocation157_spill] sm:$0xff] }
 0x276   :  { %3610 = vmatpush1.msra.mxu1 %v10952_v33  ;;  %3450 = vmatprep.subr.mxu0 %v11094_v27  ;;  %v11105_v27 = vld [vmem:[#allocation161_spill] sm:$0xff] }
 0x277   :  { %3612 = vmatprep.subr.mxu1 %v10954_v60  ;;  %3453 = vmatpush1.msra.mxu0 %v11095_v18  ;;  %v11106_v18 = vld [vmem:[#allocation165_spill] sm:$0xff] }
 0x278   :  { %3614 = vmatpush1.msra.mxu1 %v10956_v5  ;;  %3456 = vmatprep.subr.mxu0 %v11096_v42  ;;  %v11107_v42 = vld [vmem:[#allocation168_spill] sm:$0xff] }
 0x279   :  { %3616 = vmatprep.subr.mxu1 %v10958_v54  ;;  %3459 = vmatpush1.msra.mxu0 %v11097_v46  ;;  %v11108_v46 = vld [vmem:[#allocation174_spill] sm:$0xff] }
 0x27a   :  { %3618 = vmatpush1.msra.mxu1 %v10960_v24  ;;  %3462 = vmatprep.subr.mxu0 %v11098_v10  ;;  %v11109_v10 = vld [vmem:[#allocation177_spill] sm:$0xff] }
 0x27b   :  { %3620 = vmatprep.subr.mxu1 %v10962_v0  ;;  %3465 = vmatpush1.msra.mxu0 %v11099_v44  ;;  %v11110_v44 = vld [vmem:[#allocation183_spill] sm:$0xff] }
 0x27c   :  { %3622 = vmatpush1.msra.mxu1 %v10964_v12  ;;  %3468 = vmatprep.subr.mxu0 %v11100_v50  ;;  %v11111_v50 = vld [vmem:[#allocation186_spill] sm:$0xff] }
 0x27d   :  { %3624 = vmatprep.subr.mxu1 %v10966_v28  ;;  %3471 = vmatpush1.msra.mxu0 %v11101_v11  ;;  %v11112_v11 = vld [vmem:[#allocation189_spill] sm:$0xff] }
 0x27e   :  { %3626 = vmatpush1.msra.mxu1 %v10968_v13  ;;  %3474 = vmatprep.subr.mxu0 %v11102_v34  ;;  %v11113_v34 = vld [vmem:[#allocation193_spill] sm:$0xff] }
 0x27f   :  { %3628 = vmatprep.subr.mxu1 %v10970_v9  ;;  %3477 = vmatpush2.msra.mxu0 %v11103_v52  ;;  %v11114_v52 = vld [vmem:[#allocation197_spill] sm:$0xff] }
 0x280   :  { %3630 = vmatpush1.msra.mxu1 %v10972_v7  ;;  %3480 = vmatprep.subr.mxu0 %v11104_v58  ;;  %v11115_v58 = vld [vmem:[#allocation200_spill] sm:$0xff] }
 0x281   :  { %3632 = vmatprep.subr.mxu1 %v10974_v61  ;;  %3483 = vmatpush2.msra.mxu0 %v11105_v27  ;;  %v11116_v27 = vld [vmem:[#allocation206_spill] sm:$0xff] }
 0x282   :  { %3634 = vmatpush1.msra.mxu1 %v10976_v22  ;;  %3486 = vmatprep.subr.mxu0 %v11106_v18  ;;  %v11117_v18 = vld [vmem:[#allocation209_spill] sm:$0xff] }
 0x283   :  { %3636 = vmatprep.subr.mxu1 %v10978_v8  ;;  %3489 = vmatpush2.msra.mxu0 %v11107_v42  ;;  %v11118_v42 = vld [vmem:[#allocation215_spill] sm:$0xff] }
 0x284   :  { %3638 = vmatpush1.msra.mxu1 %v10980_v36  ;;  %3492 = vmatprep.subr.mxu0 %v11108_v46  ;;  %v11119_v46 = vld [vmem:[#allocation218_spill] sm:$0xff] }
 0x285   :  { %3640 = vmatprep.subr.mxu1 %v10982_v14  ;;  %3495 = vmatpush2.msra.mxu0 %v11109_v10  ;;  %v11120_v10 = vld [vmem:[#allocation221_spill] sm:$0xff] }
 0x286   :  { %3642 = vmatpush1.msra.mxu1 %v10984_v3  ;;  %3498 = vmatprep.subr.mxu0 %v11110_v44  ;;  %v11121_v44 = vld [vmem:[#allocation225_spill] sm:$0xff] }
 0x287   :  { %3644 = vmatprep.subr.mxu1 %v10986_v63  ;;  %3501 = vmatpush2.msra.mxu0 %v11111_v50  ;;  %v11122_v50 = vld [vmem:[#allocation229_spill] sm:$0xff] }
 0x288   :  { %3646 = vmatpush2.msra.mxu1 %v10988_v55  ;;  %3504 = vmatprep.subr.mxu0 %v11112_v11  ;;  %v11123_v11 = vld [vmem:[#allocation232_spill] sm:$0xff] }
 0x289   :  { %3648 = vmatprep.subr.mxu1 %v10990_v31  ;;  %3507 = vmatpush2.msra.mxu0 %v11113_v34  ;;  %v11124_v34 = vld [vmem:[#allocation238_spill] sm:$0xff] }
 0x28a   :  { %3650 = vmatpush2.msra.mxu1 %v10992_v56  ;;  %3510 = vmatprep.subr.mxu0 %v11114_v52  ;;  %v11125_v52 = vld [vmem:[#allocation241_spill] sm:$0xff] }
 0x28b   :  { %3652 = vmatprep.subr.mxu1 %v10994_v15  ;;  %3513 = vmatpush2.msra.mxu0 %v11115_v58  ;;  %v11126_v58 = vld [vmem:[#allocation248_spill] sm:$0xff] }
 0x28c   :  { %3654 = vmatpush2.msra.mxu1 %v10996_v19  ;;  %3516 = vmatprep.subr.mxu0 %v11116_v27  ;;  %v11127_v27 = vld [vmem:[#allocation180_spill] sm:$0xff] }
 0x28d   :  { %3656 = vmatprep.subr.mxu1 %v10999_v16  ;;  %3519 = vmatpush2.msra.mxu0 %v11117_v18  ;;  %v11128_v18 = vld [vmem:[#allocation250_spill] sm:$0xff] }
 0x28e   :  { %3658 = vmatpush2.msra.mxu1 %v11002_v49  ;;  %3522 = vmatprep.subr.mxu0 %v11118_v42  ;;  %v11129_v42 = vld [vmem:[#allocation184_spill] sm:$0xff] }
 0x28f   :  { %3660 = vmatprep.subr.mxu1 %v11004_v41  ;;  %3525 = vmatpush2.msra.mxu0 %v11119_v46  ;;  %v11130_v46 = vld [vmem:[#allocation252_spill] sm:$0xff] }
 0x290   :  { %3662 = vmatpush2.msra.mxu1 %v11007_v2  ;;  %3528 = vmatprep.subr.mxu0 %v11120_v10  ;;  %v11131_v10 = vld [vmem:[#allocation187_spill] sm:$0xff] }
 0x291   :  { %3664 = vmatprep.subr.mxu1 %v11010_v1  ;;  %3531 = vmatpush2.msra.mxu0 %v11121_v44  ;;  %v11132_v44 = vld [vmem:[#allocation256_spill] sm:$0xff] }
 0x292   :  { %3666 = vmatpush2.msra.mxu1 %v11012_v32  ;;  %3534 = vmatprep.subr.mxu0 %v11122_v50  ;;  %v11133_v50 = vld [vmem:[#allocation190_spill] sm:$0xff] }
 0x293   :  { %3668 = vmatprep.subr.mxu1 %v11014_v39  ;;  %3537 = vmatpush2.msra.mxu0 %v11123_v11  ;;  %v11134_v11 = vld [vmem:[#allocation262_spill] sm:$0xff] }
 0x294   :  { %3670 = vmatpush2.msra.mxu1 %v11017_v38  ;;  %3540 = vmatprep.subr.mxu0 %v11124_v34  ;;  %v11135_v34 = vld [vmem:[#allocation194_spill] sm:$0xff] }
 0x295   :  { %3672 = vmatprep.subr.mxu1 %v11020_v62  ;;  %3543 = vmatpush2.msra.mxu0 %v11125_v52  ;;  %v11136_v52 = vld [vmem:[#allocation265_spill] sm:$0xff] }
 0x296   :  { %3674 = vmatpush2.msra.mxu1 %v11022_v37  ;;  %3546 = vmatprep.subr.mxu0 %v11126_v58  ;;  %v11137_v58 = vld [vmem:[#allocation199_spill] sm:$0xff] }
 0x297   :  { %3676 = vmatprep.subr.mxu1 %v11127_v27  ;;  %3549 = vmatpush2.msra.mxu0 %v11128_v18  ;;  %v11139_v18 = vld [vmem:[#allocation203_spill] sm:$0xff] }
 0x298   :  { %3678 = vmatpush2.msra.mxu1 %v11129_v42  ;;  %3552 = vmatprep.subr.mxu0 %v11130_v46  ;;  %v11141_v46 = vld [vmem:[#allocation258_spill] sm:$0xff] }
 0x299   :  { %3680 = vmatprep.subr.mxu1 %v11131_v10  ;;  %3555 = vmatpush2.msra.mxu0 %v11132_v44  ;;  %v11142_v10 = vld [vmem:[#allocation208_spill] sm:$0xff] }
 0x29a   :  { %3682 = vmatpush2.msra.mxu1 %v11133_v50  ;;  %3558 = vmatprep.subr.mxu0 %v11134_v11  ;;  %v11143_v44 = vld [vmem:[#allocation212_spill] sm:$0xff]  ;;  %v11144_v11 = vld [vmem:[#allocation31_spill] sm:$0xff] }
 0x29b   :  { %3684 = vmatprep.subr.mxu1 %v11135_v34  ;;  %3561 = vmatpush2.msra.mxu0 %v11136_v52  ;;  %v11145_v34 = vld [vmem:[#allocation216_spill] sm:$0xff]  ;;  %v11146_v52 = vld [vmem:[#allocation35_spill] sm:$0xff] }
 0x29c   :  { %3686 = vmatpush2.msra.mxu1 %v11137_v58  ;;  %3564 = vmatprep.subr.mxu0 %v11138_v25  ;;  %v11147_v58 = vld [vmem:[#allocation219_spill] sm:$0xff]  ;;  %v11148_v25 = vld [vmem:[#allocation36_spill] sm:$0xff] }
 0x29d   :  { %3688 = vmatprep.subr.mxu1 %v11139_v18  ;;  %3567 = vmatpush2.msra.mxu0 %v11140_v21  ;;  %v11149_v18 = vld [vmem:[#allocation222_spill] sm:$0xff]  ;;  %v11150_v21 = vld [vmem:[#allocation39_spill] sm:$0xff] }
 0x29e   :  { %3570 = vmatprep.mubr.f32.mxu0 %v11141_v46  ;;  %3690 = vmatpush2.msra.mxu1 %v11142_v10  ;;  %v11151_v46 = vld [vmem:[#allocation42_spill] sm:$0xff] }
 0x29f   :  { %3573 = vmatmul.mubr.f32.vlgmr.msra.gmra.mxu0 %v8399_v51  ;;  %3692 = vmatprep.subr.mxu1 %v11143_v44  ;;  %v11152_v51 = vld [vmem:[#allocation45_spill] sm:$0xff] }
 0x2a0   :  { %3723 = vmatprep.subr.mxu0 %v11144_v11  ;;  %3694 = vmatpush2.msra.mxu1 %v11145_v34  ;;  %v11153_v11 = vld [vmem:[#allocation235_spill] sm:$0xff]  ;;  %v11154_v34 = vld [vmem:[#allocation49_spill] sm:$0xff] }
 0x2a1   :  { %3727 = vmatpush1.msra.mxu0 %v11146_v52  ;;  %3696 = vmatprep.subr.mxu1 %v11147_v58  ;;  %v11155_v52 = vld [vmem:[#allocation240_spill] sm:$0xff]  ;;  %v11156_v58 = vld [vmem:[#allocation17_spill] sm:$0xff] }
 0x2a2   :  { %3731 = vmatprep.subr.mxu0 %v11148_v25  ;;  %3698 = vmatpush2.msra.mxu1 %v11149_v18  ;;  %v11157_v25 = vld [vmem:[#allocation57_spill] sm:$0xff]  ;;  %v11158_v18 = vld [vmem:[#allocation18_spill] sm:$0xff] }
 0x2a3   :  { %3735 = vmatpush1.msra.mxu0 %v11150_v21  ;;  %3700 = vmatprep.subr.mxu1 %v11052_v40  ;;  %v11159_v21 = vld [vmem:[#allocation61_spill] sm:$0xff] }
 0x2a4   :  { %3739 = vmatprep.subr.mxu0 %v11151_v46  ;;  %3702 = vmatpush2.msra.mxu1 %v11055_v43  ;;  %v11160_v46 = vld [vmem:[#allocation64_spill] sm:$0xff] }
 0x2a5   :  { %3743 = vmatpush1.msra.mxu0 %v11152_v51  ;;  %3704 = vmatprep.subr.mxu1 %v11153_v11  ;;  %v11161_v51 = vld [vmem:[#allocation67_spill] sm:$0xff] }
 0x2a6   :  { %3747 = vmatprep.subr.mxu0 %v11154_v34  ;;  %3706 = vmatpush2.msra.mxu1 %v11155_v52  ;;  %v11162_v34 = vld [vmem:[#allocation71_spill] sm:$0xff] }
 0x2a7   :  { %3710 = vmatprep.mubr.f32.mxu1 %v11156_v58  ;;  %3751 = vmatpush1.msra.mxu0 %v11157_v25  ;;  %v11163_v58 = vld [vmem:[#allocation74_spill] sm:$0xff]  ;;  %v11164_v25 = vld [vmem:[#allocation77_spill] sm:$0xff] }
 0x2a8   :  { %3714 = vmatmul.mubr.f32.vlgmr.msra.gmra.mxu1 %v11158_v18  ;;  %3755 = vmatprep.subr.mxu0 %v11159_v21  ;;  %v11213_v21 = vld [vmem:[#allocation194_spill] sm:$0xff]  ;;  %v11327_v18 = vld [vmem:[#allocation497_spill] sm:$0xff] }
 0x2a9   :  { %3986 = vmatprep.subr.mxu1 %v10930_v45  ;;  %3759 = vmatpush1.msra.mxu0 %v11160_v46  ;;  %v11165_v45 = vld [vmem:[#allocation83_spill] sm:$0xff] }
 0x2aa   :  { %3988 = vmatpush1.msra.mxu1 %v10931_v35  ;;  %3763 = vmatprep.subr.mxu0 %v11161_v51  ;;  %v11166_v35 = vld [vmem:[#allocation86_spill] sm:$0xff]  ;;  %v11215_v46 = vld [vmem:[#allocation199_spill] sm:$0xff] }
 0x2ab   :  { %3990 = vmatprep.subr.mxu1 %v10932_v4  ;;  %3767 = vmatpush1.msra.mxu0 %v11162_v34  ;;  %v11167_v4 = vld [vmem:[#allocation92_spill] sm:$0xff]  ;;  %v11217_v51 = vld [vmem:[#allocation203_spill] sm:$0xff]  ;;  %v11219_v34 = vld [vmem:[#allocation269_spill] sm:$0xff] }
 0x2ac   :  { %3992 = vmatpush1.msra.mxu1 %v10933_v57  ;;  %3771 = vmatprep.subr.mxu0 %v11163_v58  ;;  %v11168_v57 = vld [vmem:[#allocation96_spill] sm:$0xff]  ;;  %v11210_v58 = vld [vmem:[#allocation187_spill] sm:$0xff] }
 0x2ad   :  { %3994 = vmatprep.subr.mxu1 %v10934_v30  ;;  %3775 = vmatpush1.msra.mxu0 %v11164_v25  ;;  %v11169_v30 = vld [vmem:[#allocation100_spill] sm:$0xff]  ;;  %v11220_v25 = vld [vmem:[#allocation266_spill] sm:$0xff] }
 0x2ae   :  { %3996 = vmatpush1.msra.mxu1 %v10935_v48  ;;  %3779 = vmatprep.subr.mxu0 %v11165_v45  ;;  %v11170_v48 = vld [vmem:[#allocation102_spill] sm:$0xff]  ;;  %v11222_v45 = vld [vmem:[#allocation216_spill] sm:$0xff] }
 0x2af   :  { %3998 = vmatprep.subr.mxu1 %v10936_v17  ;;  %3783 = vmatpush1.msra.mxu0 %v11166_v35  ;;  %v11171_v17 = vld [vmem:[#allocation106_spill] sm:$0xff]  ;;  %v11223_v35 = vld [vmem:[#allocation284_spill] sm:$0xff] }
 0x2b0   :  { %4000 = vmatpush1.msra.mxu1 %v10937_v6  ;;  %3787 = vmatprep.subr.mxu0 %v11167_v4  ;;  %v11172_v6 = vld [vmem:[#allocation109_spill] sm:$0xff]  ;;  %v11224_v4 = vld [vmem:[#allocation219_spill] sm:$0xff] }
 0x2b1   :  { %4002 = vmatprep.subr.mxu1 %v10938_v26  ;;  %3791 = vmatpush1.msra.mxu0 %v11168_v57  ;;  %v11173_v26 = vld [vmem:[#allocation115_spill] sm:$0xff]  ;;  %v11225_v57 = vld [vmem:[#allocation285_spill] sm:$0xff] }
 0x2b2   :  { %4004 = vmatpush1.msra.mxu1 %v10940_v47  ;;  %3795 = vmatprep.subr.mxu0 %v11169_v30  ;;  %v11174_v47 = vld [vmem:[#allocation118_spill] sm:$0xff] }
 0x2b3   :  { %4006 = vmatprep.subr.mxu1 %v10942_v20  ;;  %3799 = vmatpush1.msra.mxu0 %v11170_v48  ;;  %v11175_v20 = vld [vmem:[#allocation124_spill] sm:$0xff]  ;;  %v11226_v30 = vld [vmem:[#allocation222_spill] sm:$0xff]  ;;  %v11227_v48 = vld [vmem:[#allocation287_spill] sm:$0xff] }
 0x2b4   :  { %4008 = vmatpush1.msra.mxu1 %v10944_v59  ;;  %3803 = vmatprep.subr.mxu0 %v11171_v17  ;;  %v11176_v59 = vld [vmem:[#allocation128_spill] sm:$0xff] }
 0x2b5   :  { %4010 = vmatprep.subr.mxu1 %v10946_v23  ;;  %3807 = vmatpush1.msra.mxu0 %v11172_v6  ;;  %v11177_v23 = vld [vmem:[#allocation132_spill] sm:$0xff]  ;;  %v11231_v6 = vld [vmem:[#allocation294_spill] sm:$0xff] }
 0x2b6   :  { %4012 = vmatpush1.msra.mxu1 %v10948_v53  ;;  %3811 = vmatprep.subr.mxu0 %v11173_v26  ;;  %v11178_v53 = vld [vmem:[#allocation134_spill] sm:$0xff]  ;;  %v11230_v17 = vld [vmem:[#allocation292_spill] sm:$0xff]  ;;  %v11232_v26 = vld [vmem:[#allocation299_spill] sm:$0xff] }
 0x2b7   :  { %4014 = vmatprep.subr.mxu1 %v10950_v29  ;;  %3815 = vmatpush1.msra.mxu0 %v11174_v47  ;;  %v11179_v29 = vld [vmem:[#allocation138_spill] sm:$0xff]  ;;  %v11234_v47 = vld [vmem:[#allocation301_spill] sm:$0xff] }
 0x2b8   :  { %4016 = vmatpush1.msra.mxu1 %v10952_v33  ;;  %3819 = vmatprep.subr.mxu0 %v11175_v20  ;;  %v11180_v33 = vld [vmem:[#allocation141_spill] sm:$0xff]  ;;  %v11236_v20 = vld [vmem:[#allocation303_spill] sm:$0xff] }
 0x2b9   :  { %4018 = vmatprep.subr.mxu1 %v10954_v60  ;;  %3823 = vmatpush1.msra.mxu0 %v11176_v59  ;;  %v11181_v60 = vld [vmem:[#allocation147_spill] sm:$0xff]  ;;  %v11238_v59 = vld [vmem:[#allocation308_spill] sm:$0xff] }
 0x2ba   :  { %4020 = vmatpush1.msra.mxu1 %v10956_v5  ;;  %3827 = vmatprep.subr.mxu0 %v11177_v23  ;;  %v11182_v5 = vld [vmem:[#allocation150_spill] sm:$0xff]  ;;  %v11240_v23 = vld [vmem:[#allocation309_spill] sm:$0xff] }
 0x2bb   :  { %4022 = vmatprep.subr.mxu1 %v10958_v54  ;;  %3831 = vmatpush1.msra.mxu0 %v11178_v53  ;;  %v11183_v54 = vld [vmem:[#allocation156_spill] sm:$0xff]  ;;  %v11241_v53 = vld [vmem:[#allocation330_spill] sm:$0xff] }
 0x2bc   :  { %4024 = vmatpush1.msra.mxu1 %v10960_v24  ;;  %3835 = vmatprep.subr.mxu0 %v11179_v29  ;;  %v11184_v24 = vld [vmem:[#allocation160_spill] sm:$0xff] }
 0x2bd   :  { %4026 = vmatprep.subr.mxu1 %v10962_v0  ;;  %3839 = vmatpush1.msra.mxu0 %v11180_v33  ;;  %v11185_v0 = vld [vmem:[#allocation164_spill] sm:$0xff]  ;;  %v11243_v33 = vld [vmem:[#allocation331_spill] sm:$0xff] }
 0x2be   :  { %4028 = vmatpush1.msra.mxu1 %v10964_v12  ;;  %3843 = vmatprep.subr.mxu0 %v11181_v60  ;;  %v11186_v12 = vld [vmem:[#allocation166_spill] sm:$0xff]  ;;  %v11242_v29 = vld [vmem:[#allocation312_spill] sm:$0xff]  ;;  %v11244_v60 = vld [vmem:[#allocation315_spill] sm:$0xff] }
 0x2bf   :  { %4030 = vmatprep.subr.mxu1 %v10966_v28  ;;  %3847 = vmatpush1.msra.mxu0 %v11182_v5  ;;  %v11187_v28 = vld [vmem:[#allocation170_spill] sm:$0xff]  ;;  %v11245_v5 = vld [vmem:[#allocation337_spill] sm:$0xff] }
 0x2c0   :  { %4032 = vmatpush1.msra.mxu1 %v10968_v13  ;;  %3851 = vmatprep.subr.mxu0 %v11183_v54  ;;  %v11188_v13 = vld [vmem:[#allocation173_spill] sm:$0xff]  ;;  %v11246_v54 = vld [vmem:[#allocation319_spill] sm:$0xff] }
 0x2c1   :  { %4034 = vmatprep.subr.mxu1 %v10970_v9  ;;  %3855 = vmatpush2.msra.mxu0 %v11184_v24  ;;  %v11189_v9 = vld [vmem:[#allocation179_spill] sm:$0xff]  ;;  %v11247_v24 = vld [vmem:[#allocation340_spill] sm:$0xff] }
 0x2c2   :  { %4036 = vmatpush1.msra.mxu1 %v10972_v7  ;;  %3859 = vmatprep.subr.mxu0 %v11185_v0  ;;  %v11190_v7 = vld [vmem:[#allocation182_spill] sm:$0xff]  ;;  %v11248_v0 = vld [vmem:[#allocation324_spill] sm:$0xff] }
 0x2c3   :  { %4038 = vmatprep.subr.mxu1 %v10974_v61  ;;  %3863 = vmatpush2.msra.mxu0 %v11186_v12  ;;  %v11191_v61 = vld [vmem:[#allocation188_spill] sm:$0xff]  ;;  %v11249_v12 = vld [vmem:[#allocation347_spill] sm:$0xff] }
 0x2c4   :  { %4040 = vmatpush1.msra.mxu1 %v10976_v22  ;;  %3867 = vmatprep.subr.mxu0 %v11187_v28  ;;  %v11192_v22 = vld [vmem:[#allocation192_spill] sm:$0xff] }
 0x2c5   :  { %4042 = vmatprep.subr.mxu1 %v10978_v8  ;;  %3871 = vmatpush2.msra.mxu0 %v11188_v13  ;;  %v11193_v8 = vld [vmem:[#allocation196_spill] sm:$0xff]  ;;  %v11251_v13 = vld [vmem:[#allocation349_spill] sm:$0xff] }
 0x2c6   :  { %4044 = vmatpush1.msra.mxu1 %v10980_v36  ;;  %3875 = vmatprep.subr.mxu0 %v11189_v9  ;;  %v11194_v36 = vld [vmem:[#allocation198_spill] sm:$0xff]  ;;  %v11250_v28 = vld [vmem:[#allocation332_spill] sm:$0xff] }
 0x2c7   :  { %4046 = vmatprep.subr.mxu1 %v10982_v14  ;;  %3879 = vmatpush2.msra.mxu0 %v11190_v7  ;;  %v11195_v14 = vld [vmem:[#allocation202_spill] sm:$0xff]  ;;  %v11253_v7 = vld [vmem:[#allocation352_spill] sm:$0xff] }
 0x2c8   :  { %4048 = vmatpush1.msra.mxu1 %v10984_v3  ;;  %3883 = vmatprep.subr.mxu0 %v11191_v61  ;;  %v11196_v3 = vld [vmem:[#allocation205_spill] sm:$0xff]  ;;  %v11252_v9 = vld [vmem:[#allocation334_spill] sm:$0xff] }
 0x2c9   :  { %4050 = vmatprep.subr.mxu1 %v10986_v63  ;;  %3887 = vmatpush2.msra.mxu0 %v11192_v22  ;;  %v11197_v63 = vld [vmem:[#allocation211_spill] sm:$0xff]  ;;  %v11254_v61 = vld [vmem:[#allocation341_spill] sm:$0xff]  ;;  %v11255_v22 = vld [vmem:[#allocation358_spill] sm:$0xff] }
 0x2ca   :  { %4052 = vmatpush2.msra.mxu1 %v10988_v55  ;;  %3891 = vmatprep.subr.mxu0 %v11193_v8  ;;  %v11198_v55 = vld [vmem:[#allocation214_spill] sm:$0xff]  ;;  %v11256_v8 = vld [vmem:[#allocation343_spill] sm:$0xff] }
 0x2cb   :  { %4054 = vmatprep.subr.mxu1 %v10990_v31  ;;  %3895 = vmatpush2.msra.mxu0 %v11194_v36  ;;  %v11199_v31 = vld [vmem:[#allocation220_spill] sm:$0xff]  ;;  %v11257_v36 = vld [vmem:[#allocation359_spill] sm:$0xff] }
 0x2cc   :  { %4056 = vmatpush2.msra.mxu1 %v10992_v56  ;;  %3899 = vmatprep.subr.mxu0 %v11195_v14  ;;  %v11200_v56 = vld [vmem:[#allocation224_spill] sm:$0xff] }
 0x2cd   :  { %4058 = vmatprep.subr.mxu1 %v10994_v15  ;;  %3903 = vmatpush2.msra.mxu0 %v11196_v3  ;;  %v11201_v15 = vld [vmem:[#allocation228_spill] sm:$0xff]  ;;  %v11259_v3 = vld [vmem:[#allocation362_spill] sm:$0xff] }
 0x2ce   :  { %4060 = vmatpush2.msra.mxu1 %v10996_v19  ;;  %3907 = vmatprep.subr.mxu0 %v11197_v63  ;;  %v11202_v19 = vld [vmem:[#allocation230_spill] sm:$0xff]  ;;  %v11258_v14 = vld [vmem:[#allocation344_spill] sm:$0xff] }
 0x2cf   :  { %4062 = vmatprep.subr.mxu1 %v10999_v16  ;;  %3911 = vmatpush2.msra.mxu0 %v11198_v55  ;;  %v11203_v16 = vld [vmem:[#allocation234_spill] sm:$0xff]  ;;  %v11261_v55 = vld [vmem:[#allocation365_spill] sm:$0xff] }
 0x2d0   :  { %4064 = vmatpush2.msra.mxu1 %v11002_v49  ;;  %3915 = vmatprep.subr.mxu0 %v11199_v31  ;;  %v11204_v49 = vld [vmem:[#allocation237_spill] sm:$0xff]  ;;  %v11260_v63 = vld [vmem:[#allocation350_spill] sm:$0xff] }
 0x2d1   :  { %4066 = vmatprep.subr.mxu1 %v11004_v41  ;;  %3919 = vmatpush2.msra.mxu0 %v11200_v56  ;;  %v11205_v41 = vld [vmem:[#allocation243_spill] sm:$0xff]  ;;  %v11262_v31 = vld [vmem:[#allocation353_spill] sm:$0xff] }
 0x2d2   :  { %4068 = vmatpush2.msra.mxu1 %v11007_v2  ;;  %3923 = vmatprep.subr.mxu0 %v11201_v15  ;;  %v11206_v2 = vld [vmem:[#allocation246_spill] sm:$0xff]  ;;  %v11263_v56 = vld [vmem:[#allocation369_spill] sm:$0xff]  ;;  %v11264_v15 = vld [vmem:[#allocation360_spill] sm:$0xff] }
 0x2d3   :  { %4070 = vmatprep.subr.mxu1 %v11010_v1  ;;  %3927 = vmatpush2.msra.mxu0 %v11202_v19  ;;  %v11207_v1 = vld [vmem:[#allocation251_spill] sm:$0xff] }
 0x2d4   :  { %4072 = vmatpush2.msra.mxu1 %v11012_v32  ;;  %3931 = vmatprep.subr.mxu0 %v11203_v16  ;;  %v11208_v32 = vld [vmem:[#allocation255_spill] sm:$0xff] }
 0x2d5   :  { %4074 = vmatprep.subr.mxu1 %v11014_v39  ;;  %3935 = vmatpush2.msra.mxu0 %v11204_v49  ;;  %v11209_v39 = vld [vmem:[#allocation259_spill] sm:$0xff]  ;;  %v11267_v49 = vld [vmem:[#allocation382_spill] sm:$0xff] }
 0x2d6   :  { %4076 = vmatpush2.msra.mxu1 %v11017_v38  ;;  %3939 = vmatprep.subr.mxu0 %v11205_v41  ;;  %v11211_v38 = vld [vmem:[#allocation261_spill] sm:$0xff]  ;;  %v11265_v19 = vld [vmem:[#allocation375_spill] sm:$0xff]  ;;  %v11268_v41 = vld [vmem:[#allocation366_spill] sm:$0xff] }
 0x2d7   :  { %4078 = vmatprep.subr.mxu1 %v11020_v62  ;;  %3943 = vmatpush2.msra.mxu0 %v11206_v2  ;;  %v11212_v62 = vld [vmem:[#allocation268_spill] sm:$0xff]  ;;  %v11266_v16 = vld [vmem:[#allocation363_spill] sm:$0xff] }
 0x2d8   :  { %4080 = vmatpush2.msra.mxu1 %v11022_v37  ;;  %3947 = vmatprep.subr.mxu0 %v11207_v1  ;;  %v11214_v37 = vld [vmem:[#allocation271_spill] sm:$0xff]  ;;  %v11269_v2 = vld [vmem:[#allocation384_spill] sm:$0xff] }
 0x2d9   :  { %4082 = vmatprep.subr.mxu1 %v11127_v27  ;;  %3951 = vmatpush2.msra.mxu0 %v11208_v32  ;;  %v11216_v27 = vld [vmem:[#allocation275_spill] sm:$0xff]  ;;  %v11270_v1 = vld [vmem:[#allocation372_spill] sm:$0xff] }
 0x2da   :  { %4084 = vmatpush2.msra.mxu1 %v11129_v42  ;;  %3955 = vmatprep.subr.mxu0 %v11209_v39  ;;  %v11218_v42 = vld [vmem:[#allocation278_spill] sm:$0xff]  ;;  %v11271_v32 = vld [vmem:[#allocation391_spill] sm:$0xff]  ;;  %v11272_v39 = vld [vmem:[#allocation373_spill] sm:$0xff] }
 0x2db   :  { %4086 = vmatprep.subr.mxu1 %v11210_v58  ;;  %3959 = vmatpush2.msra.mxu0 %v11211_v38  ;;  %v11273_v58 = vld [vmem:[#allocation394_spill] sm:$0xff]  ;;  %v11274_v38 = vld [vmem:[#allocation376_spill] sm:$0xff] }
 0x2dc   :  { %4088 = vmatpush2.msra.mxu1 %v11133_v50  ;;  %3963 = vmatprep.subr.mxu0 %v11212_v62  ;;  %v11221_v50 = vld [vmem:[#allocation283_spill] sm:$0xff] }
 0x2dd   :  { %4090 = vmatprep.subr.mxu1 %v11213_v21  ;;  %3967 = vmatpush2.msra.mxu0 %v11214_v37  ;;  %v11275_v62 = vld [vmem:[#allocation395_spill] sm:$0xff]  ;;  %v11277_v37 = vld [vmem:[#allocation401_spill] sm:$0xff] }
 0x2de   :  { %4092 = vmatpush2.msra.mxu1 %v11215_v46  ;;  %3971 = vmatprep.subr.mxu0 %v11216_v27  ;;  %v11276_v21 = vld [vmem:[#allocation379_spill] sm:$0xff]  ;;  %v11279_v27 = vld [vmem:[#allocation404_spill] sm:$0xff] }
 0x2df   :  { %4094 = vmatprep.subr.mxu1 %v11217_v51  ;;  %3975 = vmatpush2.msra.mxu0 %v11218_v42  ;;  %v11278_v46 = vld [vmem:[#allocation383_spill] sm:$0xff]  ;;  %v11280_v51 = vld [vmem:[#allocation388_spill] sm:$0xff] }
 0x2e0   :  { %3977 = vmatprep.mubr.f32.mxu0 %v11219_v34  ;;  %4096 = vmatpush2.msra.mxu1 %v11142_v10  ;;  %v11228_v10 = vld [vmem:[#allocation288_spill] sm:$0xff]  ;;  %v11281_v42 = vld [vmem:[#allocation411_spill] sm:$0xff] }
 0x2e1   :  { %3979 = vmatmul.mubr.f32.vlgmr.msra.gmra.mxu0 %v11220_v25  ;;  %4098 = vmatprep.subr.mxu1 %v11143_v44  ;;  %v11229_v44 = vld [vmem:[#allocation289_spill] sm:$0xff] }
 0x2e2   :  { %4123 = vmatprep.subr.mxu0 %v11221_v50  ;;  %4100 = vmatpush2.msra.mxu1 %v11222_v45  ;;  %v11282_v45 = vld [vmem:[#allocation396_spill] sm:$0xff] }
 0x2e3   :  { %4125 = vmatpush1.msra.mxu0 %v11223_v35  ;;  %4102 = vmatprep.subr.mxu1 %v11224_v4  ;;  %v11283_v4 = vld [vmem:[#allocation413_spill] sm:$0xff] }
 0x2e4   :  { %4127 = vmatprep.subr.mxu0 %v11225_v57  ;;  %4104 = vmatpush2.msra.mxu1 %v11226_v30  ;;  %v11284_v30 = vld [vmem:[#allocation398_spill] sm:$0xff] }
 0x2e5   :  { %4129 = vmatpush1.msra.mxu0 %v11227_v48  ;;  %4106 = vmatprep.subr.mxu1 %v11052_v40  ;;  %v11233_v40 = vld [vmem:[#allocation311_spill] sm:$0xff] }
 0x2e6   :  { %4131 = vmatprep.subr.mxu0 %v11228_v10  ;;  %4108 = vmatpush2.msra.mxu1 %v11055_v43  ;;  %v11235_v43 = vld [vmem:[#allocation318_spill] sm:$0xff] }
 0x2e7   :  { %4133 = vmatpush1.msra.mxu0 %v11229_v44  ;;  %4110 = vmatprep.subr.mxu1 %v11153_v11  ;;  %v11237_v11 = vld [vmem:[#allocation320_spill] sm:$0xff] }
 0x2e8   :  { %4135 = vmatprep.subr.mxu0 %v11230_v17  ;;  %4112 = vmatpush2.msra.mxu1 %v11155_v52  ;;  %v11239_v52 = vld [vmem:[#allocation327_spill] sm:$0xff] }
 0x2e9   :  { %4114 = vmatprep.mubr.f32.mxu1 %v11219_v34  ;;  %4137 = vmatpush1.msra.mxu0 %v11231_v6 }
 0x2ea   :  { %4116 = vmatmul.mubr.f32.vlgmr.msra.gmra.mxu1 %v11220_v25  ;;  %4139 = vmatprep.subr.mxu0 %v11232_v26 }
 0x2eb   :  { %4272 = vmatprep.subr.mxu1 %v11233_v40  ;;  %4141 = vmatpush1.msra.mxu0 %v11234_v47  ;;  %v11285_v40 = vld [vmem:[#allocation416_spill] sm:$0xff] }
 0x2ec   :  { %4278 = vmatpush1.msra.mxu1 %v11235_v43  ;;  %4143 = vmatprep.subr.mxu0 %v11236_v20  ;;  %v11286_v43 = vld [vmem:[#allocation405_spill] sm:$0xff] }
 0x2ed   :  { %4284 = vmatprep.subr.mxu1 %v11237_v11  ;;  %4145 = vmatpush1.msra.mxu0 %v11238_v59  ;;  %v11287_v11 = vld [vmem:[#allocation422_spill] sm:$0xff] }
 0x2ee   :  { %4290 = vmatpush1.msra.mxu1 %v11239_v52  ;;  %4147 = vmatprep.subr.mxu0 %v11240_v23  ;;  %v11288_v52 = vld [vmem:[#allocation407_spill] sm:$0xff] }
 0x2ef   :  { %4296 = vmatprep.subr.mxu1 %v11241_v53  ;;  %4149 = vmatpush1.msra.mxu0 %v11242_v29  ;;  %v11289_v53 = vld [vmem:[#allocation423_spill] sm:$0xff] }
 0x2f0   :  { %4302 = vmatpush1.msra.mxu1 %v11243_v33  ;;  %4151 = vmatprep.subr.mxu0 %v11244_v60  ;;  %v11290_v33 = vld [vmem:[#allocation408_spill] sm:$0xff] }
 0x2f1   :  { %4308 = vmatprep.subr.mxu1 %v11245_v5  ;;  %4153 = vmatpush1.msra.mxu0 %v11246_v54  ;;  %v11291_v5 = vld [vmem:[#allocation426_spill] sm:$0xff] }
 0x2f2   :  { %4314 = vmatpush1.msra.mxu1 %v11247_v24  ;;  %4155 = vmatprep.subr.mxu0 %v11248_v0  ;;  %v11292_v24 = vld [vmem:[#allocation414_spill] sm:$0xff] }
 0x2f3   :  { %4320 = vmatprep.subr.mxu1 %v11249_v12  ;;  %4157 = vmatpush1.msra.mxu0 %v11250_v28  ;;  %v11293_v12 = vld [vmem:[#allocation429_spill] sm:$0xff] }
 0x2f4   :  { %4326 = vmatpush1.msra.mxu1 %v11251_v13  ;;  %4159 = vmatprep.subr.mxu0 %v11252_v9  ;;  %v11294_v13 = vld [vmem:[#allocation417_spill] sm:$0xff] }
 0x2f5   :  { %4332 = vmatprep.subr.mxu1 %v11253_v7  ;;  %4161 = vmatpush1.msra.mxu0 %v11254_v61  ;;  %v11295_v7 = vld [vmem:[#allocation433_spill] sm:$0xff] }
 0x2f6   :  { %4338 = vmatpush1.msra.mxu1 %v11255_v22  ;;  %4163 = vmatprep.subr.mxu0 %v11256_v8  ;;  %v11296_v22 = vld [vmem:[#allocation419_spill] sm:$0xff] }
 0x2f7   :  { %4344 = vmatprep.subr.mxu1 %v11257_v36  ;;  %4165 = vmatpush1.msra.mxu0 %v11258_v14  ;;  %v11297_v36 = vld [vmem:[#allocation439_spill] sm:$0xff] }
 0x2f8   :  { %4350 = vmatpush1.msra.mxu1 %v11259_v3  ;;  %4167 = vmatprep.subr.mxu0 %v11260_v63  ;;  %v11298_v3 = vld [vmem:[#allocation427_spill] sm:$0xff] }
 0x2f9   :  { %4356 = vmatprep.subr.mxu1 %v11261_v55  ;;  %4169 = vmatpush1.msra.mxu0 %v11262_v31  ;;  %v11299_v55 = vld [vmem:[#allocation446_spill] sm:$0xff] }
 0x2fa   :  { %4362 = vmatpush1.msra.mxu1 %v11263_v56  ;;  %4171 = vmatprep.subr.mxu0 %v11264_v15  ;;  %v11300_v56 = vld [vmem:[#allocation430_spill] sm:$0xff] }
 0x2fb   :  { %4368 = vmatprep.subr.mxu1 %v11265_v19  ;;  %4173 = vmatpush1.msra.mxu0 %v11266_v16  ;;  %v11301_v19 = vld [vmem:[#allocation449_spill] sm:$0xff] }
 0x2fc   :  { %4374 = vmatpush1.msra.mxu1 %v11267_v49  ;;  %4175 = vmatprep.subr.mxu0 %v11268_v41  ;;  %v11302_v49 = vld [vmem:[#allocation434_spill] sm:$0xff] }
 0x2fd   :  { %4380 = vmatprep.subr.mxu1 %v11269_v2  ;;  %4177 = vmatpush1.msra.mxu0 %v11270_v1  ;;  %v11303_v2 = vld [vmem:[#allocation455_spill] sm:$0xff] }
 0x2fe   :  { %4386 = vmatpush1.msra.mxu1 %v11271_v32  ;;  %4179 = vmatprep.subr.mxu0 %v11272_v39  ;;  %v11304_v32 = vld [vmem:[#allocation436_spill] sm:$0xff] }
 0x2ff   :  { %4392 = vmatprep.subr.mxu1 %v11273_v58  ;;  %4181 = vmatpush1.msra.mxu0 %v11274_v38  ;;  %v11305_v58 = vld [vmem:[#allocation458_spill] sm:$0xff] }
 0x300   :  { %4398 = vmatpush1.msra.mxu1 %v11275_v62  ;;  %4183 = vmatprep.subr.mxu0 %v11276_v21  ;;  %v11306_v62 = vld [vmem:[#allocation440_spill] sm:$0xff] }
 0x301   :  { %4404 = vmatprep.subr.mxu1 %v11277_v37  ;;  %4185 = vmatpush1.msra.mxu0 %v11278_v46  ;;  %v11307_v37 = vld [vmem:[#allocation462_spill] sm:$0xff] }
 0x302   :  { %4410 = vmatpush1.msra.mxu1 %v11279_v27  ;;  %4187 = vmatprep.subr.mxu0 %v11280_v51  ;;  %v11308_v27 = vld [vmem:[#allocation443_spill] sm:$0xff] }
 0x303   :  { %4416 = vmatprep.subr.mxu1 %v11281_v42  ;;  %4189 = vmatpush2.msra.mxu0 %v11282_v45  ;;  %v11309_v42 = vld [vmem:[#allocation465_spill] sm:$0xff] }
 0x304   :  { %4422 = vmatpush1.msra.mxu1 %v11283_v4  ;;  %4191 = vmatprep.subr.mxu0 %v11284_v30  ;;  %v11310_v4 = vld [vmem:[#allocation447_spill] sm:$0xff] }
 0x305   :  { %4428 = vmatprep.subr.mxu1 %v11285_v40  ;;  %4193 = vmatpush2.msra.mxu0 %v11286_v43  ;;  %v11311_v40 = vld [vmem:[#allocation468_spill] sm:$0xff] }
 0x306   :  { %4434 = vmatpush1.msra.mxu1 %v11287_v11  ;;  %4195 = vmatprep.subr.mxu0 %v11288_v52  ;;  %v11312_v11 = vld [vmem:[#allocation452_spill] sm:$0xff] }
 0x307   :  { %4440 = vmatprep.subr.mxu1 %v11289_v53  ;;  %4197 = vmatpush2.msra.mxu0 %v11290_v33  ;;  %v11313_v53 = vld [vmem:[#allocation474_spill] sm:$0xff] }
 0x308   :  { %4446 = vmatpush1.msra.mxu1 %v11291_v5  ;;  %4199 = vmatprep.subr.mxu0 %v11292_v24  ;;  %v11314_v5 = vld [vmem:[#allocation459_spill] sm:$0xff] }
 0x309   :  { %4452 = vmatprep.subr.mxu1 %v11293_v12  ;;  %4201 = vmatpush2.msra.mxu0 %v11294_v13  ;;  %v11315_v12 = vld [vmem:[#allocation477_spill] sm:$0xff] }
 0x30a   :  { %4458 = vmatpush1.msra.mxu1 %v11295_v7  ;;  %4203 = vmatprep.subr.mxu0 %v11296_v22  ;;  %v11316_v7 = vld [vmem:[#allocation463_spill] sm:$0xff] }
 0x30b   :  { %4464 = vmatprep.subr.mxu1 %v11297_v36  ;;  %4205 = vmatpush2.msra.mxu0 %v11298_v3  ;;  %v11317_v36 = vld [vmem:[#allocation480_spill] sm:$0xff] }
 0x30c   :  { %4470 = vmatpush2.msra.mxu1 %v11299_v55  ;;  %4207 = vmatprep.subr.mxu0 %v11300_v56  ;;  %v11318_v55 = vld [vmem:[#allocation469_spill] sm:$0xff] }
 0x30d   :  { %4476 = vmatprep.subr.mxu1 %v11301_v19  ;;  %4209 = vmatpush2.msra.mxu0 %v11302_v49  ;;  %v11319_v19 = vld [vmem:[#allocation483_spill] sm:$0xff] }
 0x30e   :  { %4482 = vmatpush2.msra.mxu1 %v11303_v2  ;;  %4211 = vmatprep.subr.mxu0 %v11304_v32  ;;  %v11320_v2 = vld [vmem:[#allocation471_spill] sm:$0xff] }
 0x30f   :  { %4488 = vmatprep.subr.mxu1 %v11305_v58  ;;  %4213 = vmatpush2.msra.mxu0 %v11306_v62  ;;  %v11321_v58 = vld [vmem:[#allocation486_spill] sm:$0xff] }
 0x310   :  { %4494 = vmatpush2.msra.mxu1 %v11307_v37  ;;  %4215 = vmatprep.subr.mxu0 %v11308_v27  ;;  %v11322_v37 = vld [vmem:[#allocation472_spill] sm:$0xff] }
 0x311   :  { %4500 = vmatprep.subr.mxu1 %v11309_v42  ;;  %4217 = vmatpush2.msra.mxu0 %v11310_v4  ;;  %v11323_v42 = vld [vmem:[#allocation490_spill] sm:$0xff] }
 0x312   :  { %4506 = vmatpush2.msra.mxu1 %v11311_v40  ;;  %4219 = vmatprep.subr.mxu0 %v11312_v11  ;;  %v11324_v40 = vld [vmem:[#allocation475_spill] sm:$0xff] }
 0x313   :  { %4512 = vmatprep.subr.mxu1 %v11313_v53  ;;  %4221 = vmatpush2.msra.mxu0 %v11314_v5  ;;  %v11325_v53 = vld [vmem:[#allocation493_spill] sm:$0xff]  ;;  %v11345_v5 = vld [vmem:[#allocation526_spill] sm:$0xff] }
 0x314   :  { %4518 = vmatpush2.msra.mxu1 %v11315_v12  ;;  %4223 = vmatprep.subr.mxu0 %v11316_v7  ;;  %v11326_v12 = vld [vmem:[#allocation481_spill] sm:$0xff]  ;;  %v11342_v7 = vld [vmem:[#allocation507_spill] sm:$0xff] }
 0x315   :  { %4524 = vmatprep.subr.mxu1 %v11317_v36  ;;  %4225 = vmatpush2.msra.mxu0 %v11318_v55  ;;  %v11328_v36 = vld [vmem:[#allocation484_spill] sm:$0xff] }
 0x316   :  { %4530 = vmatpush2.msra.mxu1 %v11319_v19  ;;  %4227 = vmatprep.subr.mxu0 %v11320_v2  ;;  %v11329_v55 = vld [vmem:[#allocation504_spill] sm:$0xff]  ;;  %v11330_v19 = vld [vmem:[#allocation487_spill] sm:$0xff]  ;;  %v11331_v2 = vld [vmem:[#allocation513_spill] sm:$0xff] }
 0x317   :  { %4536 = vmatprep.subr.mxu1 %v11321_v58  ;;  %4229 = vmatpush2.msra.mxu0 %v11322_v37  ;;  %v8827_v58 = vld [vmem:[#allocation4] sm:$0xff]  ;;  %v8829_v37 = vld [vmem:[#allocation4 + $0x8] sm:$0xff] }
 0x318   :  { %4542 = vmatpush2.msra.mxu1 %v11323_v42  ;;  %4231 = vmatprep.subr.mxu0 %v11324_v40  ;;  %11332 = vst [vmem:[#allocation21_spill] sm:$0xff] %v8827_v58  ;;  %11333 = vst [vmem:[#allocation22_spill] sm:$0xff] %v8829_v37  ;;  %v84_v42 = vadd.f32 %v8829_v37, %v8827_v58  ;;  %v11341_v40 = vld [vmem:[#allocation524_spill] sm:$0xff]  ;;  %v11344_v58 = vld [vmem:[#allocation263_spill] sm:$0xff] }
 0x319   :  { %4548 = vmatprep.subr.mxu1 %v11325_v53  ;;  %4233 = vmatpush2.msra.mxu0 %v11326_v12  ;;  %v11334_v53 = vld [vmem:[#allocation494_spill] sm:$0xff]  ;;  %v11335_v12 = vld [vmem:[#allocation515_spill] sm:$0xff]  ;;  %v11343_v37 = vld [vmem:[#allocation260_spill] sm:$0xff] }
 0x31a   :  { %4554 = vmatpush2.msra.mxu1 %v11327_v18  ;;  %4235 = vmatprep.subr.mxu0 %v11328_v36  ;;  %v11336_v18 = vld [vmem:[#allocation498_spill] sm:$0xff] }
 0x31b   :  { %4560 = vmatprep.subr.mxu1 %v11329_v55  ;;  %4237 = vmatpush2.msra.mxu0 %v11330_v19  ;;  %v11337_v36 = vld [vmem:[#allocation518_spill] sm:$0xff]  ;;  %v11338_v55 = vld [vmem:[#allocation501_spill] sm:$0xff] }
 0x31c   :  { %4566 = vmatpush2.msra.mxu1 %v11331_v2  ;;  %4239 = vmatprep.subr.mxu0 %v11334_v53  ;;  %v11339_v19 = vld [vmem:[#allocation521_spill] sm:$0xff]  ;;  %v11340_v2 = vld [vmem:[#allocation502_spill] sm:$0xff]  ;;  %v90_v53 = vadd.f32 %v11344_v58, %v11343_v37  ;;  %v11356_v58 = vld [vmem:[#allocation279_spill] sm:$0xff] }
 0x31d   :  { %4572 = vmatprep.subr.mxu1 %v11335_v12  ;;  %4241 = vmatpush2.msra.mxu0 %v11336_v18  ;;  %v11346_v12 = vld [vmem:[#allocation510_spill] sm:$0xff]  ;;  %v11347_v18 = vld [vmem:[#allocation528_spill] sm:$0xff]  ;;  %v11354_v37 = vld [vmem:[#allocation533_spill] sm:$0xff] }
 0x31e   :  { %4578 = vmatpush2.msra.mxu1 %v11337_v36  ;;  %4243 = vmatprep.subr.mxu0 %v11338_v55  ;;  %v11348_v36 = vld [vmem:[#allocation19_spill] sm:$0xff]  ;;  %v11349_v55 = vld [vmem:[#allocation530_spill] sm:$0xff] }
 0x31f   :  { %4584 = vmatprep.subr.mxu1 %v11339_v19  ;;  %85 = vadd.xlane.f32.xlu0 %v84_v42  ;;  %v11350_v19 = vld [vmem:[#allocation286_spill] sm:$0xff]  ;;  %v11351_v42 = vld [vmem:[#allocation20_spill] sm:$0xff] }
 0x320   :  { %4245 = vmatpush2.msra.mxu0 %v11340_v2  ;;  %4590 = vmatpush2.msra.mxu1 %v11341_v40  ;;  %v11352_v40 = vld [vmem:[#allocation532_spill] sm:$0xff] }
 0x321   :  { %4247 = vmatprep.subr.mxu0 %v11342_v7  ;;  %4596 = vmatprep.subr.mxu1 %v11345_v5  ;;  %v11353_v7 = vld [vmem:[#allocation290_spill] sm:$0xff]  ;;  %v11355_v5 = vld [vmem:[#allocation291_spill] sm:$0xff] }
 0x322   :  { %4249 = vmatpush2.msra.mxu0 %v11346_v12  ;;  %4602 = vmatpush2.msra.mxu1 %v11347_v18  ;;  %v11357_v18 = vld [vmem:[#allocation295_spill] sm:$0xff] }
 0x323   :  { %4255 = vmatprep.mubr.f32.mxu0 %v11348_v36  ;;  %4608 = vmatprep.subr.mxu1 %v11349_v55  ;;  %v11358_v36 = vld [vmem:[#allocation276_spill] sm:$0xff]  ;;  %v11359_v55 = vld [vmem:[#allocation297_spill] sm:$0xff] }
 0x324   :  { %4662 = vmatprep.subr.mxu0 %v11350_v19  ;;  %91 = vadd.xlane.f32.xlu0 %v90_v53  ;;  %v11360_v19 = vld [vmem:[#allocation534_spill] sm:$0xff] }
 0x325   :  { %4261 = vmatmul.mubr.f32.vlgmr.msra.gmra.mxu0 %v11351_v42  ;;  %4614 = vmatpush2.msra.mxu1 %v11352_v40  ;;  %v11361_v53 = vld [vmem:[#allocation298_spill] sm:$0xff]  ;;  %v11362_v42 = vld [vmem:[#allocation535_spill] sm:$0xff] }
 0x326   :  { %4665 = vmatpush1.msra.mxu0 %v11353_v7  ;;  %4620 = vmatprep.subr.mxu1 %v11354_v37  ;;  %v11363_v40 = vld [vmem:[#allocation302_spill] sm:$0xff]  ;;  %v11364_v7 = vld [vmem:[#allocation536_spill] sm:$0xff]  ;;  %v11365_v37 = vld [vmem:[#allocation305_spill] sm:$0xff] }
 0x327   :  { %4668 = vmatprep.subr.mxu0 %v11355_v5  ;;  %4626 = vmatpush2.msra.mxu1 %v11356_v58  ;;  %v11366_v5 = vld [vmem:[#allocation310_spill] sm:$0xff] }
 0x328   :  { %4671 = vmatpush1.msra.mxu0 %v11357_v18  ;;  %4632 = vmatprep.subr.mxu1 %v11358_v36  ;;  %v11367_v58 = vld [vmem:[#allocation314_spill] sm:$0xff]  ;;  %v11368_v18 = vld [vmem:[#allocation317_spill] sm:$0xff] }
 0x329   :  { %4674 = vmatprep.subr.mxu0 %v11359_v55  ;;  %4638 = vmatpush2.msra.mxu1 %v11360_v19  ;;  %v11369_v36 = vld [vmem:[#allocation322_spill] sm:$0xff]  ;;  %v11370_v55 = vld [vmem:[#allocation323_spill] sm:$0xff] }
 0x32a   :  { %4677 = vmatpush1.msra.mxu0 %v11361_v53  ;;  %4644 = vmatprep.subr.mxu1 %v11362_v42  ;;  %v11371_v19 = vld [vmem:[#allocation326_spill] sm:$0xff]  ;;  %v11372_v53 = vld [vmem:[#allocation329_spill] sm:$0xff] }
 0x32b   :  { %4680 = vmatprep.subr.mxu0 %v11363_v40  ;;  %4650 = vmatpush2.msra.mxu1 %v11364_v7  ;;  %v11373_v42 = vld [vmem:[#allocation333_spill] sm:$0xff]  ;;  %v11374_v40 = vld [vmem:[#allocation339_spill] sm:$0xff]  ;;  %v11375_v7 = vld [vmem:[#allocation346_spill] sm:$0xff] }
 0x32c   :  { %4652 = vmatprep.mubr.f32.mxu1 %v11219_v34  ;;  %4683 = vmatpush1.msra.mxu0 %v11365_v37  ;;  %v11376_v37 = vld [vmem:[#allocation348_spill] sm:$0xff]  ;;  %v11429_v34 = vld [vmem:[#allocation481_spill] sm:$0xff] }
 0x32d   :  { %4654 = vmatmul.mubr.f32.vlgmr.msra.gmra.mxu1 %v11220_v25  ;;  %4686 = vmatprep.subr.mxu0 %v11366_v5  ;;  %v11377_v5 = vld [vmem:[#allocation354_spill] sm:$0xff]  ;;  %v11427_v25 = vld [vmem:[#allocation523_spill] sm:$0xff] }
 0x32e   :  { %4864 = vmatprep.subr.mxu1 %v11221_v50  ;;  %4689 = vmatpush1.msra.mxu0 %v11367_v58  ;;  %v11378_v58 = vld [vmem:[#allocation356_spill] sm:$0xff] }
 0x32f   :  { %4866 = vmatpush1.msra.mxu1 %v11223_v35  ;;  %4692 = vmatprep.subr.mxu0 %v11368_v18  ;;  %v11379_v18 = vld [vmem:[#allocation357_spill] sm:$0xff] }
 0x330   :  { %4868 = vmatprep.subr.mxu1 %v11225_v57  ;;  %4695 = vmatpush1.msra.mxu0 %v11369_v36  ;;  %v11380_v36 = vld [vmem:[#allocation364_spill] sm:$0xff] }
 0x331   :  { %4870 = vmatpush1.msra.mxu1 %v11227_v48  ;;  %4698 = vmatprep.subr.mxu0 %v11370_v55  ;;  %v11381_v55 = vld [vmem:[#allocation368_spill] sm:$0xff] }
 0x332   :  { %4872 = vmatprep.subr.mxu1 %v11228_v10  ;;  %4701 = vmatpush1.msra.mxu0 %v11371_v19  ;;  %v11382_v19 = vld [vmem:[#allocation374_spill] sm:$0xff] }
 0x333   :  { %4874 = vmatpush1.msra.mxu1 %v11229_v44  ;;  %4704 = vmatprep.subr.mxu0 %v11372_v53  ;;  %v11383_v53 = vld [vmem:[#allocation378_spill] sm:$0xff] }
 0x334   :  { %4876 = vmatprep.subr.mxu1 %v11230_v17  ;;  %4707 = vmatpush1.msra.mxu0 %v11373_v42  ;;  %v11384_v42 = vld [vmem:[#allocation381_spill] sm:$0xff] }
 0x335   :  { %4878 = vmatpush1.msra.mxu1 %v11231_v6  ;;  %4710 = vmatprep.subr.mxu0 %v11374_v40  ;;  %v11385_v40 = vld [vmem:[#allocation386_spill] sm:$0xff] }
 0x336   :  { %4880 = vmatprep.subr.mxu1 %v11232_v26  ;;  %4713 = vmatpush1.msra.mxu0 %v11375_v7  ;;  %v11386_v7 = vld [vmem:[#allocation387_spill] sm:$0xff] }
 0x337   :  { %4882 = vmatpush1.msra.mxu1 %v11234_v47  ;;  %4716 = vmatprep.subr.mxu0 %v11376_v37  ;;  %v11387_v37 = vld [vmem:[#allocation390_spill] sm:$0xff] }
 0x338   :  { %4884 = vmatprep.subr.mxu1 %v11236_v20  ;;  %4719 = vmatpush1.msra.mxu0 %v11377_v5  ;;  %v11388_v5 = vld [vmem:[#allocation393_spill] sm:$0xff] }
 0x339   :  { %4886 = vmatpush1.msra.mxu1 %v11238_v59  ;;  %4722 = vmatprep.subr.mxu0 %v11378_v58  ;;  %v11389_v58 = vld [vmem:[#allocation397_spill] sm:$0xff] }
 0x33a   :  { %4888 = vmatprep.subr.mxu1 %v11240_v23  ;;  %4725 = vmatpush1.msra.mxu0 %v11379_v18  ;;  %v11390_v18 = vld [vmem:[#allocation403_spill] sm:$0xff] }
 0x33b   :  { %4890 = vmatpush1.msra.mxu1 %v11242_v29  ;;  %4728 = vmatprep.subr.mxu0 %v11380_v36  ;;  %v11391_v36 = vld [vmem:[#allocation410_spill] sm:$0xff] }
 0x33c   :  { %4892 = vmatprep.subr.mxu1 %v11244_v60  ;;  %4731 = vmatpush1.msra.mxu0 %v11381_v55  ;;  %v11392_v55 = vld [vmem:[#allocation412_spill] sm:$0xff] }
 0x33d   :  { %4894 = vmatpush1.msra.mxu1 %v11246_v54  ;;  %4734 = vmatprep.subr.mxu0 %v11382_v19  ;;  %v11393_v19 = vld [vmem:[#allocation418_spill] sm:$0xff] }
 0x33e   :  { %4896 = vmatprep.subr.mxu1 %v11248_v0  ;;  %4737 = vmatpush1.msra.mxu0 %v11383_v53  ;;  %v11394_v53 = vld [vmem:[#allocation421_spill] sm:$0xff] }
 0x33f   :  { %4898 = vmatpush1.msra.mxu1 %v11250_v28  ;;  %4740 = vmatprep.subr.mxu0 %v11384_v42  ;;  %v11395_v42 = vld [vmem:[#allocation425_spill] sm:$0xff] }
 0x340   :  { %4900 = vmatprep.subr.mxu1 %v11252_v9  ;;  %4743 = vmatpush1.msra.mxu0 %v11385_v40  ;;  %v11396_v40 = vld [vmem:[#allocation428_spill] sm:$0xff] }
 0x341   :  { %4902 = vmatpush1.msra.mxu1 %v11254_v61  ;;  %4746 = vmatprep.subr.mxu0 %v11386_v7  ;;  %v11397_v7 = vld [vmem:[#allocation432_spill] sm:$0xff] }
 0x342   :  { %4904 = vmatprep.subr.mxu1 %v11256_v8  ;;  %4749 = vmatpush1.msra.mxu0 %v11387_v37  ;;  %v11398_v37 = vld [vmem:[#allocation438_spill] sm:$0xff] }
 0x343   :  { %4906 = vmatpush1.msra.mxu1 %v11258_v14  ;;  %4752 = vmatprep.subr.mxu0 %v11388_v5  ;;  %v11399_v5 = vld [vmem:[#allocation442_spill] sm:$0xff] }
 0x344   :  { %4908 = vmatprep.subr.mxu1 %v11260_v63  ;;  %4755 = vmatpush1.msra.mxu0 %v11389_v58  ;;  %v11400_v58 = vld [vmem:[#allocation445_spill] sm:$0xff] }
 0x345   :  { %4910 = vmatpush1.msra.mxu1 %v11262_v31  ;;  %4758 = vmatprep.subr.mxu0 %v11390_v18  ;;  %v11401_v18 = vld [vmem:[#allocation448_spill] sm:$0xff] }
 0x346   :  { %4912 = vmatprep.subr.mxu1 %v11264_v15  ;;  %4761 = vmatpush2.msra.mxu0 %v11391_v36  ;;  %v11402_v36 = vld [vmem:[#allocation451_spill] sm:$0xff] }
 0x347   :  { %4914 = vmatpush1.msra.mxu1 %v11266_v16  ;;  %4764 = vmatprep.subr.mxu0 %v11392_v55  ;;  %v11403_v55 = vld [vmem:[#allocation454_spill] sm:$0xff] }
 0x348   :  { %4916 = vmatprep.subr.mxu1 %v11268_v41  ;;  %4767 = vmatpush2.msra.mxu0 %v11393_v19  ;;  %v11404_v19 = vld [vmem:[#allocation457_spill] sm:$0xff] }
 0x349   :  { %4918 = vmatpush1.msra.mxu1 %v11270_v1  ;;  %4770 = vmatprep.subr.mxu0 %v11394_v53  ;;  %v11405_v53 = vld [vmem:[#allocation461_spill] sm:$0xff] }
 0x34a   :  { %4920 = vmatprep.subr.mxu1 %v11272_v39  ;;  %4773 = vmatpush2.msra.mxu0 %v11395_v42  ;;  %v11406_v42 = vld [vmem:[#allocation467_spill] sm:$0xff] }
 0x34b   :  { %4922 = vmatpush1.msra.mxu1 %v11274_v38  ;;  %4776 = vmatprep.subr.mxu0 %v11396_v40  ;;  %v11407_v40 = vld [vmem:[#allocation476_spill] sm:$0xff] }
 0x34c   :  { %4924 = vmatprep.subr.mxu1 %v11276_v21  ;;  %4779 = vmatpush2.msra.mxu0 %v11397_v7  ;;  %v11408_v7 = vld [vmem:[#allocation479_spill] sm:$0xff] }
 0x34d   :  { %4926 = vmatpush1.msra.mxu1 %v11278_v46  ;;  %4782 = vmatprep.subr.mxu0 %v11398_v37  ;;  %v11409_v37 = vld [vmem:[#allocation482_spill] sm:$0xff] }
 0x34e   :  { %4928 = vmatprep.subr.mxu1 %v11280_v51  ;;  %4785 = vmatpush2.msra.mxu0 %v11399_v5  ;;  %v11410_v5 = vld [vmem:[#allocation485_spill] sm:$0xff] }
 0x34f   :  { %4930 = vmatpush2.msra.mxu1 %v11282_v45  ;;  %4788 = vmatprep.subr.mxu0 %v11400_v58  ;;  %v11411_v58 = vld [vmem:[#allocation489_spill] sm:$0xff] }
 0x350   :  { %4932 = vmatprep.subr.mxu1 %v11284_v30  ;;  %4791 = vmatpush2.msra.mxu0 %v11401_v18  ;;  %v11412_v18 = vld [vmem:[#allocation492_spill] sm:$0xff] }
 0x351   :  { %4934 = vmatpush2.msra.mxu1 %v11286_v43  ;;  %4794 = vmatprep.subr.mxu0 %v11402_v36  ;;  %v11413_v36 = vld [vmem:[#allocation496_spill] sm:$0xff] }
 0x352   :  { %4936 = vmatprep.subr.mxu1 %v11288_v52  ;;  %4797 = vmatpush2.msra.mxu0 %v11403_v55  ;;  %v11414_v55 = vld [vmem:[#allocation500_spill] sm:$0xff] }
 0x353   :  { %4938 = vmatpush2.msra.mxu1 %v11290_v33  ;;  %4800 = vmatprep.subr.mxu0 %v11404_v19  ;;  %v11415_v19 = vld [vmem:[#allocation506_spill] sm:$0xff] }
 0x354   :  { %4940 = vmatprep.subr.mxu1 %v11292_v24  ;;  %4803 = vmatpush2.msra.mxu0 %v11405_v53  ;;  %v11416_v53 = vld [vmem:[#allocation459_spill] sm:$0xff] }
 0x355   :  { %4942 = vmatpush2.msra.mxu1 %v11294_v13  ;;  %4806 = vmatprep.subr.mxu0 %v11406_v42  ;;  %v11417_v42 = vld [vmem:[#allocation509_spill] sm:$0xff] }
 0x356   :  { %4944 = vmatprep.subr.mxu1 %v11296_v22  ;;  %4809 = vmatpush2.msra.mxu0 %v11407_v40  ;;  %v11418_v40 = vld [vmem:[#allocation463_spill] sm:$0xff] }
 0x357   :  { %4946 = vmatpush2.msra.mxu1 %v11298_v3  ;;  %4812 = vmatprep.subr.mxu0 %v11408_v7  ;;  %v11419_v7 = vld [vmem:[#allocation512_spill] sm:$0xff] }
 0x358   :  { %4948 = vmatprep.subr.mxu1 %v11300_v56  ;;  %4815 = vmatpush2.msra.mxu0 %v11409_v37  ;;  %v11420_v37 = vld [vmem:[#allocation469_spill] sm:$0xff] }
 0x359   :  { %4950 = vmatpush2.msra.mxu1 %v11302_v49  ;;  %4818 = vmatprep.subr.mxu0 %v11410_v5  ;;  %v11421_v5 = vld [vmem:[#allocation514_spill] sm:$0xff] }
 0x35a   :  { %4952 = vmatprep.subr.mxu1 %v11304_v32  ;;  %4821 = vmatpush2.msra.mxu0 %v11411_v58  ;;  %v11422_v58 = vld [vmem:[#allocation471_spill] sm:$0xff] }
 0x35b   :  { %4954 = vmatpush2.msra.mxu1 %v11306_v62  ;;  %4824 = vmatprep.subr.mxu0 %v11412_v18  ;;  %v11423_v18 = vld [vmem:[#allocation517_spill] sm:$0xff] }
 0x35c   :  { %4956 = vmatprep.subr.mxu1 %v11308_v27  ;;  %4827 = vmatpush2.msra.mxu0 %v11413_v36  ;;  %v11424_v36 = vld [vmem:[#allocation472_spill] sm:$0xff] }
 0x35d   :  { %4958 = vmatpush2.msra.mxu1 %v11310_v4  ;;  %4830 = vmatprep.subr.mxu0 %v11414_v55  ;;  %v11425_v55 = vld [vmem:[#allocation520_spill] sm:$0xff] }
 0x35e   :  { %4960 = vmatprep.subr.mxu1 %v11312_v11  ;;  %4833 = vmatpush2.msra.mxu0 %v11415_v19  ;;  %v11426_v19 = vld [vmem:[#allocation475_spill] sm:$0xff] }
 0x35f   :  { %4962 = vmatpush2.msra.mxu1 %v11416_v53  ;;  %4836 = vmatprep.subr.mxu0 %v11417_v42  ;;  %v11428_v42 = vld [vmem:[#allocation258_spill] sm:$0xff] }
 0x360   :  { %4964 = vmatprep.subr.mxu1 %v11418_v40  ;;  %4839 = vmatpush2.msra.mxu0 %v11419_v7  ;;  %v11430_v7 = vld [vmem:[#allocation254_spill] sm:$0xff] }
 0x361   :  { %4966 = vmatpush2.msra.mxu1 %v11420_v37  ;;  %4842 = vmatprep.subr.mxu0 %v11421_v5  ;;  %v11431_v37 = vld [vmem:[#allocation484_spill] sm:$0xff]  ;;  %v11432_v5 = vld [vmem:[#allocation293_spill] sm:$0xff] }
 0x362   :  { %4968 = vmatprep.subr.mxu1 %v11422_v58  ;;  %4845 = vmatpush2.msra.mxu0 %v11423_v18  ;;  %v11433_v58 = vld [vmem:[#allocation487_spill] sm:$0xff]  ;;  %v11434_v18 = vld [vmem:[#allocation296_spill] sm:$0xff] }
 0x363   :  { %4970 = vmatpush2.msra.mxu1 %v11424_v36  ;;  %4848 = vmatprep.subr.mxu0 %v11425_v55  ;;  %v11435_v36 = vld [vmem:[#allocation494_spill] sm:$0xff]  ;;  %v11436_v55 = vld [vmem:[#allocation300_spill] sm:$0xff] }
 0x364   :  { %4972 = vmatprep.subr.mxu1 %v11426_v19  ;;  %4851 = vmatpush2.msra.mxu0 %v11427_v25  ;;  %v11437_v19 = vld [vmem:[#allocation498_spill] sm:$0xff]  ;;  %v11438_v25 = vld [vmem:[#allocation304_spill] sm:$0xff] }
 0x365   :  { %4854 = vmatprep.mubr.f32.mxu0 %v11428_v42  ;;  %4974 = vmatpush2.msra.mxu1 %v11429_v34  ;;  %v11439_v42 = vld [vmem:[#allocation501_spill] sm:$0xff]  ;;  %v11440_v34 = vld [vmem:[#allocation306_spill] sm:$0xff] }
 0x366   :  { %4857 = vmatmul.mubr.f32.vlgmr.msra.gmra.mxu0 %v11430_v7  ;;  %4976 = vmatprep.subr.mxu1 %v11431_v37  ;;  %v11441_v7 = vld [vmem:[#allocation307_spill] sm:$0xff] }
 0x367   :  { %5007 = vmatprep.subr.mxu0 %v11432_v5  ;;  %4978 = vmatpush2.msra.mxu1 %v11433_v58  ;;  %v11442_v5 = vld [vmem:[#allocation507_spill] sm:$0xff]  ;;  %v11443_v58 = vld [vmem:[#allocation313_spill] sm:$0xff] }
 0x368   :  { %5011 = vmatpush1.msra.mxu0 %v11434_v18  ;;  %4980 = vmatprep.subr.mxu1 %v11435_v36  ;;  %v11444_v18 = vld [vmem:[#allocation17_spill] sm:$0xff] }
 0x369   :  { %5015 = vmatprep.subr.mxu0 %v11436_v55  ;;  %4982 = vmatpush2.msra.mxu1 %v11437_v19  ;;  %v11445_v55 = vld [vmem:[#allocation316_spill] sm:$0xff]  ;;  %v11446_v19 = vld [vmem:[#allocation18_spill] sm:$0xff] }
 0x36a   :  { %5019 = vmatpush1.msra.mxu0 %v11438_v25  ;;  %4984 = vmatprep.subr.mxu1 %v11439_v42  ;;  %v11447_v25 = vld [vmem:[#allocation321_spill] sm:$0xff] }
 0x36b   :  { %5023 = vmatprep.subr.mxu0 %v11440_v34  ;;  %4986 = vmatpush2.msra.mxu1 %v11340_v2  ;;  %v11448_v34 = vld [vmem:[#allocation325_spill] sm:$0xff] }
 0x36c   :  { %5027 = vmatpush1.msra.mxu0 %v11441_v7  ;;  %4988 = vmatprep.subr.mxu1 %v11442_v5  ;;  %v11449_v7 = vld [vmem:[#allocation328_spill] sm:$0xff] }
 0x36d   :  { %5031 = vmatprep.subr.mxu0 %v11443_v58  ;;  %4990 = vmatpush2.msra.mxu1 %v11346_v12  ;;  %v11450_v58 = vld [vmem:[#allocation335_spill] sm:$0xff] }
 0x36e   :  { %4994 = vmatprep.mubr.f32.mxu1 %v11444_v18  ;;  %5035 = vmatpush1.msra.mxu0 %v11445_v55  ;;  %v11451_v18 = vld [vmem:[#allocation336_spill] sm:$0xff]  ;;  %v11499_v55 = vld [vmem:[#allocation469_spill] sm:$0xff] }
 0x36f   :  { %4998 = vmatmul.mubr.f32.vlgmr.msra.gmra.mxu1 %v11446_v19  ;;  %5039 = vmatprep.subr.mxu0 %v11447_v25  ;;  %v11452_v19 = vld [vmem:[#allocation338_spill] sm:$0xff]  ;;  %v11501_v25 = vld [vmem:[#allocation471_spill] sm:$0xff] }
 0x370   :  { %5270 = vmatprep.subr.mxu1 %v11221_v50  ;;  %5043 = vmatpush1.msra.mxu0 %v11448_v34  ;;  %v11453_v50 = vld [vmem:[#allocation342_spill] sm:$0xff]  ;;  %v11503_v34 = vld [vmem:[#allocation472_spill] sm:$0xff] }
 0x371   :  { %5272 = vmatpush1.msra.mxu1 %v11223_v35  ;;  %5047 = vmatprep.subr.mxu0 %v11449_v7  ;;  %v11454_v35 = vld [vmem:[#allocation345_spill] sm:$0xff]  ;;  %v11505_v7 = vld [vmem:[#allocation475_spill] sm:$0xff] }
 0x372   :  { %5274 = vmatprep.subr.mxu1 %v11225_v57  ;;  %5051 = vmatpush1.msra.mxu0 %v11450_v58  ;;  %v11455_v57 = vld [vmem:[#allocation351_spill] sm:$0xff]  ;;  %v11507_v58 = vld [vmem:[#allocation269_spill] sm:$0xff] }
 0x373   :  { %5276 = vmatpush1.msra.mxu1 %v11227_v48  ;;  %5055 = vmatprep.subr.mxu0 %v11451_v18  ;;  %v11456_v48 = vld [vmem:[#allocation355_spill] sm:$0xff]  ;;  %v11509_v18 = vld [vmem:[#allocation266_spill] sm:$0xff] }
 0x374   :  { %5278 = vmatprep.subr.mxu1 %v11228_v10  ;;  %5059 = vmatpush1.msra.mxu0 %v11452_v19  ;;  %v11457_v10 = vld [vmem:[#allocation361_spill] sm:$0xff] }
 0x375   :  { %5280 = vmatpush1.msra.mxu1 %v11229_v44  ;;  %5063 = vmatprep.subr.mxu0 %v11453_v50  ;;  %v11458_v44 = vld [vmem:[#allocation367_spill] sm:$0xff] }
 0x376   :  { %5282 = vmatprep.subr.mxu1 %v11230_v17  ;;  %5067 = vmatpush1.msra.mxu0 %v11454_v35  ;;  %v11459_v17 = vld [vmem:[#allocation370_spill] sm:$0xff]  ;;  %v11510_v50 = vld [vmem:[#allocation487_spill] sm:$0xff] }
 0x377   :  { %5284 = vmatpush1.msra.mxu1 %v11231_v6  ;;  %5071 = vmatprep.subr.mxu0 %v11455_v57  ;;  %v11460_v6 = vld [vmem:[#allocation371_spill] sm:$0xff]  ;;  %v11511_v57 = vld [vmem:[#allocation498_spill] sm:$0xff] }
 0x378   :  { %5286 = vmatprep.subr.mxu1 %v11232_v26  ;;  %5075 = vmatpush1.msra.mxu0 %v11456_v48  ;;  %v11461_v26 = vld [vmem:[#allocation377_spill] sm:$0xff] }
 0x379   :  { %5288 = vmatpush1.msra.mxu1 %v11234_v47  ;;  %5079 = vmatprep.subr.mxu0 %v11457_v10  ;;  %v11462_v47 = vld [vmem:[#allocation380_spill] sm:$0xff]  ;;  %v11512_v48 = vld [vmem:[#allocation21_spill] sm:$0xff] }
 0x37a   :  { %5290 = vmatprep.subr.mxu1 %v11236_v20  ;;  %5083 = vmatpush1.msra.mxu0 %v11458_v44  ;;  %v11463_v20 = vld [vmem:[#allocation385_spill] sm:$0xff]  ;;  %v11513_v44 = vld [vmem:[#allocation22_spill] sm:$0xff] }
 0x37b   :  { %5292 = vmatpush1.msra.mxu1 %v11238_v59  ;;  %5087 = vmatprep.subr.mxu0 %v11459_v17  ;;  %v11464_v59 = vld [vmem:[#allocation389_spill] sm:$0xff] }
 0x37c   :  { %5294 = vmatprep.subr.mxu1 %v11240_v23  ;;  %5091 = vmatpush1.msra.mxu0 %v11460_v6  ;;  %v11465_v23 = vld [vmem:[#allocation392_spill] sm:$0xff] }
 0x37d   :  { %5296 = vmatpush1.msra.mxu1 %v11242_v29  ;;  %5095 = vmatprep.subr.mxu0 %v11461_v26  ;;  %v11466_v29 = vld [vmem:[#allocation399_spill] sm:$0xff] }
 0x37e   :  { %5298 = vmatprep.subr.mxu1 %v11244_v60  ;;  %5099 = vmatpush1.msra.mxu0 %v11462_v47  ;;  %v11467_v60 = vld [vmem:[#allocation400_spill] sm:$0xff] }
 0x37f   :  { %5300 = vmatpush1.msra.mxu1 %v11246_v54  ;;  %5103 = vmatprep.subr.mxu0 %v11463_v20  ;;  %v11468_v54 = vld [vmem:[#allocation402_spill] sm:$0xff] }
 0x380   :  { %5302 = vmatprep.subr.mxu1 %v11248_v0  ;;  %5107 = vmatpush1.msra.mxu0 %v11464_v59  ;;  %v11469_v0 = vld [vmem:[#allocation406_spill] sm:$0xff] }
 0x381   :  { %5304 = vmatpush1.msra.mxu1 %v11250_v28  ;;  %5111 = vmatprep.subr.mxu0 %v11465_v23  ;;  %v11470_v28 = vld [vmem:[#allocation409_spill] sm:$0xff]  ;;  %v5555_v23 = vld [vmem:[#allocation7 + $0x8] sm:$0xff] }
 0x382   :  { %5306 = vmatprep.subr.mxu1 %v11252_v9  ;;  %5115 = vmatpush1.msra.mxu0 %v11466_v29  ;;  %v11471_v9 = vld [vmem:[#allocation415_spill] sm:$0xff] }
 0x383   :  { %5308 = vmatpush1.msra.mxu1 %v11254_v61  ;;  %5119 = vmatprep.subr.mxu0 %v11467_v60  ;;  %v11472_v61 = vld [vmem:[#allocation420_spill] sm:$0xff] }
 0x384   :  { %5310 = vmatprep.subr.mxu1 %v11256_v8  ;;  %5123 = vmatpush1.msra.mxu0 %v11468_v54  ;;  %v11473_v8 = vld [vmem:[#allocation424_spill] sm:$0xff] }
 0x385   :  { %5312 = vmatpush1.msra.mxu1 %v11258_v14  ;;  %5127 = vmatprep.subr.mxu0 %v11469_v0  ;;  %v11474_v14 = vld [vmem:[#allocation431_spill] sm:$0xff] }
 0x386   :  { %5314 = vmatprep.subr.mxu1 %v11260_v63  ;;  %5131 = vmatpush1.msra.mxu0 %v11470_v28  ;;  %v11475_v63 = vld [vmem:[#allocation435_spill] sm:$0xff] }
 0x387   :  { %5316 = vmatpush1.msra.mxu1 %v11262_v31  ;;  %5135 = vmatprep.subr.mxu0 %v11471_v9  ;;  %v11476_v31 = vld [vmem:[#allocation437_spill] sm:$0xff] }
 0x388   :  { %5318 = vmatprep.subr.mxu1 %v11264_v15  ;;  %5139 = vmatpush2.msra.mxu0 %v11472_v61  ;;  %v11477_v15 = vld [vmem:[#allocation441_spill] sm:$0xff]  ;;  %v803_v61 = vpop.f32.mrf.mxu1 }
 0x389   :  { %5320 = vmatpush1.msra.mxu1 %v11266_v16  ;;  %5143 = vmatprep.subr.mxu0 %v11473_v8  ;;  %v11478_v16 = vld [vmem:[#allocation444_spill] sm:$0xff] }
 0x38a   :  { %5322 = vmatprep.subr.mxu1 %v11268_v41  ;;  %5147 = vmatpush2.msra.mxu0 %v11474_v14  ;;  %v11479_v41 = vld [vmem:[#allocation450_spill] sm:$0xff]  ;;  %v805_v14 = vpop.f32.mrf.mxu1 }
 0x38b   :  { %5324 = vmatpush1.msra.mxu1 %v11270_v1  ;;  %5151 = vmatprep.subr.mxu0 %v11475_v63  ;;  %v11480_v1 = vld [vmem:[#allocation453_spill] sm:$0xff] }
 0x38c   :  { %5326 = vmatprep.subr.mxu1 %v11272_v39  ;;  %5155 = vmatpush2.msra.mxu0 %v11476_v31  ;;  %v11481_v39 = vld [vmem:[#allocation456_spill] sm:$0xff]  ;;  %v1147_v31 = vpop.f32.mrf.mxu1 }
 0x38d   :  { %5328 = vmatpush1.msra.mxu1 %v11274_v38  ;;  %5159 = vmatprep.subr.mxu0 %v11477_v15  ;;  %v11482_v38 = vld [vmem:[#allocation460_spill] sm:$0xff] }
 0x38e   :  { %5330 = vmatprep.subr.mxu1 %v11276_v21  ;;  %5163 = vmatpush2.msra.mxu0 %v11478_v16  ;;  %v11483_v21 = vld [vmem:[#allocation464_spill] sm:$0xff]  ;;  %v1149_v16 = vpop.f32.mrf.mxu1 }
 0x38f   :  { %5332 = vmatpush1.msra.mxu1 %v11278_v46  ;;  %5167 = vmatprep.subr.mxu0 %v11479_v41  ;;  %v11484_v46 = vld [vmem:[#allocation466_spill] sm:$0xff] }
 0x390   :  { %5334 = vmatprep.subr.mxu1 %v11280_v51  ;;  %5171 = vmatpush2.msra.mxu0 %v11480_v1  ;;  %v11485_v51 = vld [vmem:[#allocation470_spill] sm:$0xff]  ;;  %v1549_v1 = vpop.f32.mrf.mxu1 }
 0x391   :  { %5336 = vmatpush2.msra.mxu1 %v11282_v45  ;;  %5175 = vmatprep.subr.mxu0 %v11481_v39  ;;  %v11486_v45 = vld [vmem:[#allocation473_spill] sm:$0xff] }
 0x392   :  { %5338 = vmatprep.subr.mxu1 %v11284_v30  ;;  %5179 = vmatpush2.msra.mxu0 %v11482_v38  ;;  %v11487_v30 = vld [vmem:[#allocation478_spill] sm:$0xff] }
 0x393   :  { %5340 = vmatpush2.msra.mxu1 %v11286_v43  ;;  %5183 = vmatprep.subr.mxu0 %v11483_v21  ;;  %v11488_v43 = vld [vmem:[#allocation488_spill] sm:$0xff]  ;;  %v1551_v21 = vpop.f32.mrf.mxu1 }
 0x394   :  { %5342 = vmatprep.subr.mxu1 %v11288_v52  ;;  %5187 = vmatpush2.msra.mxu0 %v11484_v46  ;;  %v11489_v52 = vld [vmem:[#allocation491_spill] sm:$0xff] }
 0x395   :  { %5344 = vmatpush2.msra.mxu1 %v11290_v33  ;;  %5191 = vmatprep.subr.mxu0 %v11485_v51  ;;  %v11490_v33 = vld [vmem:[#allocation495_spill] sm:$0xff]  ;;  %v2087_v51 = vpop.f32.mrf.mxu1 }
 0x396   :  { %5346 = vmatprep.subr.mxu1 %v11292_v24  ;;  %5195 = vmatpush2.msra.mxu0 %v11486_v45  ;;  %v11491_v24 = vld [vmem:[#allocation499_spill] sm:$0xff] }
 0x397   :  { %5348 = vmatpush2.msra.mxu1 %v11294_v13  ;;  %5199 = vmatprep.subr.mxu0 %v11487_v30  ;;  %v11492_v13 = vld [vmem:[#allocation503_spill] sm:$0xff] }
 0x398   :  { %5350 = vmatprep.subr.mxu1 %v11296_v22  ;;  %5203 = vmatpush2.msra.mxu0 %v11488_v43  ;;  %v11493_v22 = vld [vmem:[#allocation505_spill] sm:$0xff] }
 0x399   :  { %5352 = vmatpush2.msra.mxu1 %v11298_v3  ;;  %5207 = vmatprep.subr.mxu0 %v11489_v52  ;;  %v11494_v3 = vld [vmem:[#allocation508_spill] sm:$0xff]  ;;  %v2089_v52 = vpop.f32.mrf.mxu1 }
 0x39a   :  { %5354 = vmatprep.subr.mxu1 %v11300_v56  ;;  %5211 = vmatpush2.msra.mxu0 %v11490_v33  ;;  %v11495_v56 = vld [vmem:[#allocation511_spill] sm:$0xff] }
 0x39b   :  { %5356 = vmatpush2.msra.mxu1 %v11302_v49  ;;  %5215 = vmatprep.subr.mxu0 %v11491_v24  ;;  %v11496_v49 = vld [vmem:[#allocation516_spill] sm:$0xff]  ;;  %v2431_v24 = vpop.f32.mrf.mxu1 }
 0x39c   :  { %5358 = vmatprep.subr.mxu1 %v11304_v32  ;;  %5219 = vmatpush2.msra.mxu0 %v11492_v13  ;;  %v11497_v32 = vld [vmem:[#allocation519_spill] sm:$0xff] }
 0x39d   :  { %5360 = vmatpush2.msra.mxu1 %v11306_v62  ;;  %5223 = vmatprep.subr.mxu0 %v11493_v22  ;;  %v11498_v62 = vld [vmem:[#allocation522_spill] sm:$0xff]  ;;  %v2433_v22 = vpop.f32.mrf.mxu1 }
 0x39e   :  { %5362 = vmatprep.subr.mxu1 %v11308_v27  ;;  %5227 = vmatpush2.msra.mxu0 %v11494_v3  ;;  %v11500_v27 = vld [vmem:[#allocation525_spill] sm:$0xff] }
 0x39f   :  { %5364 = vmatpush2.msra.mxu1 %v11310_v4  ;;  %5231 = vmatprep.subr.mxu0 %v11495_v56  ;;  %v11502_v4 = vld [vmem:[#allocation527_spill] sm:$0xff]  ;;  %v2833_v56 = vpop.f32.mrf.mxu1 }
 0x3a0   :  { %5366 = vmatprep.subr.mxu1 %v11312_v11  ;;  %5235 = vmatpush2.msra.mxu0 %v11496_v49  ;;  %v11504_v11 = vld [vmem:[#allocation529_spill] sm:$0xff] }
 0x3a1   :  { %5368 = vmatpush2.msra.mxu1 %v11416_v53  ;;  %5239 = vmatprep.subr.mxu0 %v11497_v32  ;;  %v11506_v53 = vld [vmem:[#allocation531_spill] sm:$0xff]  ;;  %v2835_v32 = vpop.f32.mrf.mxu1 }
 0x3a2   :  { %5370 = vmatprep.subr.mxu1 %v11418_v40  ;;  %5243 = vmatpush2.msra.mxu0 %v11498_v62  ;;  %v11508_v40 = vld [vmem:[#allocation481_spill] sm:$0xff] }
 0x3a3   :  { %5372 = vmatpush2.msra.mxu1 %v11499_v55  ;;  %5247 = vmatprep.subr.mxu0 %v11500_v27 }
 0x3a4   :  { %5374 = vmatprep.subr.mxu1 %v11501_v25  ;;  %5251 = vmatpush2.msra.mxu0 %v11502_v4  ;;  %v3371_v25 = vpop.f32.mrf.mxu1 }
 0x3a5   :  { %5376 = vmatpush2.msra.mxu1 %v11503_v34  ;;  %5255 = vmatprep.subr.mxu0 %v11504_v11 }
 0x3a6   :  { %5378 = vmatprep.subr.mxu1 %v11505_v7  ;;  %5259 = vmatpush2.msra.mxu0 %v11506_v53  ;;  %v3373_v53 = vpop.f32.mrf.mxu1 }
 0x3a7   :  { %5261 = vmatprep.mubr.f32.mxu0 %v11507_v58  ;;  %5380 = vmatpush2.msra.mxu1 %v11508_v40 }
 0x3a8   :  { %5263 = vmatmul.mubr.f32.vlgmr.msra.gmra.mxu0 %v11509_v18  ;;  %5382 = vmatprep.subr.mxu1 %v11431_v37  ;;  %v86_v19 = vpop.xlane.xlu0 %85 }
 0x3a9   :  { %5398 = vmatprep.mubr.f32.mxu1 %v11507_v58  ;;  %5384 = vmatpush2.msra.mxu1 %v11510_v50  ;;  %v87_v35 = vmul.f32 0.00390625, %v86_v19  ;;  %v3715_v50 = vpop.f32.mrf.mxu1 }
 0x3aa   :  { %5386 = vmatprep.subr.mxu1 %v11435_v36  ;;  %v5554_v36 = vld [vmem:[#allocation7] sm:$0xff] }
 0x3ab   :  { %5388 = vmatpush2.msra.mxu1 %v11511_v57  ;;  %v88_v10 = vsub.f32 %v11512_v48, %v87_v35  ;;  %v89_v17 = vsub.f32 %v11513_v44, %v87_v35 }
 0x3ac   :  { %5390 = vmatprep.subr.mxu1 %v11439_v42 }
 0x3ad   :  { %5392 = vmatpush2.msra.mxu1 %v11340_v2  ;;  %v92_v6 = vpop.xlane.xlu0 %91  ;;  %v101_v37 = vmul.f32 %v88_v10, %v88_v10  ;;  %v102_v26 = vmul.f32 %v89_v17, %v89_v17 }
 0x3ae   :  { %5394 = vmatprep.subr.mxu1 %v11442_v5  ;;  %v93_v47 = vmul.f32 0.00390625, %v92_v6  ;;  %v5658_v5 = vmov 0.0  }
 0x3af   :  { %5396 = vmatpush2.msra.mxu1 %v11346_v12  ;;  %v103_v20 = vadd.f32 %v102_v26, %v101_v37  ;;  %77 = vst.msk [vmem:[#allocation2] sm:$0xff] %vm76_vm0, %v5658_v5  ;;  %v410_v12 = vpop.f32.mrf.mxu0 }
 0x3b0   :  { %5400 = vmatmul.mubr.f32.vlgmr.msra.gmra.mxu1 %v11509_v18  ;;  %v94_v59 = vsub.f32 %v5554_v36, %v93_v47  ;;  %v95_v29 = vsub.f32 %v5555_v23, %v93_v47  ;;  %v804_v35 = vadd.f32 %v803_v61, %v410_v12  ;;  %v3717_v47 = vpop.f32.mrf.mxu1 }
 0x3b1   :  { %104 = vadd.xlane.f32.xlu1 %v103_v20  ;;  %v412_v9 = vpop.f32.mrf.mxu0 }
 0x3b2   :  { %v106_v60 = vmul.f32 %v94_v59, %v94_v59  ;;  %v107_v42 = vmul.f32 %v95_v29, %v95_v29  ;;  %v96_v54 = vmul.f32 %v94_v59, %v88_v10  ;;  %v97_v2 = vmul.f32 %v95_v29, %v89_v17 }
 0x3b3   :  { %v1006_v8 = vpop.f32.mrf.mxu0  ;;  %v806_v48 = vadd.f32 %v805_v14, %v412_v9 }
 0x3b4   :  { %v108_v0 = vadd.f32 %v107_v42, %v106_v60  ;;  %v98_v28 = vadd.f32 %v97_v2, %v96_v54  ;;  %v1007_v17 = vadd.f32 %v1006_v8, %v804_v35  ;;  %v4117_v60 = vpop.f32.mrf.mxu1 }
 0x3b5   :  { %v1008_v63 = vpop.f32.mrf.mxu0 }
 0x3b6   :  { %109 = vadd.xlane.f32.xlu1 %v108_v0  ;;  %99 = vadd.xlane.f32.xlu0 %v98_v28  ;;  %v1009_v37 = vadd.f32 %v1008_v63, %v806_v48  ;;  %v1148_v20 = vadd.f32 %v1147_v31, %v1007_v17  ;;  %v4119_v9 = vpop.f32.mrf.mxu1 }
 0x3b7   :  { %v1412_v15 = vpop.f32.mrf.mxu0 }
 0x3b8   :  { %v1150_v59 = vadd.f32 %v1149_v16, %v1009_v37  ;;  %v1413_v42 = vadd.f32 %v1412_v15, %v1148_v20 }
 0x3b9   :  { %v1414_v41 = vpop.f32.mrf.mxu0 }
 0x3ba   :  { %v1415_v2 = vadd.f32 %v1414_v41, %v1150_v59  ;;  %v1550_v5 = vadd.f32 %v1549_v1, %v1413_v42 }
 0x3bb   :  { %v1694_v39 = vpop.f32.mrf.mxu0 }
 0x3bc   :  { %v2088_v40 = vadd.f32 %v2087_v51, %v1694_v39  ;;  %v1552_v12 = vadd.f32 %v1551_v21, %v1415_v2  ;;  %v5406_v31 = vmul.f32 %v1550_v5, %v1550_v5 }
 0x3bd   :  { %v1696_v46 = vpop.f32.mrf.mxu0 }
 0x3be   :  { %v2090_v18 = vadd.f32 %v2089_v52, %v1696_v46  ;;  %v120_v46 = vld [vmem:[#allocation2] sm:$0xff]  ;;  %v5407_v16 = vmul.f32 %v1552_v12, %v1552_v12 }
 0x3bf   :  { %v2290_v30 = vpop.f32.mrf.mxu0 }
 0x3c0   :  { %v2291_v57 = vadd.f32 %v2290_v30, %v2088_v40 }
 0x3c1   :  { %v2292_v33 = vpop.f32.mrf.mxu0 }
 0x3c2   :  { %v2293_v10 = vadd.f32 %v2292_v33, %v2090_v18  ;;  %v2432_v6 = vadd.f32 %v2431_v24, %v2291_v57 }
 0x3c3   :  { %v2696_v13 = vpop.f32.mrf.mxu0 }
 0x3c4   :  { %v2434_v26 = vadd.f32 %v2433_v22, %v2293_v10  ;;  %v2697_v36 = vadd.f32 %v2696_v13, %v2432_v6 }
 0x3c5   :  { %v2698_v3 = vpop.f32.mrf.mxu0 }
 0x3c6   :  { %v2699_v23 = vadd.f32 %v2698_v3, %v2434_v26  ;;  %v2834_v54 = vadd.f32 %v2833_v56, %v2697_v36 }
 0x3c7   :  { %v2978_v49 = vpop.f32.mrf.mxu0 }
 0x3c8   :  { %v2836_v0 = vadd.f32 %v2835_v32, %v2699_v23  ;;  %v5408_v61 = vmul.f32 %v2834_v54, %v2834_v54  ;;  %v3372_v52 = vadd.f32 %v3371_v25, %v2978_v49 }
 0x3c9   :  { %v2980_v27 = vpop.f32.mrf.mxu0 }
 0x3ca   :  { %v5409_v14 = vmul.f32 %v2836_v0, %v2836_v0  ;;  %v5410_v30 = vadd.f32 %v5408_v61, %v5406_v31  ;;  %v3374_v21 = vadd.f32 %v3373_v53, %v2980_v27 }
 0x3cb   :  { %v3574_v34 = vpop.f32.mrf.mxu0 }
 0x3cc   :  { %v5411_v15 = vadd.f32 %v5409_v14, %v5407_v16  ;;  %v3575_v24 = vadd.f32 %v3574_v34, %v3372_v52  ;;  %vm5414_vm3 = vcmp.eq.f32.partialorder %v5410_v30, inf  ;;  %vm5416_vm5 = vcmp.eq.f32.partialorder %v5410_v30, 0.0 }
 0x3cd   :  { %v3576_v19 = vpop.f32.mrf.mxu0 }
 0x3ce   :  { %v3577_v3 = vadd.f32 %v3576_v19, %v3374_v21  ;;  %v3716_v56 = vadd.f32 %v3715_v50, %v3575_v24  ;;  %vm5421_vm4 = vcmp.eq.f32.partialorder %v5411_v15, inf  ;;  %v5424_v2 = vand.u32 2147483648, %v5411_v15 }
 0x3cf   :  { %v3980_v44 = vpop.f32.mrf.mxu0  ;;  %vm5423_vm6 = vcmp.eq.f32.partialorder %v5411_v15, 0.0 }
 0x3d1   :  { %v3982_v29 = vpop.f32.mrf.mxu0 }
 0x3e5   :  { %v4262_v28 = vpop.f32.mrf.mxu0 }
 0x3e7   :  { %v4264_v63 = vpop.f32.mrf.mxu0 }
 0x3ed   :  { %v4655_v39 = vpop.f32.mrf.mxu1 }
 0x3ee   :  { %v4656_v13 = vadd.f32 %v4655_v39, %v4262_v28 }
 0x426   :  { %v4858_v51 = vpop.f32.mrf.mxu0 }
 0x428   :  { %v4860_v33 = vpop.f32.mrf.mxu0 }
 0x43a   :  { %v105_v38 = vpop.xlane.xlu1 %104 }
 0x43f   :  { %v110_v45 = vpop.xlane.xlu1 %109  ;;  %v100_v8 = vpop.xlane.xlu0 %99 }
 0x440   :  { %v111_v43 = vmul.f32 %v110_v45, %v105_v38 }
 0x442   :  { %5532 = vrsqrt.f32 %v111_v43  ;;  %vm114_vm1 = vcmp.eq.f32.partialorder %v111_v43, inf  ;;  %v117_v55 = vand.u32 2147483648, %v111_v43  ;;  %vm116_vm2 = vcmp.eq.f32.partialorder %v111_v43, 0.0 }
 0x44f   :  { %v5533_v62 = vpop.eup %5532 }
 0x450   :  { %v113_v4 = vmul.f32 %v5533_v62, %v111_v43  ;;  %v4859_v62 = vadd.f32 %v4858_v51, %v4656_v13 }
 0x452   :  { %v115_v11 = vsel %vm114_vm1, %v111_v43, %v113_v4  ;;  %v4657_v43 = vpop.f32.mrf.mxu1  ;;  %v3718_v4 = vadd.f32 %v3717_v47, %v3577_v3 }
 0x453   :  { %v118_v7 = vsel %vm116_vm2, %v117_v55, %v115_v11  ;;  %v4658_v32 = vadd.f32 %v4657_v43, %v4264_v63  ;;  %v3981_v11 = vadd.f32 %v3980_v44, %v3716_v56 }
 0x454   :  { %v119_v58 = vadd.f32 1e-08, %v118_v7  ;;  %v4999_v1 = vpop.f32.mrf.mxu1  ;;  %v3983_v25 = vadd.f32 %v3982_v29, %v3718_v4 }
 0x455   :  { %v4861_v7 = vadd.f32 %v4860_v33, %v4658_v32  ;;  %v4118_v40 = vadd.f32 %v4117_v60, %v3981_v11  ;;  %v5417_v60 = vand.u32 2147483648, %v5410_v30 }
 0x456   :  { %5534 = vrcp.f32 %v119_v58  ;;  %v5001_v55 = vpop.f32.mrf.mxu1  ;;  %v5000_v58 = vadd.f32 %v4999_v1, %v4859_v62  ;;  %v4120_v53 = vadd.f32 %v4119_v9, %v3983_v25 }
 0x457   :  { %5536 = vrsqrt.f32 %v5410_v30  ;;  %v5002_v18 = vadd.f32 %v5001_v55, %v4861_v7  ;;  %v5426_v10 = vmul.f32 %v4118_v40, %v4118_v40 }
 0x458   :  { %5538 = vrsqrt.f32 %v5411_v15  ;;  %v5427_v44 = vmul.f32 %v4120_v53, %v4120_v53 }
 0x463   :  { %v5535_v38 = vpop.eup %5534 }
 0x464   :  { %v122_v45 = vmul.f32 %v5535_v38, %v100_v8  ;;  %v5537_v47 = vpop.eup %5536 }
 0x465   :  { %v5539_v20 = vpop.eup %5538  ;;  %v5413_v59 = vmul.f32 %v5537_v47, %v5410_v30 }
 0x466   :  { %v123_v41 = vadd.f32 %v122_v45, %v120_v46  ;;  %v5420_v23 = vmul.f32 %v5539_v20, %v5411_v15 }
 0x467   :  { %v5415_v29 = vsel %vm5414_vm3, %v5410_v30, %v5413_v59 }
 0x468   :  { %125 = vst.msk [vmem:[#allocation2] sm:$0xff] %vm76_vm0, %v123_v41  ;;  %v5264_v22 = vpop.f32.mrf.mxu0  ;;  %v5422_v42 = vsel %vm5421_vm4, %v5411_v15, %v5420_v23  ;;  %v5418_v54 = vsel %vm5416_vm5, %v5417_v60, %v5415_v29 }
 0x469   :  { %v5265_v35 = vadd.f32 %v5264_v22, %v5000_v58  ;;  %v5425_v0 = vsel %vm5423_vm6, %v5424_v2, %v5422_v42  ;;  %v5446_v28 = vmax.f32 %v5418_v54, 1e-08 }
 0x46a   :  { %v5266_v49 = vpop.f32.mrf.mxu0  ;;  %v5447_v9 = vmax.f32 %v5425_v0, 1e-08 }
 0x46b   :  { %v5267_v48 = vadd.f32 %v5266_v49, %v5002_v18 }
 0x46f   :  { %v5475_v57 = vld [vmem:[#allocation2] sm:$0xff] }
 0x470   :  { %v5401_v27 = vpop.f32.mrf.mxu1  ;;  %v5476_v34 = vsel %vm76_vm0, %v5475_v57, 0.0 }
 0x471   :  { %v5402_v19 = vadd.f32 %v5401_v27, %v5265_v35  ;;  %5477 = vadd.xlane.f32.xlu1 %v5476_v34 }
 0x472   :  { %v5403_v50 = vpop.f32.mrf.mxu1 }
 0x473   :  { %v5428_v17 = vmul.f32 %v5402_v19, %v5402_v19  ;;  %v5404_v6 = vadd.f32 %v5403_v50, %v5267_v48 }
 0x475   :  { %v5430_v37 = vadd.f32 %v5428_v17, %v5426_v10  ;;  %v5429_v26 = vmul.f32 %v5404_v6, %v5404_v6 }
 0x477   :  { %5540 = vrsqrt.f32 %v5430_v37  ;;  %v5431_v36 = vadd.f32 %v5429_v26, %v5427_v44  ;;  %vm5434_vm7 = vcmp.eq.f32.partialorder %v5430_v37, inf  ;;  %v5437_v8 = vand.u32 2147483648, %v5430_v37 }
 0x478   :  { %vm5436_vm8 = vcmp.eq.f32.partialorder %v5430_v37, 0.0 }
 0x479   :  { %5542 = vrsqrt.f32 %v5431_v36  ;;  %vm5441_vm9 = vcmp.eq.f32.partialorder %v5431_v36, inf  ;;  %v5444_v38 = vand.u32 2147483648, %v5431_v36  ;;  %vm5443_vm10 = vcmp.eq.f32.partialorder %v5431_v36, 0.0 }
 0x47a   :  { %5544 = vlog2.f32 %v5446_v28 }
 0x47b   :  { %5546 = vlog2.f32 %v5447_v9 }
 0x484   :  { %v5541_v5 = vpop.eup %5540 }
 0x485   :  { %v5433_v12 = vmul.f32 %v5541_v5, %v5430_v37 }
 0x486   :  { %v5543_v61 = vpop.eup %5542 }
 0x487   :  { %v5435_v14 = vsel %vm5434_vm7, %v5430_v37, %v5433_v12  ;;  %v5440_v63 = vmul.f32 %v5543_v61, %v5431_v36  ;;  %v5545_v45 = vpop.eup %5544 }
 0x488   :  { %v5438_v39 = vsel %vm5436_vm8, %v5437_v8, %v5435_v14  ;;  %v5547_v30 = vpop.eup %5546  ;;  %v5449_v15 = vmul.f32 0.6931472, %v5545_v45 }
 0x489   :  { %v5442_v31 = vsel %vm5441_vm9, %v5431_v36, %v5440_v63  ;;  %v5454_v46 = vmax.f32 %v5438_v39, 1e-08  ;;  %v5451_v41 = vmul.f32 0.6931472, %v5547_v30 }
 0x48a   :  { %v5445_v16 = vsel %vm5443_vm10, %v5444_v38, %v5442_v31  ;;  %v5452_v1 = vmul.f32 0.4342945, %v5449_v15 }
 0x48b   :  { %v5455_v51 = vmax.f32 %v5445_v16, 1e-08  ;;  %5548 = vlog2.f32 %v5454_v46  ;;  %v5453_v13 = vmul.f32 0.4342945, %v5451_v41 }
 0x48d   :  { %5550 = vlog2.f32 %v5455_v51 }
 0x498   :  { %v5549_v43 = vpop.eup %5548 }
 0x499   :  { %v5457_v52 = vmul.f32 0.6931472, %v5549_v43 }
 0x49a   :  { %v5551_v33 = vpop.eup %5550 }
 0x49b   :  { %v5459_v21 = vmul.f32 0.6931472, %v5551_v33  ;;  %v5460_v24 = vmul.f32 0.4342945, %v5457_v52 }
 0x49d   :  { %v5461_v22 = vmul.f32 0.4342945, %v5459_v21  ;;  %v5462_v3 = vsub.f32 %v5452_v1, %v5460_v24 }
 0x49f   :  { %v5463_v56 = vsub.f32 %v5453_v13, %v5461_v22  ;;  %v5466_v32 = vmul.f32 %v5462_v3, %v5462_v3 }
 0x4a1   :  { %v5467_v62 = vmul.f32 %v5463_v56, %v5463_v56 }
 0x4a3   :  { %v5490_v55 = vadd.f32 %v5467_v62, %v5466_v32 }
 0x4a5   :  { %5491 = vadd.xlane.f32.xlu0 %v5490_v55 }
 0x4fa   :  { %v5478_v4 = vpop.xlane.xlu1 %5477 }
 0x4fb   :  { %v5479_v11 = vrot.slane %v5478_v4, 4 }
 0x4fd   :  { %v5480_v7 = vadd.f32 %v5479_v11, %v5478_v4 }
 0x4ff   :  { %v5481_v58 = vrot.slane %v5480_v7, 2 }
 0x501   :  { %v5482_v49 = vadd.f32 %v5481_v58, %v5480_v7 }
 0x503   :  { %v5483_v25 = vrot.slane %v5482_v49, 1 }
 0x505   :  { %v5484_v40 = vadd.f32 %v5483_v25, %v5482_v49 }
 0x507   :  { %5520 = vpush %v5484_v40 }
 0x52e   :  { %v5492_v18 = vpop.xlane.xlu0 %5491 }
 0x52f   :  { %v5493_v35 = vrot.slane %v5492_v18, 4 }
 0x531   :  { %v5494_v57 = vadd.f32 %v5493_v35, %v5492_v18 }
 0x533   :  { %v5495_v27 = vrot.slane %v5494_v57, 2 }
 0x535   :  { %v5496_v34 = vadd.f32 %v5495_v27, %v5494_v57 }
 0x537   :  { %v5497_v53 = vrot.slane %v5496_v34, 1 }
 0x538   :  { %s5521_s2 = spop %5520 }
 0x539   :  { %v5498_v48 = vadd.f32 %v5497_v53, %v5496_v34  ;;  %s5486_s13 = smul.f32 0.125, %s5521_s2 }
 0x53b   :  { %5522 = vpush %v5498_v48  ;;  %s5487_s15 = ssub.f32 1.0, %s5486_s13 }
 0x56c   :  { %s5523_s14 = spop %5522 }
 0x56d   :  { %s5500_s16 = smul.f32 0.00096899224, %s5523_s14 }
 0x56f   :  { %s5501_s17 = sadd.f32 %s5500_s16, %s5487_s15 }
 0x571   :  { %5503 = sst [smem:[#allocation12]] %s5501_s17 }
 0x572   :  { %5511 = dma.smem_to_hbm %s5659_s18, 16, %s9136_s5, [#allocation6]  }
 0x573   :  { %5650 = dma.done.wait [#allocation6], 16  }
 0x574   :  { %5651 = vsyncadd [#allocation6], 4294967280 }
 0x575   :  { %5515 = sfence }
 0x576   :  { %5516 = vsyncpa [#allocation5], 1 }
 0x577   :  { %5517 = vsyncpa [#allocation8], 1 }
 0x578   :  { %5518 = vsyncpa [#allocation11], 1 }
 0x579   :  { %5519 = vsyncpa [#allocation6], 1 }

</bundles_post_ra>
